<compile_context>
chip_gen: v7x
topology: tpu7x:2x2x1
jax: 0.10.0
libtpu: 0.0.40
codegen_flags: <defaults>
</compile_context>

<pallas_src>
import jax
import jax.numpy as jnp
from jax.experimental import pallas as pl
from jax.experimental.pallas import tpu as pltpu


# ----------------------------------------------------------------------------- utils
def _pick_row_tile(h, w):
    """Largest divisor of h that is a multiple of 8 (or h itself) keeping ~128 MXU rows."""
    target = max(1, 128 // max(w, 1))
    cands = [d for d in range(1, h + 1) if h % d == 0 and (d % 8 == 0 or d == h)]
    small = [d for d in cands if d <= target]
    return max(small) if small else min(cands)


def _parity_im2col_weights(w3, half):
    """Fold nearest-2x upsample + pad-1 into the 3x3 conv weights.

    w3: (3, 3, Cin, Cout2) HWIO (spectral-normalized).  Returns va, vb of shape
    (2, 9*Cin, 2*half) such that, with xsp = source zero-padded by 1 and
    P[(r, s), (ky, kx, ci)] = xsp[r + ky, s + kx, ci]:

        y[2r+pu, 2s+pj, c]        = (P @ va[pu])[(r, s), pj*half + c]
        y[2r+pu, 2s+pj, half + c] = (P @ vb[pu])[(r, s), pj*half + c]

    which is exactly conv3x3(pad=1, no bias) applied to the nearest-2x upsample.
    """
    cin, cout2 = w3.shape[2], w3.shape[3]
    # combine kernel rows per output-row parity (a indexes padded source row r+pu+a)
    ra = [jnp.stack([w3[0], w3[1] + w3[2]], axis=0),       # pu = 0
          jnp.stack([w3[0] + w3[1], w3[2]], axis=0)]       # pu = 1
    vs = []
    for pu in (0, 1):
        r = ra[pu]                                         # (2, 3, Cin, Cout2) = (a, kx, ci, co)
        wp = [jnp.stack([r[:, 0], r[:, 1] + r[:, 2]], axis=1),   # pj = 0 -> (a, b, ci, co)
              jnp.stack([r[:, 0] + r[:, 1], r[:, 2]], axis=1)]   # pj = 1
        v = jnp.zeros((3, 3, cin, 2, cout2), jnp.float32)
        for pj in (0, 1):
            for a in (0, 1):
                for b in (0, 1):
                    v = v.at[pu + a, pj + b, :, pj, :].set(wp[pj][a, b])
        vs.append(v.reshape(9 * cin, 2, cout2))
    v = jnp.stack(vs, axis=0)                              # (2, 9Cin, 2, Cout2)
    va = v[..., :half].reshape(2, 9 * cin, 2 * half)
    vb = v[..., half:].reshape(2, 9 * cin, 2 * half)
    return va, vb


# --------------------------------------------------------------------------- kernels
def _make_kernels(h, w, cin, half, trs):
    n2 = 2 * half                 # matmul output lanes, ordered (pj, channel)

    def patches(xsp_ref, r0):
        """(trs*w, 9*cin) bf16 im2col patches of the padded-source row tile."""
        pieces = []
        for ky in range(3):
            rows = xsp_ref[0, pl.ds(r0 + ky, trs), :, :]          # (trs, w+2, cin)
            for kx in range(3):
                pieces.append(rows[:, kx:kx + w, :].reshape(trs * w, cin))
        return jnp.concatenate(pieces, axis=-1)

    def stats_kernel(xsp_ref, va_ref, vb_ref, stats_ref):
        r0 = pl.program_id(1) * trs
        p = patches(xsp_ref, r0)
        sums, sqs = [], []
        for v_ref in (va_ref, vb_ref):
            acc_s = jnp.zeros((1, n2), jnp.float32)
            acc_q = jnp.zeros((1, n2), jnp.float32)
            for pu in (0, 1):
                o = jnp.dot(p, v_ref[pu], preferred_element_type=jnp.float32)
                acc_s = acc_s + jnp.sum(o, axis=0, keepdims=True)
                acc_q = acc_q + jnp.sum(o * o, axis=0, keepdims=True)
            sums.append(acc_s)
            sqs.append(acc_q)
        stats_ref[0, 0, :, :] = jnp.concatenate(
            [jnp.concatenate(sums, axis=-1), jnp.concatenate(sqs, axis=-1)], axis=0)

    def fwd_kernel(xsp_ref, va_ref, vb_ref, bn_ref, out_ref):
        r0 = pl.program_id(1) * trs
        p = patches(xsp_ref, r0)
        bn = bn_ref[...]                      # (4, n2): [scale_a, shift_a, scale_b, shift_b]
        for pu in (0, 1):
            oa = jnp.dot(p, va_ref[pu], preferred_element_type=jnp.float32)
            ob = jnp.dot(p, vb_ref[pu], preferred_element_type=jnp.float32)
            ga = oa * bn[0:1, :] + bn[1:2, :]          # BN affine (f32 VPU math)
            gb = ob * bn[2:3, :] + bn[3:4, :]
            g = ga * jax.nn.sigmoid(gb)                # GLU, (trs*w, n2)
            # Lane-dense store: fold width onto lanes -> (trs, w*n2) slab so the
            # writeback DMA and vst are full-width instead of (2*half)-lane masked.
            g3 = g.reshape(trs, w, n2)
            dense = jnp.concatenate([g3[:, s] for s in range(w)], axis=-1)
            out_ref[0, pu, :, :] = dense.astype(out_ref.dtype)

    return stats_kernel, fwd_kernel


# --------------------------------------------------------------------------- wrapper
def upsampling_forward(params, x_nchw):
    """Forward of `UpSampling` (NCHW in / NCHW out, like PyTorch)."""
    b, cin, h, w = x_nchw.shape
    w_sn = params["w"]                                  # (Cout2, Cin, 3, 3), spectral-normalized
    gamma = params["gamma"].astype(jnp.float32)
    beta = params["beta"].astype(jnp.float32)
    cout2 = w_sn.shape[0]
    half = cout2 // 2
    h2, w2 = 2 * h, 2 * w

    # layout / weight prep (one cheap XLA pass over x; no 4x upsampled tensor anywhere)
    x_nhwc = jnp.transpose(x_nchw, (0, 2, 3, 1))
    xsp = jnp.pad(x_nhwc, ((0, 0), (1, 1), (1, 1), (0, 0))).astype(jnp.bfloat16)
    w3 = jnp.transpose(w_sn, (2, 3, 1, 0)).astype(jnp.float32)     # HWIO
    va, vb = _parity_im2col_weights(w3, half)
    va = va.astype(jnp.bfloat16)
    vb = vb.astype(jnp.bfloat16)

    trs = _pick_row_tile(h, w)
    n_tiles = h // trs
    grid = (b, n_tiles)
    stats_kernel, fwd_kernel = _make_kernels(h, w, cin, half, trs)

    x_spec = pl.BlockSpec((1, h + 2, w + 2, cin), lambda bi, ti: (bi, 0, 0, 0))
    v_spec = pl.BlockSpec((2, 9 * cin, 2 * half), lambda bi, ti: (0, 0, 0))
    parallel = pltpu.CompilerParams(dimension_semantics=("parallel", "parallel"))

    # ---- phase 1: per-channel sum / sum-of-squares of the pre-BN conv output ----
    stats = pl.pallas_call(
        stats_kernel,
        out_shape=jax.ShapeDtypeStruct((b, n_tiles, 2, 4 * half), jnp.float32),
        grid=grid,
        in_specs=[x_spec, v_spec, v_spec],
        out_specs=pl.BlockSpec((1, 1, 2, 4 * half), lambda bi, ti: (bi, ti, 0, 0)),
        compiler_params=parallel,
    )(xsp, va, vb)

    # finalize BatchNorm statistics (a handful of scalars per channel)
    sums = jnp.sum(stats[:, :, 0, :], axis=(0, 1))                  # (4*half,)
    sqs = jnp.sum(stats[:, :, 1, :], axis=(0, 1))
    count = jnp.float32(b * h2 * w2)
    mean = jnp.concatenate([sums[:2 * half].reshape(2, half).sum(0),
                            sums[2 * half:].reshape(2, half).sum(0)]) / count
    ex2 = jnp.concatenate([sqs[:2 * half].reshape(2, half).sum(0),
                           sqs[2 * half:].reshape(2, half).sum(0)]) / count
    var = jnp.maximum(ex2 - mean * mean, 0.0)                       # biased var (torch training mode)
    scale = gamma * jax.lax.rsqrt(var + 1e-5)
    shift = beta - mean * scale
    bn = jnp.stack([jnp.tile(scale[:half], 2), jnp.tile(shift[:half], 2),
                    jnp.tile(scale[half:], 2), jnp.tile(shift[half:], 2)]
                   ).astype(jnp.float32)                            # (4, 2*half), (pj, c) lane order
    # TODO(synk): running-mean/var updates and eval-mode BN are training state, not
    # implemented in this forward-only kernel.

    # ---- phase 2: conv + fused BN affine + GLU, lane-dense output ----
    out_pb = pl.pallas_call(
        fwd_kernel,
        out_shape=jax.ShapeDtypeStruct((b, 2, h, w2 * half), jnp.float32),
        grid=grid,
        in_specs=[x_spec, v_spec, v_spec,
                  pl.BlockSpec((4, 2 * half), lambda bi, ti: (0, 0))],
        out_specs=pl.BlockSpec((1, 2, trs, w2 * half), lambda bi, ti: (bi, 0, ti, 0)),
        compiler_params=parallel,
    )(xsp, va, vb, bn)

    # De-interleave the output-row parity and go back to NCHW; this is the same single
    # transpose pass the NHWC->NCHW conversion needs anyway (XLA fuses it).
    out = out_pb.reshape(b, 2, h, w2, half)
    out = jnp.transpose(out, (0, 4, 2, 1, 3))          # (B, half, H, 2, W2)
    return out.reshape(b, half, h2, w2)


# -------------------------------------------------------------------- params / refs
def spectral_normalize(w_oihw, key, n_iter=1, eps=1e-12):
    """torch.nn.utils.spectral_norm: W / sigma, sigma via power iteration on the
    (out_ch, in_ch*kh*kw) reshaped weight.
    # TODO(synk): torch persists and refines `u` every forward; here one iteration
    # from a fixed random u is applied once at parameter setup."""
    out_ch = w_oihw.shape[0]
    w_mat = w_oihw.reshape(out_ch, -1)
    u = jax.random.normal(key, (out_ch,), jnp.float32)
    u = u / (jnp.linalg.norm(u) + eps)
    v = None
    for _ in range(n_iter):
        v = w_mat.T @ u
        v = v / (jnp.linalg.norm(v) + eps)
        u = w_mat @ v
        u = u / (jnp.linalg.norm(u) + eps)
    sigma = u @ (w_mat @ v)
    return w_oihw / sigma


def init_params(key, in_ch, out_ch):
    """weights_init: Conv ~ N(0, 0.02); BatchNorm gamma ~ N(1, 0.02), beta = 0."""
    k_w, k_u, k_g = jax.random.split(key, 3)
    w = 0.02 * jax.random.normal(k_w, (out_ch * 2, in_ch, 3, 3), jnp.float32)   # OIHW
    return dict(
        w=spectral_normalize(w, k_u),
        gamma=1.0 + 0.02 * jax.random.normal(k_g, (out_ch * 2,), jnp.float32),
        beta=jnp.zeros((out_ch * 2,), jnp.float32),
    )


def _reference_forward(params, x_nchw):
    """Pure-JAX reference: Upsample(2x nearest) -> conv3x3 p1 (no bias) ->
    BatchNorm2d (batch stats) -> GLU(dim=1)."""
    w = params["w"]
    gamma = params["gamma"]
    beta = params["beta"]
    xu = jnp.repeat(jnp.repeat(x_nchw, 2, axis=2), 2, axis=3)
    y = jax.lax.conv_general_dilated(
        xu, w, window_strides=(1, 1), padding=((1, 1), (1, 1)),
        dimension_numbers=("NCHW", "OIHW", "NCHW"))
    mean = y.mean(axis=(0, 2, 3), keepdims=True)
    var = jnp.mean((y - mean) ** 2, axis=(0, 2, 3), keepdims=True)
    yn = (y - mean) * jax.lax.rsqrt(var + 1e-5)
    yn = yn * gamma.reshape(1, -1, 1, 1) + beta.reshape(1, -1, 1, 1)
    half = yn.shape[1] // 2
    return yn[:, :half] * jax.nn.sigmoid(yn[:, half:])


# ------------------------------------------------------------------------------ main
if __name__ == "__main__":
    key = jax.random.PRNGKey(0)
    k_param, k_input = jax.random.split(key)

    in_ch, out_ch = 4, 4
    batch, height, width = 2, 16, 16

    params = init_params(k_param, in_ch, out_ch)
    x = jax.random.normal(k_input, (batch, in_ch, height, width), jnp.float32)

    fwd = jax.jit(upsampling_forward)
    out = jax.block_until_ready(fwd(params, x))

    assert out.shape == (batch, out_ch, 2 * height, 2 * width), out.shape
    assert bool(jnp.all(jnp.isfinite(out)))

    # Loose-tolerance structural check vs an XLA reference (kernel matmuls run in
    # bf16; any indexing/parity bug would give O(1) errors, far above this bound).
    ref = _reference_forward(params, x)
    err = float(jnp.max(jnp.abs(out - ref)))
    assert err < 0.2, f"max abs err vs reference = {err}"

    print("KERNEL_OK")
</pallas_src>

<mosaic_0001>
module attributes {stable_mosaic.version = 11 : i64} {
  func.func @stats_kernel(%arg0: i32, %arg1: i32, %arg2: memref<1x18x18x4xbf16, #tpu.memory_space<vmem>>, %arg3: memref<2x36x8xbf16, #tpu.memory_space<vmem>>, %arg4: memref<2x36x8xbf16, #tpu.memory_space<vmem>>, %arg5: memref<1x1x2x16xf32, #tpu.memory_space<vmem>>) attributes {dimension_semantics = [#tpu.dimension_semantics<parallel>, #tpu.dimension_semantics<parallel>], iteration_bounds = array<i64: 2, 2>, scalar_prefetch = 0 : i64, scratch_operands = 0 : i64, tpu.core_type = #tpu.core_type<tc>, window_params = [{transform_indices = @transform_0, window_bounds = array<i64: 1, 18, 18, 4>}, {pipeline_mode = #tpu.pipeline_mode<synchronous>, transform_indices = @transform_1, window_bounds = array<i64: 2, 36, 8>}, {pipeline_mode = #tpu.pipeline_mode<synchronous>, transform_indices = @transform_2, window_bounds = array<i64: 2, 36, 8>}, {transform_indices = @transform_3, window_bounds = array<i64: 1, 1, 2, 16>}]} {
    %c8_i32 = arith.constant 8 : i32
    %0 = arith.muli %arg1, %c8_i32 : i32
    %c0_i32 = arith.constant 0 : i32
    %1 = arith.addi %0, %c0_i32 : i32
    %c0 = arith.constant 0 : index
    %2 = arith.index_cast %1 : i32 to index
    %c0_0 = arith.constant 0 : index
    %c0_1 = arith.constant 0 : index
    %3 = vector.load %arg2[%c0, %2, %c0_0, %c0_1] : memref<1x18x18x4xbf16, #tpu.memory_space<vmem>>, vector<1x8x18x4xbf16>
    %4 = vector.shape_cast %3 : vector<1x8x18x4xbf16> to vector<8x18x4xbf16>
    %5 = vector.extract_strided_slice %4 {offsets = [0, 0, 0], sizes = [8, 16, 4], strides = [1, 1, 1]} : vector<8x18x4xbf16> to vector<8x16x4xbf16>
    %6 = vector.shape_cast %5 : vector<8x16x4xbf16> to vector<128x4xbf16>
    %7 = vector.extract_strided_slice %4 {offsets = [0, 1, 0], sizes = [8, 16, 4], strides = [1, 1, 1]} : vector<8x18x4xbf16> to vector<8x16x4xbf16>
    %8 = vector.shape_cast %7 : vector<8x16x4xbf16> to vector<128x4xbf16>
    %9 = vector.extract_strided_slice %4 {offsets = [0, 2, 0], sizes = [8, 16, 4], strides = [1, 1, 1]} : vector<8x18x4xbf16> to vector<8x16x4xbf16>
    %10 = vector.shape_cast %9 : vector<8x16x4xbf16> to vector<128x4xbf16>
    %c1_i32 = arith.constant 1 : i32
    %11 = arith.addi %0, %c1_i32 : i32
    %c0_2 = arith.constant 0 : index
    %12 = arith.index_cast %11 : i32 to index
    %c0_3 = arith.constant 0 : index
    %c0_4 = arith.constant 0 : index
    %13 = vector.load %arg2[%c0_2, %12, %c0_3, %c0_4] : memref<1x18x18x4xbf16, #tpu.memory_space<vmem>>, vector<1x8x18x4xbf16>
    %14 = vector.shape_cast %13 : vector<1x8x18x4xbf16> to vector<8x18x4xbf16>
    %15 = vector.extract_strided_slice %14 {offsets = [0, 0, 0], sizes = [8, 16, 4], strides = [1, 1, 1]} : vector<8x18x4xbf16> to vector<8x16x4xbf16>
    %16 = vector.shape_cast %15 : vector<8x16x4xbf16> to vector<128x4xbf16>
    %17 = vector.extract_strided_slice %14 {offsets = [0, 1, 0], sizes = [8, 16, 4], strides = [1, 1, 1]} : vector<8x18x4xbf16> to vector<8x16x4xbf16>
    %18 = vector.shape_cast %17 : vector<8x16x4xbf16> to vector<128x4xbf16>
    %19 = vector.extract_strided_slice %14 {offsets = [0, 2, 0], sizes = [8, 16, 4], strides = [1, 1, 1]} : vector<8x18x4xbf16> to vector<8x16x4xbf16>
    %20 = vector.shape_cast %19 : vector<8x16x4xbf16> to vector<128x4xbf16>
    %c2_i32 = arith.constant 2 : i32
    %21 = arith.addi %0, %c2_i32 : i32
    %c0_5 = arith.constant 0 : index
    %22 = arith.index_cast %21 : i32 to index
    %c0_6 = arith.constant 0 : index
    %c0_7 = arith.constant 0 : index
    %23 = vector.load %arg2[%c0_5, %22, %c0_6, %c0_7] : memref<1x18x18x4xbf16, #tpu.memory_space<vmem>>, vector<1x8x18x4xbf16>
    %24 = vector.shape_cast %23 : vector<1x8x18x4xbf16> to vector<8x18x4xbf16>
    %25 = vector.extract_strided_slice %24 {offsets = [0, 0, 0], sizes = [8, 16, 4], strides = [1, 1, 1]} : vector<8x18x4xbf16> to vector<8x16x4xbf16>
    %26 = vector.shape_cast %25 : vector<8x16x4xbf16> to vector<128x4xbf16>
    %27 = vector.extract_strided_slice %24 {offsets = [0, 1, 0], sizes = [8, 16, 4], strides = [1, 1, 1]} : vector<8x18x4xbf16> to vector<8x16x4xbf16>
    %28 = vector.shape_cast %27 : vector<8x16x4xbf16> to vector<128x4xbf16>
    %29 = vector.extract_strided_slice %24 {offsets = [0, 2, 0], sizes = [8, 16, 4], strides = [1, 1, 1]} : vector<8x18x4xbf16> to vector<8x16x4xbf16>
    %30 = vector.shape_cast %29 : vector<8x16x4xbf16> to vector<128x4xbf16>
    %31 = tpu.concatenate %6, %8, %10, %16, %18, %20, %26, %28, %30 in 1 : vector<128x4xbf16>, vector<128x4xbf16>, vector<128x4xbf16>, vector<128x4xbf16>, vector<128x4xbf16>, vector<128x4xbf16>, vector<128x4xbf16>, vector<128x4xbf16>, vector<128x4xbf16> -> vector<128x36xbf16>
    %cst = arith.constant 0.000000e+00 : f32
    %32 = vector.broadcast %cst : f32 to vector<1x8xf32>
    %cst_8 = arith.constant 0.000000e+00 : f32
    %33 = vector.broadcast %cst_8 : f32 to vector<1x8xf32>
    %c0_9 = arith.constant 0 : index
    %c0_10 = arith.constant 0 : index
    %c0_11 = arith.constant 0 : index
    %34 = vector.load %arg3[%c0_9, %c0_10, %c0_11] : memref<2x36x8xbf16, #tpu.memory_space<vmem>>, vector<1x36x8xbf16>
    %35 = vector.shape_cast %34 : vector<1x36x8xbf16> to vector<36x8xbf16>
    %cst_12 = arith.constant dense<0.000000e+00> : vector<128x8xf32>
    %36 = tpu.matmul %31, %35, %cst_12 {dimension_numbers = #tpu.dot_dimension_numbers<[1], [0], [0], [1], [0, 0, 1, 1], [], []>} : vector<128x36xbf16>, vector<36x8xbf16>, vector<128x8xf32> -> vector<128x8xf32>
    %cst_13 = arith.constant dense<0.000000e+00> : vector<8xf32>
    %37 = vector.multi_reduction <add>, %36, %cst_13 [0] : vector<128x8xf32> to vector<8xf32>
    %38 = vector.shape_cast %37 : vector<8xf32> to vector<1x8xf32>
    %39 = arith.addf %32, %38 : vector<1x8xf32>
    %40 = arith.mulf %36, %36 : vector<128x8xf32>
    %cst_14 = arith.constant dense<0.000000e+00> : vector<8xf32>
    %41 = vector.multi_reduction <add>, %40, %cst_14 [0] : vector<128x8xf32> to vector<8xf32>
    %42 = vector.shape_cast %41 : vector<8xf32> to vector<1x8xf32>
    %43 = arith.addf %33, %42 : vector<1x8xf32>
    %c1 = arith.constant 1 : index
    %c0_15 = arith.constant 0 : index
    %c0_16 = arith.constant 0 : index
    %44 = vector.load %arg3[%c1, %c0_15, %c0_16] : memref<2x36x8xbf16, #tpu.memory_space<vmem>>, vector<1x36x8xbf16>
    %45 = vector.shape_cast %44 : vector<1x36x8xbf16> to vector<36x8xbf16>
    %cst_17 = arith.constant dense<0.000000e+00> : vector<128x8xf32>
    %46 = tpu.matmul %31, %45, %cst_17 {dimension_numbers = #tpu.dot_dimension_numbers<[1], [0], [0], [1], [0, 0, 1, 1], [], []>} : vector<128x36xbf16>, vector<36x8xbf16>, vector<128x8xf32> -> vector<128x8xf32>
    %cst_18 = arith.constant dense<0.000000e+00> : vector<8xf32>
    %47 = vector.multi_reduction <add>, %46, %cst_18 [0] : vector<128x8xf32> to vector<8xf32>
    %48 = vector.shape_cast %47 : vector<8xf32> to vector<1x8xf32>
    %49 = arith.addf %39, %48 : vector<1x8xf32>
    %50 = arith.mulf %46, %46 : vector<128x8xf32>
    %cst_19 = arith.constant dense<0.000000e+00> : vector<8xf32>
    %51 = vector.multi_reduction <add>, %50, %cst_19 [0] : vector<128x8xf32> to vector<8xf32>
    %52 = vector.shape_cast %51 : vector<8xf32> to vector<1x8xf32>
    %53 = arith.addf %43, %52 : vector<1x8xf32>
    %cst_20 = arith.constant 0.000000e+00 : f32
    %54 = vector.broadcast %cst_20 : f32 to vector<1x8xf32>
    %cst_21 = arith.constant 0.000000e+00 : f32
    %55 = vector.broadcast %cst_21 : f32 to vector<1x8xf32>
    %c0_22 = arith.constant 0 : index
    %c0_23 = arith.constant 0 : index
    %c0_24 = arith.constant 0 : index
    %56 = vector.load %arg4[%c0_22, %c0_23, %c0_24] : memref<2x36x8xbf16, #tpu.memory_space<vmem>>, vector<1x36x8xbf16>
    %57 = vector.shape_cast %56 : vector<1x36x8xbf16> to vector<36x8xbf16>
    %cst_25 = arith.constant dense<0.000000e+00> : vector<128x8xf32>
    %58 = tpu.matmul %31, %57, %cst_25 {dimension_numbers = #tpu.dot_dimension_numbers<[1], [0], [0], [1], [0, 0, 1, 1], [], []>} : vector<128x36xbf16>, vector<36x8xbf16>, vector<128x8xf32> -> vector<128x8xf32>
    %cst_26 = arith.constant dense<0.000000e+00> : vector<8xf32>
    %59 = vector.multi_reduction <add>, %58, %cst_26 [0] : vector<128x8xf32> to vector<8xf32>
    %60 = vector.shape_cast %59 : vector<8xf32> to vector<1x8xf32>
    %61 = arith.addf %54, %60 : vector<1x8xf32>
    %62 = arith.mulf %58, %58 : vector<128x8xf32>
    %cst_27 = arith.constant dense<0.000000e+00> : vector<8xf32>
    %63 = vector.multi_reduction <add>, %62, %cst_27 [0] : vector<128x8xf32> to vector<8xf32>
    %64 = vector.shape_cast %63 : vector<8xf32> to vector<1x8xf32>
    %65 = arith.addf %55, %64 : vector<1x8xf32>
    %c1_28 = arith.constant 1 : index
    %c0_29 = arith.constant 0 : index
    %c0_30 = arith.constant 0 : index
    %66 = vector.load %arg4[%c1_28, %c0_29, %c0_30] : memref<2x36x8xbf16, #tpu.memory_space<vmem>>, vector<1x36x8xbf16>
    %67 = vector.shape_cast %66 : vector<1x36x8xbf16> to vector<36x8xbf16>
    %cst_31 = arith.constant dense<0.000000e+00> : vector<128x8xf32>
    %68 = tpu.matmul %31, %67, %cst_31 {dimension_numbers = #tpu.dot_dimension_numbers<[1], [0], [0], [1], [0, 0, 1, 1], [], []>} : vector<128x36xbf16>, vector<36x8xbf16>, vector<128x8xf32> -> vector<128x8xf32>
    %cst_32 = arith.constant dense<0.000000e+00> : vector<8xf32>
    %69 = vector.multi_reduction <add>, %68, %cst_32 [0] : vector<128x8xf32> to vector<8xf32>
    %70 = vector.shape_cast %69 : vector<8xf32> to vector<1x8xf32>
    %71 = arith.addf %61, %70 : vector<1x8xf32>
    %72 = arith.mulf %68, %68 : vector<128x8xf32>
    %cst_33 = arith.constant dense<0.000000e+00> : vector<8xf32>
    %73 = vector.multi_reduction <add>, %72, %cst_33 [0] : vector<128x8xf32> to vector<8xf32>
    %74 = vector.shape_cast %73 : vector<8xf32> to vector<1x8xf32>
    %75 = arith.addf %65, %74 : vector<1x8xf32>
    %76 = tpu.concatenate %49, %71 in 1 : vector<1x8xf32>, vector<1x8xf32> -> vector<1x16xf32>
    %77 = tpu.concatenate %53, %75 in 1 : vector<1x8xf32>, vector<1x8xf32> -> vector<1x16xf32>
    %78 = tpu.concatenate %76, %77 in 0 : vector<1x16xf32>, vector<1x16xf32> -> vector<2x16xf32>
    %c0_34 = arith.constant 0 : index
    %c0_35 = arith.constant 0 : index
    %c0_36 = arith.constant 0 : index
    %c0_37 = arith.constant 0 : index
    %79 = vector.load %arg5[%c0_34, %c0_35, %c0_36, %c0_37] : memref<1x1x2x16xf32, #tpu.memory_space<vmem>>, vector<1x1x2x16xf32>
    %80 = vector.shape_cast %79 : vector<1x1x2x16xf32> to vector<2x16xf32>
    %81 = vector.shape_cast %78 : vector<2x16xf32> to vector<1x1x2x16xf32>
    tpu.vector_store %arg5[%c0_34, %c0_35, %c0_36, %c0_37], %81 {strides = array<i32>} : memref<1x1x2x16xf32, #tpu.memory_space<vmem>>, vector<1x1x2x16xf32>,
    return
  }
  func.func @transform_0(%arg0: i32, %arg1: i32) -> (i32, i32, i32, i32) {
    %c0_i32 = arith.constant 0 : i32
    %c0_i32_0 = arith.constant 0 : i32
    %c0_i32_1 = arith.constant 0 : i32
    %c0_i32_2 = arith.constant 0 : i32
    return %arg0, %c0_i32, %c0_i32_0, %c0_i32_1 : i32, i32, i32, i32
  }
  func.func @transform_1(%arg0: i32, %arg1: i32) -> (i32, i32, i32) {
    %c0_i32 = arith.constant 0 : i32
    %c0_i32_0 = arith.constant 0 : i32
    %c0_i32_1 = arith.constant 0 : i32
    %c0_i32_2 = arith.constant 0 : i32
    return %c0_i32, %c0_i32_0, %c0_i32_1 : i32, i32, i32
  }
  func.func @transform_2(%arg0: i32, %arg1: i32) -> (i32, i32, i32) {
    %c0_i32 = arith.constant 0 : i32
    %c0_i32_0 = arith.constant 0 : i32
    %c0_i32_1 = arith.constant 0 : i32
    %c0_i32_2 = arith.constant 0 : i32
    return %c0_i32, %c0_i32_0, %c0_i32_1 : i32, i32, i32
  }
  func.func @transform_3(%arg0: i32, %arg1: i32) -> (i32, i32, i32, i32) {
    %c0_i32 = arith.constant 0 : i32
    %c0_i32_0 = arith.constant 0 : i32
    %c0_i32_1 = arith.constant 0 : i32
    return %arg0, %arg1, %c0_i32, %c0_i32_0 : i32, i32, i32, i32
  }
}

module attributes {stable_mosaic.version = 11 : i64} {
  func.func @fwd_kernel(%arg0: i32, %arg1: i32, %arg2: memref<1x18x18x4xbf16, #tpu.memory_space<vmem>>, %arg3: memref<2x36x8xbf16, #tpu.memory_space<vmem>>, %arg4: memref<2x36x8xbf16, #tpu.memory_space<vmem>>, %arg5: memref<4x8xf32, #tpu.memory_space<vmem>>, %arg6: memref<1x2x8x128xf32, #tpu.memory_space<vmem>>) attributes {dimension_semantics = [#tpu.dimension_semantics<parallel>, #tpu.dimension_semantics<parallel>], iteration_bounds = array<i64: 2, 2>, scalar_prefetch = 0 : i64, scratch_operands = 0 : i64, tpu.core_type = #tpu.core_type<tc>, window_params = [{transform_indices = @transform_0, window_bounds = array<i64: 1, 18, 18, 4>}, {pipeline_mode = #tpu.pipeline_mode<synchronous>, transform_indices = @transform_1, window_bounds = array<i64: 2, 36, 8>}, {pipeline_mode = #tpu.pipeline_mode<synchronous>, transform_indices = @transform_2, window_bounds = array<i64: 2, 36, 8>}, {pipeline_mode = #tpu.pipeline_mode<synchronous>, transform_indices = @transform_3, window_bounds = array<i64: 4, 8>}, {transform_indices = @transform_4, window_bounds = array<i64: 1, 2, 8, 128>}]} {
    %c8_i32 = arith.constant 8 : i32
    %0 = arith.muli %arg1, %c8_i32 : i32
    %c0_i32 = arith.constant 0 : i32
    %1 = arith.addi %0, %c0_i32 : i32
    %c0 = arith.constant 0 : index
    %2 = arith.index_cast %1 : i32 to index
    %c0_0 = arith.constant 0 : index
    %c0_1 = arith.constant 0 : index
    %3 = vector.load %arg2[%c0, %2, %c0_0, %c0_1] : memref<1x18x18x4xbf16, #tpu.memory_space<vmem>>, vector<1x8x18x4xbf16>
    %4 = vector.shape_cast %3 : vector<1x8x18x4xbf16> to vector<8x18x4xbf16>
    %5 = vector.extract_strided_slice %4 {offsets = [0, 0, 0], sizes = [8, 16, 4], strides = [1, 1, 1]} : vector<8x18x4xbf16> to vector<8x16x4xbf16>
    %6 = vector.shape_cast %5 : vector<8x16x4xbf16> to vector<128x4xbf16>
    %7 = vector.extract_strided_slice %4 {offsets = [0, 1, 0], sizes = [8, 16, 4], strides = [1, 1, 1]} : vector<8x18x4xbf16> to vector<8x16x4xbf16>
    %8 = vector.shape_cast %7 : vector<8x16x4xbf16> to vector<128x4xbf16>
    %9 = vector.extract_strided_slice %4 {offsets = [0, 2, 0], sizes = [8, 16, 4], strides = [1, 1, 1]} : vector<8x18x4xbf16> to vector<8x16x4xbf16>
    %10 = vector.shape_cast %9 : vector<8x16x4xbf16> to vector<128x4xbf16>
    %c1_i32 = arith.constant 1 : i32
    %11 = arith.addi %0, %c1_i32 : i32
    %c0_2 = arith.constant 0 : index
    %12 = arith.index_cast %11 : i32 to index
    %c0_3 = arith.constant 0 : index
    %c0_4 = arith.constant 0 : index
    %13 = vector.load %arg2[%c0_2, %12, %c0_3, %c0_4] : memref<1x18x18x4xbf16, #tpu.memory_space<vmem>>, vector<1x8x18x4xbf16>
    %14 = vector.shape_cast %13 : vector<1x8x18x4xbf16> to vector<8x18x4xbf16>
    %15 = vector.extract_strided_slice %14 {offsets = [0, 0, 0], sizes = [8, 16, 4], strides = [1, 1, 1]} : vector<8x18x4xbf16> to vector<8x16x4xbf16>
    %16 = vector.shape_cast %15 : vector<8x16x4xbf16> to vector<128x4xbf16>
    %17 = vector.extract_strided_slice %14 {offsets = [0, 1, 0], sizes = [8, 16, 4], strides = [1, 1, 1]} : vector<8x18x4xbf16> to vector<8x16x4xbf16>
    %18 = vector.shape_cast %17 : vector<8x16x4xbf16> to vector<128x4xbf16>
    %19 = vector.extract_strided_slice %14 {offsets = [0, 2, 0], sizes = [8, 16, 4], strides = [1, 1, 1]} : vector<8x18x4xbf16> to vector<8x16x4xbf16>
    %20 = vector.shape_cast %19 : vector<8x16x4xbf16> to vector<128x4xbf16>
    %c2_i32 = arith.constant 2 : i32
    %21 = arith.addi %0, %c2_i32 : i32
    %c0_5 = arith.constant 0 : index
    %22 = arith.index_cast %21 : i32 to index
    %c0_6 = arith.constant 0 : index
    %c0_7 = arith.constant 0 : index
    %23 = vector.load %arg2[%c0_5, %22, %c0_6, %c0_7] : memref<1x18x18x4xbf16, #tpu.memory_space<vmem>>, vector<1x8x18x4xbf16>
    %24 = vector.shape_cast %23 : vector<1x8x18x4xbf16> to vector<8x18x4xbf16>
    %25 = vector.extract_strided_slice %24 {offsets = [0, 0, 0], sizes = [8, 16, 4], strides = [1, 1, 1]} : vector<8x18x4xbf16> to vector<8x16x4xbf16>
    %26 = vector.shape_cast %25 : vector<8x16x4xbf16> to vector<128x4xbf16>
    %27 = vector.extract_strided_slice %24 {offsets = [0, 1, 0], sizes = [8, 16, 4], strides = [1, 1, 1]} : vector<8x18x4xbf16> to vector<8x16x4xbf16>
    %28 = vector.shape_cast %27 : vector<8x16x4xbf16> to vector<128x4xbf16>
    %29 = vector.extract_strided_slice %24 {offsets = [0, 2, 0], sizes = [8, 16, 4], strides = [1, 1, 1]} : vector<8x18x4xbf16> to vector<8x16x4xbf16>
    %30 = vector.shape_cast %29 : vector<8x16x4xbf16> to vector<128x4xbf16>
    %31 = tpu.concatenate %6, %8, %10, %16, %18, %20, %26, %28, %30 in 1 : vector<128x4xbf16>, vector<128x4xbf16>, vector<128x4xbf16>, vector<128x4xbf16>, vector<128x4xbf16>, vector<128x4xbf16>, vector<128x4xbf16>, vector<128x4xbf16>, vector<128x4xbf16> -> vector<128x36xbf16>
    %c0_8 = arith.constant 0 : index
    %c0_9 = arith.constant 0 : index
    %32 = vector.load %arg5[%c0_8, %c0_9] : memref<4x8xf32, #tpu.memory_space<vmem>>, vector<4x8xf32>
    %c0_10 = arith.constant 0 : index
    %c0_11 = arith.constant 0 : index
    %c0_12 = arith.constant 0 : index
    %33 = vector.load %arg3[%c0_10, %c0_11, %c0_12] : memref<2x36x8xbf16, #tpu.memory_space<vmem>>, vector<1x36x8xbf16>
    %34 = vector.shape_cast %33 : vector<1x36x8xbf16> to vector<36x8xbf16>
    %cst = arith.constant dense<0.000000e+00> : vector<128x8xf32>
    %35 = tpu.matmul %31, %34, %cst {dimension_numbers = #tpu.dot_dimension_numbers<[1], [0], [0], [1], [0, 0, 1, 1], [], []>} : vector<128x36xbf16>, vector<36x8xbf16>, vector<128x8xf32> -> vector<128x8xf32>
    %c0_13 = arith.constant 0 : index
    %c0_14 = arith.constant 0 : index
    %c0_15 = arith.constant 0 : index
    %36 = vector.load %arg4[%c0_13, %c0_14, %c0_15] : memref<2x36x8xbf16, #tpu.memory_space<vmem>>, vector<1x36x8xbf16>
    %37 = vector.shape_cast %36 : vector<1x36x8xbf16> to vector<36x8xbf16>
    %cst_16 = arith.constant dense<0.000000e+00> : vector<128x8xf32>
    %38 = tpu.matmul %31, %37, %cst_16 {dimension_numbers = #tpu.dot_dimension_numbers<[1], [0], [0], [1], [0, 0, 1, 1], [], []>} : vector<128x36xbf16>, vector<36x8xbf16>, vector<128x8xf32> -> vector<128x8xf32>
    %39 = vector.extract_strided_slice %32 {offsets = [0, 0], sizes = [1, 8], strides = [1, 1]} : vector<4x8xf32> to vector<1x8xf32>
    %40 = vector.broadcast %39 : vector<1x8xf32> to vector<128x8xf32>
    %41 = arith.mulf %35, %40 : vector<128x8xf32>
    %42 = vector.extract_strided_slice %32 {offsets = [1, 0], sizes = [1, 8], strides = [1, 1]} : vector<4x8xf32> to vector<1x8xf32>
    %43 = vector.broadcast %42 : vector<1x8xf32> to vector<128x8xf32>
    %44 = arith.addf %41, %43 : vector<128x8xf32>
    %45 = vector.extract_strided_slice %32 {offsets = [2, 0], sizes = [1, 8], strides = [1, 1]} : vector<4x8xf32> to vector<1x8xf32>
    %46 = vector.broadcast %45 : vector<1x8xf32> to vector<128x8xf32>
    %47 = arith.mulf %38, %46 : vector<128x8xf32>
    %48 = vector.extract_strided_slice %32 {offsets = [3, 0], sizes = [1, 8], strides = [1, 1]} : vector<4x8xf32> to vector<1x8xf32>
    %49 = vector.broadcast %48 : vector<1x8xf32> to vector<128x8xf32>
    %50 = arith.addf %47, %49 : vector<128x8xf32>
    %51 = arith.negf %50 : vector<128x8xf32>
    %52 = math.exp %51 : vector<128x8xf32>
    %cst_17 = arith.constant 1.000000e+00 : f32
    %53 = vector.broadcast %cst_17 : f32 to vector<128x8xf32>
    %54 = arith.addf %53, %52 : vector<128x8xf32>
    %55 = arith.divf %53, %54 : vector<128x8xf32>
    %56 = arith.mulf %44, %55 : vector<128x8xf32>
    %57 = vector.shape_cast %56 : vector<128x8xf32> to vector<8x16x8xf32>
    %58 = vector.extract_strided_slice %57 {offsets = [0, 0, 0], sizes = [8, 1, 8], strides = [1, 1, 1]} : vector<8x16x8xf32> to vector<8x1x8xf32>
    %59 = vector.shape_cast %58 : vector<8x1x8xf32> to vector<8x8xf32>
    %60 = vector.extract_strided_slice %57 {offsets = [0, 1, 0], sizes = [8, 1, 8], strides = [1, 1, 1]} : vector<8x16x8xf32> to vector<8x1x8xf32>
    %61 = vector.shape_cast %60 : vector<8x1x8xf32> to vector<8x8xf32>
    %62 = vector.extract_strided_slice %57 {offsets = [0, 2, 0], sizes = [8, 1, 8], strides = [1, 1, 1]} : vector<8x16x8xf32> to vector<8x1x8xf32>
    %63 = vector.shape_cast %62 : vector<8x1x8xf32> to vector<8x8xf32>
    %64 = vector.extract_strided_slice %57 {offsets = [0, 3, 0], sizes = [8, 1, 8], strides = [1, 1, 1]} : vector<8x16x8xf32> to vector<8x1x8xf32>
    %65 = vector.shape_cast %64 : vector<8x1x8xf32> to vector<8x8xf32>
    %66 = vector.extract_strided_slice %57 {offsets = [0, 4, 0], sizes = [8, 1, 8], strides = [1, 1, 1]} : vector<8x16x8xf32> to vector<8x1x8xf32>
    %67 = vector.shape_cast %66 : vector<8x1x8xf32> to vector<8x8xf32>
    %68 = vector.extract_strided_slice %57 {offsets = [0, 5, 0], sizes = [8, 1, 8], strides = [1, 1, 1]} : vector<8x16x8xf32> to vector<8x1x8xf32>
    %69 = vector.shape_cast %68 : vector<8x1x8xf32> to vector<8x8xf32>
    %70 = vector.extract_strided_slice %57 {offsets = [0, 6, 0], sizes = [8, 1, 8], strides = [1, 1, 1]} : vector<8x16x8xf32> to vector<8x1x8xf32>
    %71 = vector.shape_cast %70 : vector<8x1x8xf32> to vector<8x8xf32>
    %72 = vector.extract_strided_slice %57 {offsets = [0, 7, 0], sizes = [8, 1, 8], strides = [1, 1, 1]} : vector<8x16x8xf32> to vector<8x1x8xf32>
    %73 = vector.shape_cast %72 : vector<8x1x8xf32> to vector<8x8xf32>
    %74 = vector.extract_strided_slice %57 {offsets = [0, 8, 0], sizes = [8, 1, 8], strides = [1, 1, 1]} : vector<8x16x8xf32> to vector<8x1x8xf32>
    %75 = vector.shape_cast %74 : vector<8x1x8xf32> to vector<8x8xf32>
    %76 = vector.extract_strided_slice %57 {offsets = [0, 9, 0], sizes = [8, 1, 8], strides = [1, 1, 1]} : vector<8x16x8xf32> to vector<8x1x8xf32>
    %77 = vector.shape_cast %76 : vector<8x1x8xf32> to vector<8x8xf32>
    %78 = vector.extract_strided_slice %57 {offsets = [0, 10, 0], sizes = [8, 1, 8], strides = [1, 1, 1]} : vector<8x16x8xf32> to vector<8x1x8xf32>
    %79 = vector.shape_cast %78 : vector<8x1x8xf32> to vector<8x8xf32>
    %80 = vector.extract_strided_slice %57 {offsets = [0, 11, 0], sizes = [8, 1, 8], strides = [1, 1, 1]} : vector<8x16x8xf32> to vector<8x1x8xf32>
    %81 = vector.shape_cast %80 : vector<8x1x8xf32> to vector<8x8xf32>
    %82 = vector.extract_strided_slice %57 {offsets = [0, 12, 0], sizes = [8, 1, 8], strides = [1, 1, 1]} : vector<8x16x8xf32> to vector<8x1x8xf32>
    %83 = vector.shape_cast %82 : vector<8x1x8xf32> to vector<8x8xf32>
    %84 = vector.extract_strided_slice %57 {offsets = [0, 13, 0], sizes = [8, 1, 8], strides = [1, 1, 1]} : vector<8x16x8xf32> to vector<8x1x8xf32>
    %85 = vector.shape_cast %84 : vector<8x1x8xf32> to vector<8x8xf32>
    %86 = vector.extract_strided_slice %57 {offsets = [0, 14, 0], sizes = [8, 1, 8], strides = [1, 1, 1]} : vector<8x16x8xf32> to vector<8x1x8xf32>
    %87 = vector.shape_cast %86 : vector<8x1x8xf32> to vector<8x8xf32>
    %88 = vector.extract_strided_slice %57 {offsets = [0, 15, 0], sizes = [8, 1, 8], strides = [1, 1, 1]} : vector<8x16x8xf32> to vector<8x1x8xf32>
    %89 = vector.shape_cast %88 : vector<8x1x8xf32> to vector<8x8xf32>
    %90 = tpu.concatenate %59, %61, %63, %65, %67, %69, %71, %73, %75, %77, %79, %81, %83, %85, %87, %89 in 1 : vector<8x8xf32>, vector<8x8xf32>, vector<8x8xf32>, vector<8x8xf32>, vector<8x8xf32>, vector<8x8xf32>, vector<8x8xf32>, vector<8x8xf32>, vector<8x8xf32>, vector<8x8xf32>, vector<8x8xf32>, vector<8x8xf32>, vector<8x8xf32>, vector<8x8xf32>, vector<8x8xf32>, vector<8x8xf32> -> vector<8x128xf32>
    %c0_18 = arith.constant 0 : index
    %c0_19 = arith.constant 0 : index
    %c0_20 = arith.constant 0 : index
    %c0_21 = arith.constant 0 : index
    %91 = vector.load %arg6[%c0_18, %c0_19, %c0_20, %c0_21] : memref<1x2x8x128xf32, #tpu.memory_space<vmem>>, vector<1x1x8x128xf32>
    %92 = vector.shape_cast %91 : vector<1x1x8x128xf32> to vector<8x128xf32>
    %93 = vector.shape_cast %90 : vector<8x128xf32> to vector<1x1x8x128xf32>
    tpu.vector_store %arg6[%c0_18, %c0_19, %c0_20, %c0_21], %93 {strides = array<i32>} : memref<1x2x8x128xf32, #tpu.memory_space<vmem>>, vector<1x1x8x128xf32>,
    %c1 = arith.constant 1 : index
    %c0_22 = arith.constant 0 : index
    %c0_23 = arith.constant 0 : index
    %94 = vector.load %arg3[%c1, %c0_22, %c0_23] : memref<2x36x8xbf16, #tpu.memory_space<vmem>>, vector<1x36x8xbf16>
    %95 = vector.shape_cast %94 : vector<1x36x8xbf16> to vector<36x8xbf16>
    %cst_24 = arith.constant dense<0.000000e+00> : vector<128x8xf32>
    %96 = tpu.matmul %31, %95, %cst_24 {dimension_numbers = #tpu.dot_dimension_numbers<[1], [0], [0], [1], [0, 0, 1, 1], [], []>} : vector<128x36xbf16>, vector<36x8xbf16>, vector<128x8xf32> -> vector<128x8xf32>
    %c1_25 = arith.constant 1 : index
    %c0_26 = arith.constant 0 : index
    %c0_27 = arith.constant 0 : index
    %97 = vector.load %arg4[%c1_25, %c0_26, %c0_27] : memref<2x36x8xbf16, #tpu.memory_space<vmem>>, vector<1x36x8xbf16>
    %98 = vector.shape_cast %97 : vector<1x36x8xbf16> to vector<36x8xbf16>
    %cst_28 = arith.constant dense<0.000000e+00> : vector<128x8xf32>
    %99 = tpu.matmul %31, %98, %cst_28 {dimension_numbers = #tpu.dot_dimension_numbers<[1], [0], [0], [1], [0, 0, 1, 1], [], []>} : vector<128x36xbf16>, vector<36x8xbf16>, vector<128x8xf32> -> vector<128x8xf32>
    %100 = vector.extract_strided_slice %32 {offsets = [0, 0], sizes = [1, 8], strides = [1, 1]} : vector<4x8xf32> to vector<1x8xf32>
    %101 = vector.broadcast %100 : vector<1x8xf32> to vector<128x8xf32>
    %102 = arith.mulf %96, %101 : vector<128x8xf32>
    %103 = vector.extract_strided_slice %32 {offsets = [1, 0], sizes = [1, 8], strides = [1, 1]} : vector<4x8xf32> to vector<1x8xf32>
    %104 = vector.broadcast %103 : vector<1x8xf32> to vector<128x8xf32>
    %105 = arith.addf %102, %104 : vector<128x8xf32>
    %106 = vector.extract_strided_slice %32 {offsets = [2, 0], sizes = [1, 8], strides = [1, 1]} : vector<4x8xf32> to vector<1x8xf32>
    %107 = vector.broadcast %106 : vector<1x8xf32> to vector<128x8xf32>
    %108 = arith.mulf %99, %107 : vector<128x8xf32>
    %109 = vector.extract_strided_slice %32 {offsets = [3, 0], sizes = [1, 8], strides = [1, 1]} : vector<4x8xf32> to vector<1x8xf32>
    %110 = vector.broadcast %109 : vector<1x8xf32> to vector<128x8xf32>
    %111 = arith.addf %108, %110 : vector<128x8xf32>
    %112 = arith.negf %111 : vector<128x8xf32>
    %113 = math.exp %112 : vector<128x8xf32>
    %cst_29 = arith.constant 1.000000e+00 : f32
    %114 = vector.broadcast %cst_29 : f32 to vector<128x8xf32>
    %115 = arith.addf %114, %113 : vector<128x8xf32>
    %116 = arith.divf %114, %115 : vector<128x8xf32>
    %117 = arith.mulf %105, %116 : vector<128x8xf32>
    %118 = vector.shape_cast %117 : vector<128x8xf32> to vector<8x16x8xf32>
    %119 = vector.extract_strided_slice %118 {offsets = [0, 0, 0], sizes = [8, 1, 8], strides = [1, 1, 1]} : vector<8x16x8xf32> to vector<8x1x8xf32>
    %120 = vector.shape_cast %119 : vector<8x1x8xf32> to vector<8x8xf32>
    %121 = vector.extract_strided_slice %118 {offsets = [0, 1, 0], sizes = [8, 1, 8], strides = [1, 1, 1]} : vector<8x16x8xf32> to vector<8x1x8xf32>
    %122 = vector.shape_cast %121 : vector<8x1x8xf32> to vector<8x8xf32>
    %123 = vector.extract_strided_slice %118 {offsets = [0, 2, 0], sizes = [8, 1, 8], strides = [1, 1, 1]} : vector<8x16x8xf32> to vector<8x1x8xf32>
    %124 = vector.shape_cast %123 : vector<8x1x8xf32> to vector<8x8xf32>
    %125 = vector.extract_strided_slice %118 {offsets = [0, 3, 0], sizes = [8, 1, 8], strides = [1, 1, 1]} : vector<8x16x8xf32> to vector<8x1x8xf32>
    %126 = vector.shape_cast %125 : vector<8x1x8xf32> to vector<8x8xf32>
    %127 = vector.extract_strided_slice %118 {offsets = [0, 4, 0], sizes = [8, 1, 8], strides = [1, 1, 1]} : vector<8x16x8xf32> to vector<8x1x8xf32>
    %128 = vector.shape_cast %127 : vector<8x1x8xf32> to vector<8x8xf32>
    %129 = vector.extract_strided_slice %118 {offsets = [0, 5, 0], sizes = [8, 1, 8], strides = [1, 1, 1]} : vector<8x16x8xf32> to vector<8x1x8xf32>
    %130 = vector.shape_cast %129 : vector<8x1x8xf32> to vector<8x8xf32>
    %131 = vector.extract_strided_slice %118 {offsets = [0, 6, 0], sizes = [8, 1, 8], strides = [1, 1, 1]} : vector<8x16x8xf32> to vector<8x1x8xf32>
    %132 = vector.shape_cast %131 : vector<8x1x8xf32> to vector<8x8xf32>
    %133 = vector.extract_strided_slice %118 {offsets = [0, 7, 0], sizes = [8, 1, 8], strides = [1, 1, 1]} : vector<8x16x8xf32> to vector<8x1x8xf32>
    %134 = vector.shape_cast %133 : vector<8x1x8xf32> to vector<8x8xf32>
    %135 = vector.extract_strided_slice %118 {offsets = [0, 8, 0], sizes = [8, 1, 8], strides = [1, 1, 1]} : vector<8x16x8xf32> to vector<8x1x8xf32>
    %136 = vector.shape_cast %135 : vector<8x1x8xf32> to vector<8x8xf32>
    %137 = vector.extract_strided_slice %118 {offsets = [0, 9, 0], sizes = [8, 1, 8], strides = [1, 1, 1]} : vector<8x16x8xf32> to vector<8x1x8xf32>
    %138 = vector.shape_cast %137 : vector<8x1x8xf32> to vector<8x8xf32>
    %139 = vector.extract_strided_slice %118 {offsets = [0, 10, 0], sizes = [8, 1, 8], strides = [1, 1, 1]} : vector<8x16x8xf32> to vector<8x1x8xf32>
    %140 = vector.shape_cast %139 : vector<8x1x8xf32> to vector<8x8xf32>
    %141 = vector.extract_strided_slice %118 {offsets = [0, 11, 0], sizes = [8, 1, 8], strides = [1, 1, 1]} : vector<8x16x8xf32> to vector<8x1x8xf32>
    %142 = vector.shape_cast %141 : vector<8x1x8xf32> to vector<8x8xf32>
    %143 = vector.extract_strided_slice %118 {offsets = [0, 12, 0], sizes = [8, 1, 8], strides = [1, 1, 1]} : vector<8x16x8xf32> to vector<8x1x8xf32>
    %144 = vector.shape_cast %143 : vector<8x1x8xf32> to vector<8x8xf32>
    %145 = vector.extract_strided_slice %118 {offsets = [0, 13, 0], sizes = [8, 1, 8], strides = [1, 1, 1]} : vector<8x16x8xf32> to vector<8x1x8xf32>
    %146 = vector.shape_cast %145 : vector<8x1x8xf32> to vector<8x8xf32>
    %147 = vector.extract_strided_slice %118 {offsets = [0, 14, 0], sizes = [8, 1, 8], strides = [1, 1, 1]} : vector<8x16x8xf32> to vector<8x1x8xf32>
    %148 = vector.shape_cast %147 : vector<8x1x8xf32> to vector<8x8xf32>
    %149 = vector.extract_strided_slice %118 {offsets = [0, 15, 0], sizes = [8, 1, 8], strides = [1, 1, 1]} : vector<8x16x8xf32> to vector<8x1x8xf32>
    %150 = vector.shape_cast %149 : vector<8x1x8xf32> to vector<8x8xf32>
    %151 = tpu.concatenate %120, %122, %124, %126, %128, %130, %132, %134, %136, %138, %140, %142, %144, %146, %148, %150 in 1 : vector<8x8xf32>, vector<8x8xf32>, vector<8x8xf32>, vector<8x8xf32>, vector<8x8xf32>, vector<8x8xf32>, vector<8x8xf32>, vector<8x8xf32>, vector<8x8xf32>, vector<8x8xf32>, vector<8x8xf32>, vector<8x8xf32>, vector<8x8xf32>, vector<8x8xf32>, vector<8x8xf32>, vector<8x8xf32> -> vector<8x128xf32>
    %c0_30 = arith.constant 0 : index
    %c1_31 = arith.constant 1 : index
    %c0_32 = arith.constant 0 : index
    %c0_33 = arith.constant 0 : index
    %152 = vector.load %arg6[%c0_30, %c1_31, %c0_32, %c0_33] : memref<1x2x8x128xf32, #tpu.memory_space<vmem>>, vector<1x1x8x128xf32>
    %153 = vector.shape_cast %152 : vector<1x1x8x128xf32> to vector<8x128xf32>
    %154 = vector.shape_cast %151 : vector<8x128xf32> to vector<1x1x8x128xf32>
    tpu.vector_store %arg6[%c0_30, %c1_31, %c0_32, %c0_33], %154 {strides = array<i32>} : memref<1x2x8x128xf32, #tpu.memory_space<vmem>>, vector<1x1x8x128xf32>,
    return
  }
  func.func @transform_0(%arg0: i32, %arg1: i32) -> (i32, i32, i32, i32) {
    %c0_i32 = arith.constant 0 : i32
    %c0_i32_0 = arith.constant 0 : i32
    %c0_i32_1 = arith.constant 0 : i32
    %c0_i32_2 = arith.constant 0 : i32
    return %arg0, %c0_i32, %c0_i32_0, %c0_i32_1 : i32, i32, i32, i32
  }
  func.func @transform_1(%arg0: i32, %arg1: i32) -> (i32, i32, i32) {
    %c0_i32 = arith.constant 0 : i32
    %c0_i32_0 = arith.constant 0 : i32
    %c0_i32_1 = arith.constant 0 : i32
    %c0_i32_2 = arith.constant 0 : i32
    return %c0_i32, %c0_i32_0, %c0_i32_1 : i32, i32, i32
  }
  func.func @transform_2(%arg0: i32, %arg1: i32) -> (i32, i32, i32) {
    %c0_i32 = arith.constant 0 : i32
    %c0_i32_0 = arith.constant 0 : i32
    %c0_i32_1 = arith.constant 0 : i32
    %c0_i32_2 = arith.constant 0 : i32
    return %c0_i32, %c0_i32_0, %c0_i32_1 : i32, i32, i32
  }
  func.func @transform_3(%arg0: i32, %arg1: i32) -> (i32, i32) {
    %c0_i32 = arith.constant 0 : i32
    %c0_i32_0 = arith.constant 0 : i32
    %c0_i32_1 = arith.constant 0 : i32
    return %c0_i32, %c0_i32_0 : i32, i32
  }
  func.func @transform_4(%arg0: i32, %arg1: i32) -> (i32, i32, i32, i32) {
    %c0_i32 = arith.constant 0 : i32
    %c0_i32_0 = arith.constant 0 : i32
    %c0_i32_1 = arith.constant 0 : i32
    return %arg0, %c0_i32, %arg1, %c0_i32_0 : i32, i32, i32, i32
  }
}

</mosaic_0001>

<bundles_post_ra>
// kernel: tile.27
= control target key start
LH: loop header
LB: loop body
LE: loop exit
PB: predicated region body
PF: predicated region fallthrough
CT: control target
= control target key end

     0   :  { %s22_s0 = inlined_call_operand.vmem [shape: f32[4], index: 0, kind: input, shape index: {}]   ;;  %s23_s1 = inlined_call_operand.vmem [shape: f32[2,4], index: 1, kind: output, shape index: {}]  }
   0x1   :  { %v4_v0 = vld [vmem:[%s22_s0] ss:$0 sm:$0xff] }
   0x2   :  { %5 = vst [vmem:[%s23_s1] sm:$0x3] %v4_v0 }

// kernel: tile.37
= control target key start
LH: loop header
LB: loop body
LE: loop exit
PB: predicated region body
PF: predicated region fallthrough
CT: control target
= control target key end

     0   :  { %vm7_vm0 = vcmask 31744   ;;  %vm13_vm1 = vcmask 64544   ;;  %s39_s0 = inlined_call_operand.vmem [shape: f32[2,4], index: 0, kind: input, shape index: {}]   ;;  %s40_s1 = inlined_call_operand.vmem [shape: f32[1,8], index: 1, kind: output, shape index: {}]  }
   0x1   :  { %v4_v0 = vld [vmem:[%s39_s0] sm:$0x3]  ;;  %s22_s0 = smov 4  }
   0x2   :  { %5 = vst [vmem:[#allocation1] sm:$0x3] %v4_v0 }
   0x9   :  { %v10_v1 = vld [vmem:[#allocation1 + $0x1] sm:$0x1]   ;;  %v6_v2 = vld [vmem:[#allocation1] sm:$0x1]  }
   0xa   :  { %11 = vrot.lane.b32.xlu0 %v10_v1, %s22_s0  ;;  %8 = vst.msk [vmem:[#allocation0] sm:$0x1] %vm7_vm0, %v6_v2  }
  0x7c   :  { %v12_v3 = vpop.permute.xlu0 %11  }
  0x7d   :  { %14 = vst.msk [vmem:[#allocation0] sm:$0x1] %vm13_vm1, %v12_v3  }
  0x84   :  { %v18_v4 = vld [vmem:[#allocation0] sm:$0x1] }
  0x85   :  { %20 = vst [vmem:[%s40_s1] sm:$0x1] %v18_v4 }

// kernel: upsampling_forward.2
= control target key start
LH: loop header
LB: loop body
LE: loop exit
PB: predicated region body
PF: predicated region fallthrough
CT: control target
= control target key end

     0   :  { %s3076_s12 = smov 0   ;;  %s3078_s13 = smov 0   ;;  %s4124_s0 = inlined_call_operand.vmem [shape: bf16[2,18,18,4], index: 0, kind: input, shape index: {}]   ;;  %s4125_s1 = inlined_call_operand.vmem [shape: bf16[2,36,8], index: 1, kind: input, shape index: {}]   ;;  %s4126_s2 = inlined_call_operand.vmem [shape: bf16[2,36,8], index: 2, kind: input, shape index: {}]   ;;  %s4127_s3 = inlined_call_operand.vmem [shape: f32[2,2,2,16], index: 3, kind: output, shape index: {}]  }
   0x1   :  { %s3080_s14 = smov 0   ;;  %s3082_s15 = smov 0  }
   0x2   :  { %s3084_s16 = smov 0  }
   0x3 LB: > { %s22_s17 = sadd.s32 1, %s3038_s14  ;;  %s25_s18 = sadd.s32 1, %s3042_s15  ;;  %s3046_s16 = sphi %s3084_s16, %s13_s16   ;;  %s3042_s15 = sphi %s3082_s15, %s4135_s15   ;;  %s3038_s14 = sphi %s3080_s14, %s4134_s14   ;;  %s3034_s13 = sphi %s3078_s13, %s4133_s13   ;;  %s3030_s12 = sphi %s3076_s12, %s4132_s12  }
   0x4   : > { %p23_p0 = scmp.ge.s32.totalorder %s22_s17, 2  ;;  %p2565_p1 = scmp.ge.s32.totalorder %s3046_s16, 1 }
   0x5   : > { %p151_p2 = scmp.lt.s32.totalorder %s3046_s16, 5 }
   0x6   : > { %s4137_s17 = smov (%p23_p0, %s22_s17), 0  ;;  %s4139_s18 = smov (!%p23_p0, %s25_s18), %s3042_s15 }
   0x7   : > { %p152_p3 = pnand %p2565_p1, %p151_p2  ;;  %p27_p4 = scmp.ge.s32.totalorder %s4139_s18, 2 }
   0x8   : > { %p178_p5 = scmp.lt.s32.totalorder (!%p152_p3), %s3034_s13, 1  ;;  %s2776_s19 = smul.u32 (!%p152_p3), 96, %s3030_s12  ;;  %vm439_vm0 = vcmask (!%p152_p3), 1042432   ;;  %vm440_vm1 = vcmask (!%p152_p3), 1046532   ;;  %vm220_vm3 = vsmask.f32 (!%p152_p3), 3328 }
   0x9   : > { %s4141_s18 = smov (%p27_p4, %s4139_s18), 0  ;;  %155 = sbr.rel (%p152_p3) target bundleno = 696 (0x2b8), region = 32 }
   0xa   : > { %s3048_s25 = smov (!%p152_p3), 12   ;;  %vm3174_vm2 = vmor (!%p152_p3), %vm439_vm0, %vm440_vm1  ;;  %vm221_vm4 = vsmask.f32 (!%p152_p3), 7440  ;;  %s3049_s26 = smov (!%p152_p3), 24   ;;  %vm1442_vm6 = vcmask (!%p152_p3), 31744   ;;  %vm1467_vm7 = vcmask (!%p152_p3), 64512  }
   0xb   : > { %s3050_s27 = smov (!%p152_p3), 20   ;;  %s3051_s28 = smov (!%p152_p3), 8   ;;  %vm3214_vm5 = vmor (!%p152_p3), %vm220_vm3, %vm221_vm4  ;;  %vm1484_vm8 = vcmask (!%p152_p3), 97280   ;;  %vm1501_vm9 = vcmask (!%p152_p3), 130048   ;;  %vm1518_vm10 = vcmask (!%p152_p3), 162816   ;;  %vm1535_vm11 = vcmask (!%p152_p3), 195584  }
   0xc   : > { %s3052_s29 = smov (!%p152_p3), 4   ;;  %s3053_s5 = smov (!%p152_p3), 16   ;;  %vm1623_vm12 = vcmask (!%p152_p3), 1041408   ;;  %vm1552_vm13 = vcmask (!%p152_p3), 228352   ;;  %vm1569_vm14 = vcmask (!%p152_p3), 261120   ;;  %vm1606_vm15 = vcmask (!%p152_p3), 293888  }
   0xd   : > { %s3054_s10 = smov (!%p152_p3), 28   ;;  %p185_p6 = scmp.lt.s32.totalorder (!%p152_p3), %s3030_s12, 1  ;;  %vm2467_vm0 = vcmask (!%p152_p3), 1040384   ;;  %vm2469_vm1 = vcmask (!%p152_p3), 123904  }
  0x10   : > { %s4143_s13 = smov (!%p178_p5, %s3034_s13), 1  ;;  %s4145_s12 = smov (!%p185_p6, %s3030_s12), 1 }
  0x11   : > { %s2913_s20 = smul.u32 216, %s4143_s13 }
  0x13   : > { %s182_s23 = scalar_lea.vmem %s4124_s0, %s2913_s20  ;;  %s3055_s20 = smov 32  }
  0x14   : > { %s3115_s24 = scalar_lea.vmem %s182_s23, %s2776_s19 }
  0x15   : > { %v3118_v0 = vld [vmem:[%s3115_s24 + $0x18] sm:$0xf]  ;;  %v3121_v1 = vld [vmem:[%s3115_s24 + $0x1c] sm:$0xf]  ;;  %v2582_v2 = vld [vmem:[%s3115_s24 + $0xc] sm:$0xf] }
  0x16   : > { %v560_v3 = vshll.u32 %v3121_v1, 16  ;;  %v564_v4 = vshrl.u32 %v3121_v1, 16  ;;  %v2673_v5 = vcombine.low %v3118_v0, %v3121_v1  ;;  %v551_v6 = vshrl.u32 %v3118_v0, 16  ;;  %v3130_v7 = vld [vmem:[%s3115_s24 + $0x10] sm:$0xf] }
  0x17   : > { %v554_v8 = vshll.u32 %v3118_v0, 16  ;;  %v536_v9 = vshll.u32 %v3130_v7, 16  ;;  %v540_v10 = vshrl.u32 %v3130_v7, 16  ;;  %v2672_v11 = vcombine.low %v2582_v2, %v3130_v7  ;;  %v3137_v12 = vld [vmem:[%s3115_s24 + $0x24] sm:$0xf] }
  0x18   : > { %v3139_v13 = vrot.slane %v564_v4, 4  ;;  %1228 = vrot.lane.b32.xlu1 %v2673_v5, %s3048_s25  ;;  %v3142_v14 = vrot.slane %v551_v6, 4  ;;  %v527_v15 = vshrl.u32 %v2582_v2, 16  ;;  %v530_v16 = vshll.u32 %v2582_v2, 16  ;;  %v3145_v17 = vld [vmem:[%s3115_s24 + $0x28] sm:$0xf] }
  0x19   : > { %v3147_v18 = vrot.slane %v554_v8, 5  ;;  %v3149_v19 = vrot.slane %v540_v10, 4  ;;  %1226 = vrot.lane.b32.xlu0 %v2672_v11, %s3048_s25  ;;  %v851_v20 = vshrl.u32 %v3137_v12, 16  ;;  %v854_v21 = vshll.u32 %v3137_v12, 16  ;;  %v3155_v22 = vld [vmem:[%s3115_s24 + $0x18] sm:$0xf] }
  0x1a   : > { %v3157_v23 = vrot.slane %v527_v15, 4  ;;  %v3159_v24 = vrot.slane %v530_v16, 5  ;;  %v864_v25 = vshrl.u32 %v3145_v17, 16  ;;  %v2697_v26 = vcombine.low %v3137_v12, %v3145_v17  ;;  %v3165_v27 = vld [vmem:[%s3115_s24 + $0x1c] sm:$0xf] }
  0x1b   : > { %v827_v28 = vshrl.u32 %v3155_v22, 16  ;;  %v830_v29 = vshll.u32 %v3155_v22, 16  ;;  %v840_v30 = vshrl.u32 %v3165_v27, 16  ;;  %v2696_v31 = vcombine.low %v3155_v22, %v3165_v27  ;;  %v3179_v33 = vld [vmem:[%s3115_s24 + $0x14] sm:$0x1] }
  0x1c   : > { %1348 = vrot.lane.b32.xlu1 %v2697_v26, %s3049_s26  ;;  %v2606_v34 = vrot.slane %v2582_v2, 9  ;;  %v744_v35 = vrot.slane %v3130_v7, 5  ;;  %v747_v36 = vrot.slane %v3179_v33, 5  ;;  %v196_v37 = vld [vmem:[%s3115_s24] sm:$0xf]  ;;  %v2607_v38 = vrot.slane %v3118_v0, 9 }
  0x1d   : > { %1346 = vrot.lane.b32.xlu0 %v2696_v31, %s3049_s26  ;;  %v197_v39 = vld [vmem:[%s3115_s24 + $0x4] sm:$0xf]  ;;  %v198_v40 = vld [vmem:[%s3115_s24 + $0x8] sm:$0x1]  ;;  %v2572_v41 = vrot.slane %v196_v37, 9  ;;  %v224_v42 = vshrl.u32 %v196_v37, 16  ;;  %v557_v52 = vor.u32 %v3147_v18, %v3142_v14  ;;  %v533_v53 = vor.u32 %v3159_v24, %v3157_v23 }
  0x1e   : > { %v745_v43 = vsel %vm3174_vm2, %v2606_v34, %v744_v35  ;;  %v746_v44 = vrot.slane %v744_v35, 4  ;;  %v444_v45 = vrot.slane %v197_v39, 5  ;;  %v447_v46 = vrot.slane %v198_v40, 5  ;;  %v199_v47 = vld [vmem:[%s3115_s24 + $0xc] sm:$0xf] }
  0x1f   : > { %v200_v48 = vld [vmem:[%s3115_s24 + $0x10] sm:$0xf]  ;;  %v201_v49 = vld [vmem:[%s3115_s24 + $0x14] sm:$0x1]  ;;  %v2573_v50 = vrot.slane %v199_v47, 9  ;;  %v226_v51 = vrot.slane %v224_v42, 4 }
  0x20   : > { %v748_v54 = vsel %vm3174_vm2, %v746_v44, %v747_v36  ;;  %v445_v55 = vsel %vm3174_vm2, %v2572_v41, %v444_v45  ;;  %v446_v56 = vrot.slane %v444_v45, 4  ;;  %v451_v57 = vrot.slane %v200_v48, 5  ;;  %v2587_v62 = vld [vmem:[%s3115_s24 + $0x20] sm:$0x1] }
  0x21   : > { %v2688_v58 = vcombine.low %v745_v43, %v748_v54  ;;  %v454_v59 = vrot.slane %v201_v49, 5  ;;  %v227_v60 = vshll.u32 %v196_v37, 16  ;;  %v233_v61 = vshll.u32 %v197_v39, 16 }
  0x22   : > { %v448_v63 = vsel %vm3174_vm2, %v446_v56, %v447_v46  ;;  %v452_v0 = vsel %vm3174_vm2, %v2573_v50, %v451_v57  ;;  %v453_v2 = vrot.slane %v451_v57, 4  ;;  %v237_v4 = vshrl.u32 %v197_v39, 16 }
  0x23   : > { %1306 = vrot.lane.b32.xlu0 %v2688_v58, %s3050_s27  ;;  %v2664_v5 = vcombine.low %v445_v55, %v448_v63  ;;  %v229_v6 = vrot.slane %v227_v60, 5  ;;  %v235_v8 = vrot.slane %v233_v61, 5  ;;  %v243_v10 = vshll.u32 %v198_v40, 16 }
  0x24   : > { %v455_v11 = vsel %vm3174_vm2, %v453_v2, %v454_v59  ;;  %v239_v14 = vrot.slane %v237_v4, 4  ;;  %v751_v15 = vrot.slane %v3121_v1, 5  ;;  %v754_v16 = vrot.slane %v2587_v62, 5 }
  0x25   : > { %1186 = vrot.lane.b32.xlu1 %v2664_v5, %s3051_s28  ;;  %v2665_v18 = vcombine.low %v452_v0, %v455_v11  ;;  %v230_v23 = vor.u32 %v229_v6, %v226_v51  ;;  %v245_v24 = vrot.slane %v243_v10, 5  ;;  %v248_v26 = vshrl.u32 %v199_v47, 16 }
  0x26   : > { %v240_v34 = vor.u32 %v239_v14, %v235_v8  ;;  %v752_v35 = vsel %vm3174_vm2, %v2607_v38, %v751_v15  ;;  %v753_v36 = vrot.slane %v751_v15, 4  ;;  %v251_v37 = vshll.u32 %v199_v47, 16 }
  0x27   : > { %v231_v39 = vrot.slane %v230_v23, 4  ;;  %v250_v40 = vrot.slane %v248_v26, 4  ;;  %v257_v41 = vshll.u32 %v200_v48, 16  ;;  %v261_v42 = vshrl.u32 %v200_v48, 16  ;;  %v3268_v26 = vld [vmem:[%s3115_s24 + $0x18] sm:$0xf] }
  0x28   : > { %v241_v43 = vrot.slane %v240_v34, 4  ;;  %v755_v44 = vsel %vm3174_vm2, %v753_v36, %v754_v16  ;;  %v253_v45 = vrot.slane %v251_v37, 5  ;;  %v267_v46 = vshll.u32 %v201_v49, 16 }
  0x29   : > { %1188 = vrot.lane.b32.xlu1 %v2665_v18, %s3051_s28  ;;  %v236_v50 = vsel %vm3214_vm5, %v231_v39, %v235_v8  ;;  %v2689_v51 = vcombine.low %v752_v35, %v755_v44  ;;  %v259_v54 = vrot.slane %v257_v41, 5  ;;  %v263_v38 = vrot.slane %v261_v42, 4  ;;  %v3258_v18 = vld [vmem:[%s3115_s24 + $0x20] sm:$0x1]  ;;  %v3272_v39 = vld [vmem:[%s3115_s24 + $0x1c] sm:$0xf] }
  0x2a   : > { %v246_v47 = vsel %vm3214_vm5, %v241_v43, %v245_v24  ;;  %v254_v55 = vor.u32 %v253_v45, %v250_v40  ;;  %v269_v56 = vrot.slane %v267_v46, 5  ;;  %v558_v48 = vrot.slane %v557_v52, 4  ;;  %v3284_v45 = vld [vmem:[%s3115_s24 + $0x20] sm:$0x1] }
  0x2b   : > { %v2656_v57 = vcombine.low %v236_v50, %v246_v47  ;;  %v264_v58 = vor.u32 %v263_v38, %v259_v54  ;;  %v562_v59 = vrot.slane %v560_v3, 5  ;;  %v570_v49 = vshll.u32 %v2587_v62, 16  ;;  %v3243_v62 = vld [vmem:[%s3115_s24 + $0x2c] sm:$0x1] }
  0x2c   : > { %v255_v60 = vrot.slane %v254_v55, 4  ;;  %v534_v61 = vrot.slane %v533_v53, 4  ;;  %v538_v63 = vrot.slane %v536_v9, 5  ;;  %v546_v0 = vshll.u32 %v3179_v33, 16 }
  0x2d   : > { %1146 = vrot.lane.b32.xlu0 %v2656_v57, %s3052_s29  ;;  %1308 = vrot.lane.b32.xlu1 %v2689_v51, %s3050_s27  ;;  %v265_v52 = vrot.slane %v264_v58, 4  ;;  %v563_v2 = vsel %vm3214_vm5, %v558_v48, %v562_v59  ;;  %v567_v1 = vor.u32 %v3139_v13, %v562_v59  ;;  %v572_v3 = vrot.slane %v570_v49, 5  ;;  %v2981_v51 = vld [vmem:[%s4125_s1 + $0x14] sm:$0xff]   ;;  %v2982_v58 = vld [vmem:[%s4125_s1 + $0x8] sm:$0xff]  }
  0x2e   : > { %v260_v53 = vsel %vm3214_vm5, %v255_v60, %v259_v54  ;;  %v539_v7 = vsel %vm3214_vm5, %v534_v61, %v538_v63  ;;  %v543_v9 = vor.u32 %v3149_v19, %v538_v63  ;;  %v548_v33 = vrot.slane %v546_v0, 5  ;;  %2843 = vmatprep.subr.bf16.mxu1 %v2981_v51  ;;  %v205_v63 = vld [vmem:[%s3115_s24 + $0x24] sm:$0xf] }
  0x2f   : > { %v270_v4 = vsel %vm3214_vm5, %v265_v52, %v269_v56  ;;  %v568_v5 = vrot.slane %v567_v1, 4  ;;  %v853_v13 = vrot.slane %v851_v20, 4  ;;  %v856_v6 = vrot.slane %v854_v21, 5  ;;  %2844 = vmatpush3.bf16.msra.mxu1 %v2981_v51 }
  0x30   : > { %v2657_v8 = vcombine.low %v260_v53, %v270_v4  ;;  %v544_v10 = vrot.slane %v543_v9, 4  ;;  %v860_v11 = vshll.u32 %v3145_v17, 16  ;;  %v866_v19 = vrot.slane %v864_v25, 4 }
  0x31   : > { %v573_v14 = vsel %vm3214_vm5, %v568_v5, %v572_v3  ;;  %v857_v15 = vor.u32 %v856_v6, %v853_v13  ;;  %v870_v16 = vshll.u32 %v3243_v62, 16  ;;  %v829_v20 = vrot.slane %v827_v28, 4  ;;  %v2980_v28 = vld [vmem:[%s4125_s1] sm:$0xff]   ;;  %v207_v6 = vld [vmem:[%s3115_s24 + $0x2c] sm:$0x1] }
  0x32   : > { %1148 = vrot.lane.b32.xlu0 %v2657_v8, %s3052_s29  ;;  %v2681_v21 = vcombine.low %v563_v2, %v573_v14  ;;  %v549_v23 = vsel %vm3214_vm5, %v544_v10, %v548_v33  ;;  %v862_v24 = vrot.slane %v860_v11, 5  ;;  %v832_v25 = vrot.slane %v830_v29, 5  ;;  %2821 = vmatprep.subr.bf16.mxu0 %v2980_v28  ;;  %v206_v33 = vld [vmem:[%s3115_s24 + $0x28] sm:$0xf] }
  0x33   : > { %v2680_v34 = vcombine.low %v539_v7, %v549_v23  ;;  %v858_v35 = vrot.slane %v857_v15, 4  ;;  %v872_v36 = vrot.slane %v870_v16, 5  ;;  %v836_v37 = vshll.u32 %v3165_v27, 16  ;;  %2822 = vmatpush3.bf16.msra.mxu0 %v2980_v28 }
  0x34   : > { %1268 = vrot.lane.b32.xlu1 %v2681_v21, %s3053_s5  ;;  %v867_v40 = vor.u32 %v866_v19, %v862_v24  ;;  %v833_v41 = vor.u32 %v832_v25, %v829_v20  ;;  %v842_v29 = vrot.slane %v840_v30, 4  ;;  %v846_v42 = vshll.u32 %v3258_v18, 16  ;;  %2823 = vmatprep.subr.bf16.mxu0 %v2982_v58 }
  0x35   : > { %v863_v43 = vsel %vm3214_vm5, %v858_v35, %v862_v24  ;;  %v838_v44 = vrot.slane %v836_v37, 5  ;;  %v272_v46 = vshrl.u32 %v3268_v26, 16  ;;  %v275_v50 = vshll.u32 %v3268_v26, 16 }
  0x36   : > { %1266 = vrot.lane.b32.xlu0 %v2680_v34, %s3053_s5  ;;  %v868_v30 = vrot.slane %v867_v40, 4  ;;  %v834_v54 = vrot.slane %v833_v41, 4  ;;  %v848_v38 = vrot.slane %v846_v42, 5  ;;  %v281_v47 = vshll.u32 %v3272_v39, 16 }
  0x37   : > { %v843_v55 = vor.u32 %v842_v29, %v838_v44  ;;  %v274_v56 = vrot.slane %v272_v46, 4  ;;  %v277_v48 = vrot.slane %v275_v50, 5  ;;  %v285_v57 = vshrl.u32 %v3272_v39, 16  ;;  %2824 = vmatpush3.bf16.msra.mxu0 %v2982_v58 }
  0x38   : > { %v873_v59 = vsel %vm3214_vm5, %v868_v30, %v872_v36  ;;  %v839_v49 = vsel %vm3214_vm5, %v834_v54, %v838_v44  ;;  %v283_v60 = vrot.slane %v281_v47, 5  ;;  %v291_v61 = vshll.u32 %v3284_v45, 16  ;;  %v3330_v30 = vld [vmem:[%s3115_s24 + $0x30] sm:$0xf]  ;;  %v3337_v47 = vld [vmem:[%s3115_s24 + $0x34] sm:$0xf] }
  0x39   : > { %v2705_v0 = vcombine.low %v863_v43, %v873_v59  ;;  %v844_v52 = vrot.slane %v843_v55, 4  ;;  %v278_v2 = vor.u32 %v277_v48, %v274_v56  ;;  %v287_v1 = vrot.slane %v285_v57, 4  ;;  %v3344_v57 = vld [vmem:[%s3115_s24 + $0x24] sm:$0xf] }
  0x3a   : > { %v293_v3 = vrot.slane %v291_v61, 5  ;;  %v2640_v53 = vrot.slane %v3155_v22, 9  ;;  %v1044_v7 = vrot.slane %v3165_v27, 5  ;;  %v1047_v9 = vrot.slane %v3258_v18, 5  ;;  %v2983_v18 = vld [vmem:[%s4125_s1 + $0x1c] sm:$0xff]  }
  0x3b   : > { %1388 = vrot.lane.b32.xlu1 %v2705_v0, %s3054_s10  ;;  %v849_v4 = vsel %vm3214_vm5, %v844_v52, %v848_v38  ;;  %v279_v5 = vrot.slane %v278_v2, 4  ;;  %v288_v13 = vor.u32 %v287_v1, %v283_v60  ;;  %v296_v8 = vshrl.u32 %v205_v63, 16  ;;  %2845 = vmatprep.subr.bf16.mxu1 %v2983_v18  ;;  %v3353_v61 = vld [vmem:[%s3115_s24 + $0x28] sm:$0xf]  ;;  %v2593_v52 = vld [vmem:[%s3115_s24 + $0x38] sm:$0x1] }
  0x3c   : > { %v2704_v10 = vcombine.low %v839_v49, %v849_v4  ;;  %v1045_v22 = vsel %vm3174_vm2, %v2640_v53, %v1044_v7  ;;  %v1046_v11 = vrot.slane %v1044_v7, 4  ;;  %v299_v27 = vshll.u32 %v205_v63, 16  ;;  %2846 = vmatpush3.bf16.msra.mxu1 %v2983_v18  ;;  %v2590_v7 = vld [vmem:[%s3115_s24 + $0x2c] sm:$0x1] }
  0x3d   : > { %v284_v19 = vsel %vm3214_vm5, %v279_v5, %v283_v60  ;;  %v289_v14 = vrot.slane %v288_v13, 4  ;;  %v298_v15 = vrot.slane %v296_v8, 4  ;;  %v305_v16 = vshll.u32 %v206_v33, 16 }
  0x3e   : > { %1386 = vrot.lane.b32.xlu0 %v2704_v10, %s3054_s10  ;;  %v1048_v20 = vsel %vm3174_vm2, %v1046_v11, %v1047_v9  ;;  %v301_v21 = vrot.slane %v299_v27, 5  ;;  %v309_v23 = vshrl.u32 %v206_v33, 16  ;;  %v315_v24 = vshll.u32 %v207_v6, 16 }
  0x3f   : > { %v294_v25 = vsel %vm3214_vm5, %v289_v14, %v293_v3  ;;  %v2712_v34 = vcombine.low %v1045_v22, %v1048_v20  ;;  %v307_v35 = vrot.slane %v305_v16, 5  ;;  %v2641_v36 = vrot.slane %v3137_v12, 9 }
  0x40   : > { %v2658_v37 = vcombine.low %v284_v19, %v294_v25  ;;  %v302_v28 = vor.u32 %v301_v21, %v298_v15  ;;  %v311_v40 = vrot.slane %v309_v23, 4  ;;  %v317_v41 = vrot.slane %v315_v24, 5 }
  0x41   : > { %v1051_v29 = vrot.slane %v3145_v17, 5  ;;  %v1054_v42 = vrot.slane %v3243_v62, 5  ;;  %v2575_v43 = vrot.slane %v205_v63, 9  ;;  %v465_v44 = vrot.slane %v206_v33, 5 }
  0x42   : > { %1150 = vrot.lane.b32.xlu1 %v2658_v37, %s3052_s29  ;;  %1426 = vrot.lane.b32.xlu0 %v2712_v34, %s3055_s20  ;;  %v303_v12 = vrot.slane %v302_v28, 4  ;;  %v312_v46 = vor.u32 %v311_v40, %v307_v35  ;;  %v468_v50 = vrot.slane %v207_v6, 5  ;;  %v2574_v51 = vrot.slane %v3268_v26, 9 }
  0x43   : > { %v1052_v17 = vsel %vm3174_vm2, %v2641_v36, %v1051_v29  ;;  %v1053_v62 = vrot.slane %v1051_v29, 4  ;;  %v466_v54 = vsel %vm3174_vm2, %v2575_v43, %v465_v44  ;;  %v467_v38 = vrot.slane %v465_v44, 4  ;;  %v3381_v29 = vld [vmem:[%s3115_s24 + $0x3c] sm:$0xf] }
  0x44   : > { %v308_v55 = vsel %vm3214_vm5, %v303_v12, %v307_v35  ;;  %v313_v56 = vrot.slane %v312_v46, 4  ;;  %v458_v26 = vrot.slane %v3272_v39, 5  ;;  %v461_v48 = vrot.slane %v3284_v45, 5 }
  0x45   : > { %v1055_v58 = vsel %vm3174_vm2, %v1053_v62, %v1054_v42  ;;  %v469_v59 = vsel %vm3174_vm2, %v467_v38, %v468_v50  ;;  %v599_v49 = vshrl.u32 %v3330_v30, 16  ;;  %v602_v60 = vshll.u32 %v3330_v30, 16 }
  0x46   : > { %v318_v39 = vsel %vm3214_vm5, %v313_v56, %v317_v41  ;;  %v2713_v63 = vcombine.low %v1052_v17, %v1055_v58  ;;  %v2667_v45 = vcombine.low %v466_v54, %v469_v59  ;;  %v459_v0 = vsel %vm3174_vm2, %v2574_v51, %v458_v26  ;;  %v3390_v17 = vld [vmem:[%s3115_s24 + $0x40] sm:$0xf]  ;;  %v3406_v58 = vld [vmem:[%s3115_s24 + $0x34] sm:$0xf] }
  0x47   : > { %v2659_v2 = vcombine.low %v308_v55, %v318_v39  ;;  %v460_v1 = vrot.slane %v458_v26, 4  ;;  %v612_v3 = vshrl.u32 %v3337_v47, 16  ;;  %v2675_v53 = vcombine.low %v3330_v30, %v3337_v47  ;;  %v3399_v55 = vld [vmem:[%s3115_s24 + $0x30] sm:$0xf] }
  0x48   : > { %1428 = vrot.lane.b32.xlu0 %v2713_v63, %s3055_s20  ;;  %v575_v9 = vshrl.u32 %v3344_v57, 16  ;;  %v578_v33 = vshll.u32 %v3344_v57, 16  ;;  %v588_v4 = vshrl.u32 %v3353_v61, 16  ;;  %v2674_v5 = vcombine.low %v3344_v57, %v3353_v61 }
  0x49   : > { %1152 = vrot.lane.b32.xlu1 %v2659_v2, %s3052_s29  ;;  %v462_v13 = vsel %vm3174_vm2, %v460_v1, %v461_v48  ;;  %v601_v6 = vrot.slane %v599_v49, 4  ;;  %v604_v8 = vrot.slane %v602_v60, 5  ;;  %v608_v10 = vshll.u32 %v3337_v47, 16 }
  0x4a   : > { %v2666_v22 = vcombine.low %v459_v0, %v462_v13  ;;  %v614_v11 = vrot.slane %v612_v3, 4  ;;  %v618_v27 = vshll.u32 %v2593_v52, 16  ;;  %v577_v19 = vrot.slane %v575_v9, 4  ;;  %v3431_v13 = vld [vmem:[%s3115_s24 + $0x30] sm:$0xf] }
  0x4b   : > { %v605_v14 = vor.u32 %v604_v8, %v601_v6  ;;  %v610_v15 = vrot.slane %v608_v10, 5  ;;  %v580_v16 = vrot.slane %v578_v33, 5  ;;  %v584_v18 = vshll.u32 %v3353_v61, 16 }
  0x4c   : > { %1190 = vrot.lane.b32.xlu0 %v2666_v22, %s3051_s28  ;;  %v620_v20 = vrot.slane %v618_v27, 5  ;;  %v590_v21 = vrot.slane %v588_v4, 4  ;;  %v594_v23 = vshll.u32 %v2590_v7, 16  ;;  %v2609_v24 = vrot.slane %v3330_v30, 9 }
  0x4d   : > { %1192 = vrot.lane.b32.xlu1 %v2667_v45, %s3051_s28  ;;  %v606_v25 = vrot.slane %v605_v14, 4  ;;  %v615_v34 = vor.u32 %v614_v11, %v610_v15  ;;  %v581_v35 = vor.u32 %v580_v16, %v577_v19  ;;  %v586_v36 = vrot.slane %v584_v18, 5 }
  0x4e   : > { %v596_v37 = vrot.slane %v594_v23, 5  ;;  %v765_v28 = vrot.slane %v3337_v47, 5  ;;  %v768_v40 = vrot.slane %v2593_v52, 5  ;;  %v2608_v41 = vrot.slane %v3344_v57, 9  ;;  %v3418_v52 = vld [vmem:[%s3115_s24 + $0x44] sm:$0x1] }
  0x4f   : > { %v611_v42 = vsel %vm3214_vm5, %v606_v25, %v610_v15  ;;  %v616_v43 = vrot.slane %v615_v34, 4  ;;  %v582_v44 = vrot.slane %v581_v35, 4  ;;  %v591_v12 = vor.u32 %v590_v21, %v586_v36  ;;  %v3437_v15 = vld [vmem:[%s3115_s24 + $0x34] sm:$0xf]  ;;  %v3443_v34 = vld [vmem:[%s3115_s24 + $0x38] sm:$0x1] }
  0x50   : > { %1230 = vrot.lane.b32.xlu0 %v2674_v5, %s3048_s25  ;;  %v766_v46 = vsel %vm3174_vm2, %v2609_v24, %v765_v28  ;;  %v767_v50 = vrot.slane %v765_v28, 4  ;;  %v758_v51 = vrot.slane %v3353_v61, 5  ;;  %v761_v30 = vrot.slane %v2590_v7, 5  ;;  %v3426_v7 = vld [vmem:[%s3115_s24 + $0x38] sm:$0x1] }
  0x51   : > { %1232 = vrot.lane.b32.xlu1 %v2675_v53, %s3048_s25  ;;  %v621_v62 = vsel %vm3214_vm5, %v616_v43, %v620_v20  ;;  %v587_v54 = vsel %vm3214_vm5, %v582_v44, %v586_v36  ;;  %v592_v38 = vrot.slane %v591_v12, 4  ;;  %v899_v47 = vshrl.u32 %v3381_v29, 16 }
  0x52   : > { %v2683_v56 = vcombine.low %v611_v42, %v621_v62  ;;  %v769_v26 = vsel %vm3174_vm2, %v767_v50, %v768_v40  ;;  %v759_v48 = vsel %vm3174_vm2, %v2608_v41, %v758_v51  ;;  %v760_v57 = vrot.slane %v758_v51, 4 }
  0x53   : > { %v597_v59 = vsel %vm3214_vm5, %v592_v38, %v596_v37  ;;  %v2691_v49 = vcombine.low %v766_v46, %v769_v26  ;;  %v902_v60 = vshll.u32 %v3381_v29, 16  ;;  %v912_v61 = vshrl.u32 %v3390_v17, 16 }
  0x54   : > { %v2682_v39 = vcombine.low %v587_v54, %v597_v59  ;;  %v762_v63 = vsel %vm3174_vm2, %v760_v57, %v761_v30  ;;  %v2699_v45 = vcombine.low %v3381_v29, %v3390_v17  ;;  %v875_v0 = vshrl.u32 %v3399_v55, 16  ;;  %v3465_v59 = vld [vmem:[%s3115_s24 + $0x40] sm:$0xf] }
  0x55   : > { %1272 = vrot.lane.b32.xlu1 %v2683_v56, %s3053_s5  ;;  %v2690_v2 = vcombine.low %v759_v48, %v762_v63  ;;  %v878_v1 = vshll.u32 %v3399_v55, 16  ;;  %v888_v3 = vshrl.u32 %v3406_v58, 16  ;;  %v2698_v53 = vcombine.low %v3399_v55, %v3406_v58  ;;  %v213_v63 = vld [vmem:[%s3115_s24 + $0x44] sm:$0x1] }
  0x56   : > { %1270 = vrot.lane.b32.xlu0 %v2682_v39, %s3053_s5  ;;  %v901_v9 = vrot.slane %v899_v47, 4  ;;  %v904_v33 = vrot.slane %v902_v60, 5  ;;  %v908_v4 = vshll.u32 %v3390_v17, 16  ;;  %v914_v5 = vrot.slane %v912_v61, 4  ;;  %v3459_v47 = vld [vmem:[%s3115_s24 + $0x3c] sm:$0xf] }
  0x57   : > { %v918_v6 = vshll.u32 %v3418_v52, 16  ;;  %v877_v8 = vrot.slane %v875_v0, 4  ;;  %v880_v10 = vrot.slane %v878_v1, 5  ;;  %v884_v22 = vshll.u32 %v3406_v58, 16 }
  0x58   : > { %v905_v11 = vor.u32 %v904_v33, %v901_v9  ;;  %v910_v27 = vrot.slane %v908_v4, 5  ;;  %v890_v19 = vrot.slane %v888_v3, 4  ;;  %v894_v14 = vshll.u32 %v3426_v7, 16 }
  0x59   : > { %1312 = vrot.lane.b32.xlu1 %v2691_v49, %s3050_s27  ;;  %v920_v16 = vrot.slane %v918_v6, 5  ;;  %v881_v18 = vor.u32 %v880_v10, %v877_v8  ;;  %v886_v20 = vrot.slane %v884_v22, 5  ;;  %v320_v21 = vshrl.u32 %v3431_v13, 16 }
  0x5a   : > { %1310 = vrot.lane.b32.xlu0 %v2690_v2, %s3050_s27  ;;  %v906_v23 = vrot.slane %v905_v11, 4  ;;  %v915_v24 = vor.u32 %v914_v5, %v910_v27  ;;  %v896_v25 = vrot.slane %v894_v14, 5  ;;  %v323_v35 = vshll.u32 %v3431_v13, 16 }
  0x5b   : > { %v882_v36 = vrot.slane %v881_v18, 4  ;;  %v891_v37 = vor.u32 %v890_v19, %v886_v20  ;;  %v322_v28 = vrot.slane %v320_v21, 4  ;;  %v329_v40 = vshll.u32 %v3437_v15, 16 }
  0x5c   : > { %v911_v41 = vsel %vm3214_vm5, %v906_v23, %v910_v27  ;;  %v916_v42 = vrot.slane %v915_v24, 4  ;;  %v325_v43 = vrot.slane %v323_v35, 5  ;;  %v333_v44 = vshrl.u32 %v3437_v15, 16 }
  0x5d   : > { %1352 = vrot.lane.b32.xlu1 %v2699_v45, %s3049_s26  ;;  %v887_v12 = vsel %vm3214_vm5, %v882_v36, %v886_v20  ;;  %v892_v46 = vrot.slane %v891_v37, 4  ;;  %v331_v50 = vrot.slane %v329_v40, 5  ;;  %v339_v51 = vshll.u32 %v3443_v34, 16 }
  0x5e   : > { %1350 = vrot.lane.b32.xlu0 %v2698_v53, %s3049_s26  ;;  %v921_v30 = vsel %vm3214_vm5, %v916_v42, %v920_v16  ;;  %v326_v62 = vor.u32 %v325_v43, %v322_v28  ;;  %v335_v54 = vrot.slane %v333_v44, 4  ;;  %v2642_v38 = vrot.slane %v3399_v55, 9 }
  0x5f   : > { %v2707_v56 = vcombine.low %v911_v41, %v921_v30  ;;  %v897_v26 = vsel %vm3214_vm5, %v892_v46, %v896_v25  ;;  %v341_v48 = vrot.slane %v339_v51, 5  ;;  %v1058_v57 = vrot.slane %v3406_v58, 5  ;;  %v2595_v30 = vld [vmem:[%s3115_s24 + $0x40] sm:$0xf] }
  0x60   : > { %v2706_v49 = vcombine.low %v887_v12, %v897_v26  ;;  %v327_v60 = vrot.slane %v326_v62, 4  ;;  %v336_v61 = vor.u32 %v335_v54, %v331_v50  ;;  %v1061_v39 = vrot.slane %v3426_v7, 5  ;;  %v3508_v12 = vld [vmem:[%s3115_s24 + $0x3c] sm:$0xf]  ;;  %v2599_v26 = vld [vmem:[%s3115_s24 + $0x50] sm:$0x1] }
  0x61   : > { %1392 = vrot.lane.b32.xlu1 %v2707_v56, %s3054_s10  ;;  %v1059_v55 = vsel %vm3174_vm2, %v2642_v38, %v1058_v57  ;;  %v1060_v45 = vrot.slane %v1058_v57, 4  ;;  %v344_v0 = vshrl.u32 %v3459_v47, 16  ;;  %v347_v2 = vshll.u32 %v3459_v47, 16 }
  0x62   : > { %1390 = vrot.lane.b32.xlu0 %v2706_v49, %s3054_s10  ;;  %v332_v58 = vsel %vm3214_vm5, %v327_v60, %v331_v50  ;;  %v337_v1 = vrot.slane %v336_v61, 4  ;;  %v353_v3 = vshll.u32 %v3465_v59, 16  ;;  %v357_v53 = vshrl.u32 %v3465_v59, 16 }
  0x63   : > { %v1062_v7 = vsel %vm3174_vm2, %v1060_v45, %v1061_v39  ;;  %v346_v9 = vrot.slane %v344_v0, 4  ;;  %v349_v33 = vrot.slane %v347_v2, 5  ;;  %v363_v4 = vshll.u32 %v213_v63, 16  ;;  %v2596_v45 = vld [vmem:[%s3115_s24 + $0x44] sm:$0x1] }
  0x64   : > { %v342_v5 = vsel %vm3214_vm5, %v337_v1, %v341_v48  ;;  %v2714_v6 = vcombine.low %v1059_v55, %v1062_v7  ;;  %v355_v8 = vrot.slane %v353_v3, 5  ;;  %v359_v10 = vrot.slane %v357_v53, 4 }
  0x65   : > { %v2660_v22 = vcombine.low %v332_v58, %v342_v5  ;;  %v350_v11 = vor.u32 %v349_v33, %v346_v9  ;;  %v365_v27 = vrot.slane %v363_v4, 5  ;;  %v2643_v19 = vrot.slane %v3381_v29, 9 }
  0x66   : > { %1430 = vrot.lane.b32.xlu0 %v2714_v6, %s3055_s20  ;;  %v360_v14 = vor.u32 %v359_v10, %v355_v8  ;;  %v1065_v16 = vrot.slane %v3390_v17, 5  ;;  %v1068_v18 = vrot.slane %v3418_v52, 5  ;;  %v2577_v20 = vrot.slane %v3459_v47, 9  ;;  %v2597_v52 = vld [vmem:[%s3115_s24 + $0x48] sm:$0xf] }
  0x67   : > { %1154 = vrot.lane.b32.xlu1 %v2660_v22, %s3052_s29  ;;  %v351_v21 = vrot.slane %v350_v11, 4  ;;  %v479_v23 = vrot.slane %v3465_v59, 5  ;;  %v482_v24 = vrot.slane %v213_v63, 5  ;;  %v2576_v25 = vrot.slane %v3431_v13, 9  ;;  %v2598_v13 = vld [vmem:[%s3115_s24 + $0x4c] sm:$0xf] }
  0x68   : > { %v361_v29 = vrot.slane %v360_v14, 4  ;;  %v1066_v35 = vsel %vm3174_vm2, %v2643_v19, %v1065_v16  ;;  %v1067_v36 = vrot.slane %v1065_v16, 4  ;;  %v472_v17 = vrot.slane %v3437_v15, 5 }
  0x69   : > { %v356_v37 = vsel %vm3214_vm5, %v351_v21, %v355_v8  ;;  %v480_v28 = vsel %vm3174_vm2, %v2577_v20, %v479_v23  ;;  %v481_v40 = vrot.slane %v479_v23, 4  ;;  %v475_v41 = vrot.slane %v3443_v34, 5 }
  0x6a   : > { %v366_v42 = vsel %vm3214_vm5, %v361_v29, %v365_v27  ;;  %v1069_v43 = vsel %vm3174_vm2, %v1067_v36, %v1068_v18  ;;  %v473_v15 = vsel %vm3174_vm2, %v2576_v25, %v472_v17  ;;  %v474_v44 = vrot.slane %v472_v17, 4  ;;  %v3526_v18 = vld [vmem:[%s3115_s24 + $0x54] sm:$0xf]  ;;  %v3535_v17 = vld [vmem:[%s3115_s24 + $0x58] sm:$0xf] }
  0x6b   : > { %v2661_v46 = vcombine.low %v356_v37, %v366_v42  ;;  %v2715_v50 = vcombine.low %v1066_v35, %v1069_v43  ;;  %v483_v51 = vsel %vm3174_vm2, %v481_v40, %v482_v24  ;;  %v647_v34 = vshrl.u32 %v2597_v52, 16 }
  0x6c   : > { %v2669_v62 = vcombine.low %v480_v28, %v483_v51  ;;  %v476_v54 = vsel %vm3174_vm2, %v474_v44, %v475_v41  ;;  %v650_v38 = vshll.u32 %v2597_v52, 16  ;;  %v660_v56 = vshrl.u32 %v2598_v13, 16  ;;  %v3542_v41 = vld [vmem:[%s3115_s24 + $0x48] sm:$0xf]  ;;  %v3551_v44 = vld [vmem:[%s3115_s24 + $0x4c] sm:$0xf] }
  0x6d   : > { %1156 = vrot.lane.b32.xlu1 %v2661_v46, %s3052_s29  ;;  %1432 = vrot.lane.b32.xlu0 %v2715_v50, %s3055_s20  ;;  %v2668_v48 = vcombine.low %v473_v15, %v476_v54  ;;  %v2677_v57 = vcombine.low %v2597_v52, %v2598_v13  ;;  %v623_v49 = vshrl.u32 %v3508_v12, 16  ;;  %v626_v60 = vshll.u32 %v3508_v12, 16 }
  0x6e   : > { %v636_v61 = vshrl.u32 %v2595_v30, 16  ;;  %v2676_v39 = vcombine.low %v3508_v12, %v2595_v30  ;;  %v649_v63 = vrot.slane %v647_v34, 4  ;;  %v652_v55 = vrot.slane %v650_v38, 5  ;;  %v3562_v38 = vld [vmem:[%s3115_s24 + $0x5c] sm:$0x1] }
  0x6f   : > { %v656_v0 = vshll.u32 %v2598_v13, 16  ;;  %v662_v2 = vrot.slane %v660_v56, 4  ;;  %v666_v58 = vshll.u32 %v2599_v26, 16  ;;  %v625_v1 = vrot.slane %v623_v49, 4  ;;  %v3570_v49 = vld [vmem:[%s3115_s24 + $0x50] sm:$0x1] }
  0x70   : > { %v653_v3 = vor.u32 %v652_v55, %v649_v63  ;;  %v628_v53 = vrot.slane %v626_v60, 5  ;;  %v632_v7 = vshll.u32 %v2595_v30, 16  ;;  %v638_v9 = vrot.slane %v636_v61, 4  ;;  %v3575_v55 = vld [vmem:[%s3115_s24 + $0x48] sm:$0xf] }
  0x71   : > { %1196 = vrot.lane.b32.xlu1 %v2669_v62, %s3051_s28  ;;  %1194 = vrot.lane.b32.xlu0 %v2668_v48, %s3051_s28  ;;  %v658_v33 = vrot.slane %v656_v0, 5  ;;  %v668_v4 = vrot.slane %v666_v58, 5  ;;  %v642_v5 = vshll.u32 %v2596_v45, 16  ;;  %v2611_v6 = vrot.slane %v2597_v52, 9 }
  0x72   : > { %v654_v8 = vrot.slane %v653_v3, 4  ;;  %v629_v10 = vor.u32 %v628_v53, %v625_v1  ;;  %v634_v22 = vrot.slane %v632_v7, 5  ;;  %v779_v11 = vrot.slane %v2598_v13, 5 }
  0x73   : > { %v663_v27 = vor.u32 %v662_v2, %v658_v33  ;;  %v644_v19 = vrot.slane %v642_v5, 5  ;;  %v782_v14 = vrot.slane %v2599_v26, 5  ;;  %v2610_v16 = vrot.slane %v3508_v12, 9 }
  0x74   : > { %v659_v20 = vsel %vm3214_vm5, %v654_v8, %v658_v33  ;;  %v630_v21 = vrot.slane %v629_v10, 4  ;;  %v639_v23 = vor.u32 %v638_v9, %v634_v22  ;;  %v780_v24 = vsel %vm3174_vm2, %v2611_v6, %v779_v11  ;;  %v3581_v9 = vld [vmem:[%s3115_s24 + $0x4c] sm:$0xf] }
  0x75   : > { %1236 = vrot.lane.b32.xlu1 %v2677_v57, %s3048_s25  ;;  %1234 = vrot.lane.b32.xlu0 %v2676_v39, %s3048_s25  ;;  %v664_v25 = vrot.slane %v663_v27, 4  ;;  %v781_v29 = vrot.slane %v779_v11, 4  ;;  %v772_v35 = vrot.slane %v2595_v30, 5  ;;  %v775_v36 = vrot.slane %v2596_v45, 5  ;;  %v3587_v11 = vld [vmem:[%s3115_s24 + $0x50] sm:$0x1] }
  0x76   : > { %v635_v52 = vsel %vm3214_vm5, %v630_v21, %v634_v22  ;;  %v640_v37 = vrot.slane %v639_v23, 4  ;;  %v947_v28 = vshrl.u32 %v3526_v18, 16  ;;  %v950_v40 = vshll.u32 %v3526_v18, 16 }
  0x77   : > { %v669_v13 = vsel %vm3214_vm5, %v664_v25, %v668_v4  ;;  %v783_v42 = vsel %vm3174_vm2, %v781_v29, %v782_v14  ;;  %v773_v43 = vsel %vm3174_vm2, %v2610_v16, %v772_v35  ;;  %v774_v15 = vrot.slane %v772_v35, 4 }
  0x78   : > { %v2685_v12 = vcombine.low %v659_v20, %v669_v13  ;;  %v645_v46 = vsel %vm3214_vm5, %v640_v37, %v644_v19  ;;  %v2693_v50 = vcombine.low %v780_v24, %v783_v42  ;;  %v960_v51 = vshrl.u32 %v3535_v17, 16  ;;  %v3603_v42 = vld [vmem:[%s3115_s24 + $0x54] sm:$0xf] }
  0x79   : > { %v2684_v34 = vcombine.low %v635_v52, %v645_v46  ;;  %v776_v30 = vsel %vm3174_vm2, %v774_v15, %v775_v36  ;;  %v2701_v62 = vcombine.low %v3526_v18, %v3535_v17  ;;  %v923_v54 = vshrl.u32 %v3542_v41, 16 }
  0x7a   : > { %1276 = vrot.lane.b32.xlu1 %v2685_v12, %s3053_s5  ;;  %v2692_v56 = vcombine.low %v773_v43, %v776_v30  ;;  %v926_v26 = vshll.u32 %v3542_v41, 16  ;;  %v936_v48 = vshrl.u32 %v3551_v44, 16  ;;  %v2700_v57 = vcombine.low %v3542_v41, %v3551_v44 }
  0x7b   : > { %1274 = vrot.lane.b32.xlu0 %v2684_v34, %s3053_s5  ;;  %v949_v60 = vrot.slane %v947_v28, 4  ;;  %v952_v61 = vrot.slane %v950_v40, 5  ;;  %v956_v39 = vshll.u32 %v3535_v17, 16  ;;  %v962_v63 = vrot.slane %v960_v51, 4 }
  0x7c   : > { %v966_v45 = vshll.u32 %v3562_v38, 16  ;;  %v925_v0 = vrot.slane %v923_v54, 4  ;;  %v928_v2 = vrot.slane %v926_v26, 5  ;;  %v932_v58 = vshll.u32 %v3551_v44, 16  ;;  %v219_v54 = vld [vmem:[%s3115_s24 + $0x5c] sm:$0x1] }
  0x7d   : > { %v953_v1 = vor.u32 %v952_v61, %v949_v60  ;;  %v958_v3 = vrot.slane %v956_v39, 5  ;;  %v938_v53 = vrot.slane %v936_v48, 4  ;;  %v942_v7 = vshll.u32 %v3570_v49, 16 }
  0x7e   : > { %1316 = vrot.lane.b32.xlu1 %v2693_v50, %s3050_s27  ;;  %v968_v33 = vrot.slane %v966_v45, 5  ;;  %v929_v4 = vor.u32 %v928_v2, %v925_v0  ;;  %v934_v5 = vrot.slane %v932_v58, 5  ;;  %v368_v6 = vshrl.u32 %v3575_v55, 16  ;;  %v3609_v50 = vld [vmem:[%s3115_s24 + $0x58] sm:$0xf] }
  0x7f   : > { %1314 = vrot.lane.b32.xlu0 %v2692_v56, %s3050_s27  ;;  %v954_v8 = vrot.slane %v953_v1, 4  ;;  %v963_v10 = vor.u32 %v962_v63, %v958_v3  ;;  %v944_v22 = vrot.slane %v942_v7, 5  ;;  %v371_v27 = vshll.u32 %v3575_v55, 16 }
  0x80   : > { %v930_v19 = vrot.slane %v929_v4, 4  ;;  %v939_v14 = vor.u32 %v938_v53, %v934_v5  ;;  %v370_v16 = vrot.slane %v368_v6, 4  ;;  %v377_v20 = vshll.u32 %v3581_v9, 16 }
  0x81   : > { %v959_v21 = vsel %vm3214_vm5, %v954_v8, %v958_v3  ;;  %v964_v23 = vrot.slane %v963_v10, 4  ;;  %v373_v24 = vrot.slane %v371_v27, 5  ;;  %v381_v25 = vshrl.u32 %v3581_v9, 16 }
  0x82   : > { %1356 = vrot.lane.b32.xlu1 %v2701_v62, %s3049_s26  ;;  %v935_v29 = vsel %vm3214_vm5, %v930_v19, %v934_v5  ;;  %v940_v35 = vrot.slane %v939_v14, 4  ;;  %v379_v36 = vrot.slane %v377_v20, 5  ;;  %v387_v52 = vshll.u32 %v3587_v11, 16  ;;  %v3641_v20 = vld [vmem:[%s3115_s24 + $0x60] sm:$0xf] }
  0x83   : > { %1354 = vrot.lane.b32.xlu0 %v2700_v57, %s3049_s26  ;;  %v969_v37 = vsel %vm3214_vm5, %v964_v23, %v968_v33  ;;  %v374_v28 = vor.u32 %v373_v24, %v370_v16  ;;  %v383_v40 = vrot.slane %v381_v25, 4  ;;  %v2644_v13 = vrot.slane %v3542_v41, 9 }
  0x84   : > { %v2709_v43 = vcombine.low %v959_v21, %v969_v37  ;;  %v945_v15 = vsel %vm3214_vm5, %v940_v35, %v944_v22  ;;  %v389_v12 = vrot.slane %v387_v52, 5  ;;  %v1072_v46 = vrot.slane %v3551_v44, 5  ;;  %v2604_v35 = vld [vmem:[%s3115_s24 + $0x64] sm:$0xf] }
  0x85   : > { %v2708_v51 = vcombine.low %v935_v29, %v945_v15  ;;  %v375_v34 = vrot.slane %v374_v28, 4  ;;  %v384_v30 = vor.u32 %v383_v40, %v379_v36  ;;  %v1075_v62 = vrot.slane %v3570_v49, 5  ;;  %v3658_v40 = vld [vmem:[%s3115_s24 + $0x54] sm:$0xf] }
  0x86   : > { %1396 = vrot.lane.b32.xlu1 %v2709_v43, %s3054_s10  ;;  %v1073_v41 = vsel %vm3174_vm2, %v2644_v13, %v1072_v46  ;;  %v1074_v56 = vrot.slane %v1072_v46, 4  ;;  %v392_v26 = vshrl.u32 %v3603_v42, 16  ;;  %v395_v48 = vshll.u32 %v3603_v42, 16 }
  0x87   : > { %1394 = vrot.lane.b32.xlu0 %v2708_v51, %s3054_s10  ;;  %v380_v44 = vsel %vm3214_vm5, %v375_v34, %v379_v36  ;;  %v385_v57 = vrot.slane %v384_v30, 4  ;;  %v401_v60 = vshll.u32 %v3609_v50, 16  ;;  %v405_v49 = vshrl.u32 %v3609_v50, 16 }
  0x88   : > { %v1076_v61 = vsel %vm3174_vm2, %v1074_v56, %v1075_v62  ;;  %v394_v39 = vrot.slane %v392_v26, 4  ;;  %v397_v63 = vrot.slane %v395_v48, 5  ;;  %v411_v45 = vshll.u32 %v219_v54, 16  ;;  %v2605_v62 = vld [vmem:[%s3115_s24 + $0x68] sm:$0x1] }
  0x89   : > { %v390_v0 = vsel %vm3214_vm5, %v385_v57, %v389_v12  ;;  %v2716_v2 = vcombine.low %v1073_v41, %v1076_v61  ;;  %v403_v58 = vrot.slane %v401_v60, 5  ;;  %v407_v1 = vrot.slane %v405_v49, 4  ;;  %v3664_v12 = vld [vmem:[%s3115_s24 + $0x58] sm:$0xf]  ;;  %v2602_v61 = vld [vmem:[%s3115_s24 + $0x5c] sm:$0x1] }
  0x8a   : > { %v2662_v3 = vcombine.low %v380_v44, %v390_v0  ;;  %v398_v53 = vor.u32 %v397_v63, %v394_v39  ;;  %v413_v7 = vrot.slane %v411_v45, 5  ;;  %v2645_v33 = vrot.slane %v3526_v18, 9  ;;  %v3632_v10 = vpop.permute.xlu1 %1228 }
  0x8b   : > { %1434 = vrot.lane.b32.xlu0 %v2716_v2, %s3055_s20  ;;  %v408_v4 = vor.u32 %v407_v1, %v403_v58  ;;  %v1079_v5 = vrot.slane %v3535_v17, 5  ;;  %v1082_v6 = vrot.slane %v3562_v38, 5  ;;  %v2579_v8 = vrot.slane %v3603_v42, 9  ;;  %v3643_v21 = vpop.permute.xlu0 %1226 }
  0x8c   : > { %1158 = vrot.lane.b32.xlu1 %v2662_v3, %s3052_s29  ;;  %v399_v22 = vrot.slane %v398_v53, 4  ;;  %v493_v27 = vrot.slane %v3609_v50, 5  ;;  %v496_v19 = vrot.slane %v219_v54, 5  ;;  %v2578_v18 = vrot.slane %v3575_v55, 9 }
  0x8d   : > { %v409_v14 = vrot.slane %v408_v4, 4  ;;  %v1080_v17 = vsel %vm3174_vm2, %v2645_v33, %v1079_v5  ;;  %v1081_v16 = vrot.slane %v1079_v5, 4  ;;  %v486_v38 = vrot.slane %v3581_v9, 5 }
  0x8e   : > { %v404_v23 = vsel %vm3214_vm5, %v399_v22, %v403_v58  ;;  %v494_v24 = vsel %vm3174_vm2, %v2579_v8, %v493_v27  ;;  %v495_v25 = vrot.slane %v493_v27, 4  ;;  %v489_v29 = vrot.slane %v3587_v11, 5  ;;  %v3670_v54 = vpop.permute.xlu1 %1348 }
  0x8f   : > { %v414_v36 = vsel %vm3214_vm5, %v409_v14, %v413_v7  ;;  %v1083_v52 = vsel %vm3174_vm2, %v1081_v16, %v1082_v6  ;;  %v487_v37 = vsel %vm3174_vm2, %v2578_v18, %v486_v38  ;;  %v488_v28 = vrot.slane %v486_v38, 4  ;;  %v3681_v39 = vpop.permute.xlu0 %1346  ;;  %v3691_v38 = vld [vmem:[%s3115_s24 + $0x6c] sm:$0xf] }
  0x90   : > { %v2663_v13 = vcombine.low %v404_v23, %v414_v36  ;;  %v2717_v43 = vcombine.low %v1080_v17, %v1083_v52  ;;  %v497_v15 = vsel %vm3174_vm2, %v495_v25, %v496_v19  ;;  %v695_v11 = vshrl.u32 %v3641_v20, 16 }
  0x91   : > { %v2671_v46 = vcombine.low %v494_v24, %v497_v15  ;;  %v490_v51 = vsel %vm3174_vm2, %v488_v28, %v489_v29  ;;  %v698_v34 = vshll.u32 %v3641_v20, 16  ;;  %v708_v30 = vshrl.u32 %v2604_v35, 16  ;;  %v2638_v28 = vld [vmem:[%s3115_s24 + $0x70] sm:$0xf] }
  0x92   : > { %1160 = vrot.lane.b32.xlu1 %v2663_v13, %s3052_s29  ;;  %1436 = vrot.lane.b32.xlu0 %v2717_v43, %s3055_s20  ;;  %v2670_v41 = vcombine.low %v487_v37, %v490_v51  ;;  %v2679_v56 = vcombine.low %v3641_v20, %v2604_v35  ;;  %v671_v26 = vshrl.u32 %v3658_v40, 16  ;;  %v674_v48 = vshll.u32 %v3658_v40, 16 }
  0x93   : > { %v684_v44 = vshrl.u32 %v3664_v12, 16  ;;  %v2678_v57 = vcombine.low %v3658_v40, %v3664_v12  ;;  %v697_v60 = vrot.slane %v695_v11, 4  ;;  %v700_v49 = vrot.slane %v698_v34, 5  ;;  %v3708_v11 = vld [vmem:[%s3115_s24 + $0x60] sm:$0xf] }
  0x94   : > { %v704_v63 = vshll.u32 %v2604_v35, 16  ;;  %v710_v45 = vrot.slane %v708_v30, 4  ;;  %v714_v0 = vshll.u32 %v2605_v62, 16  ;;  %v673_v2 = vrot.slane %v671_v26, 4  ;;  %v3717_v30 = vld [vmem:[%s3115_s24 + $0x64] sm:$0xf] }
  0x95   : > { %v701_v58 = vor.u32 %v700_v49, %v697_v60  ;;  %v676_v1 = vrot.slane %v674_v48, 5  ;;  %v680_v3 = vshll.u32 %v3664_v12, 16  ;;  %v686_v53 = vrot.slane %v684_v44, 4  ;;  %v3697_v29 = vpop.permute.xlu0 %1306 }
  0x96   : > { %1200 = vrot.lane.b32.xlu1 %v2671_v46, %s3051_s28  ;;  %1198 = vrot.lane.b32.xlu0 %v2670_v41, %s3051_s28  ;;  %v706_v7 = vrot.slane %v704_v63, 5  ;;  %v716_v33 = vrot.slane %v714_v0, 5  ;;  %v690_v4 = vshll.u32 %v2602_v61, 16  ;;  %v2613_v5 = vrot.slane %v3641_v20, 9 }
  0x97   : > { %v702_v6 = vrot.slane %v701_v58, 4  ;;  %v677_v8 = vor.u32 %v676_v1, %v673_v2  ;;  %v682_v22 = vrot.slane %v680_v3, 5  ;;  %v793_v27 = vrot.slane %v2604_v35, 5  ;;  %v3687_v19 = vpop.permute.xlu1 %1186  ;;  %v3734_v58 = vld [vmem:[%s3115_s24 + $0x68] sm:$0x1] }
  0x98   : > { %v711_v18 = vor.u32 %v710_v45, %v706_v7  ;;  %v692_v14 = vrot.slane %v690_v4, 5  ;;  %v796_v17 = vrot.slane %v2605_v62, 5  ;;  %v2612_v16 = vrot.slane %v3658_v40, 9 }
  0x99   : > { %v707_v23 = vsel %vm3214_vm5, %v702_v6, %v706_v7  ;;  %v678_v24 = vrot.slane %v677_v8, 4  ;;  %v687_v20 = vor.u32 %v686_v53, %v682_v22  ;;  %v794_v25 = vsel %vm3174_vm2, %v2613_v5, %v793_v27 }
  0x9a   : > { %1240 = vrot.lane.b32.xlu1 %v2679_v56, %s3048_s25  ;;  %1238 = vrot.lane.b32.xlu0 %v2678_v57, %s3048_s25  ;;  %v712_v35 = vrot.slane %v711_v18, 4  ;;  %v795_v36 = vrot.slane %v793_v27, 4  ;;  %v786_v52 = vrot.slane %v3664_v12, 5  ;;  %v789_v37 = vrot.slane %v2602_v61, 5  ;;  %v2639_v61 = vld [vmem:[%s3115_s24 + $0x74] sm:$0x1] }
  0x9b   : > { %v683_v40 = vsel %vm3214_vm5, %v678_v24, %v682_v22  ;;  %v688_v13 = vrot.slane %v687_v20, 4  ;;  %v995_v43 = vshrl.u32 %v3691_v38, 16  ;;  %v998_v15 = vshll.u32 %v3691_v38, 16  ;;  %v3721_v48 = vpop.permute.xlu1 %1188 }
  0x9c   : > { %v717_v46 = vsel %vm3214_vm5, %v712_v35, %v716_v33  ;;  %v797_v51 = vsel %vm3174_vm2, %v795_v36, %v796_v17  ;;  %v787_v12 = vsel %vm3174_vm2, %v2612_v16, %v786_v52  ;;  %v788_v34 = vrot.slane %v786_v52, 4 }
  0x9d   : > { %v2687_v62 = vcombine.low %v707_v23, %v717_v46  ;;  %v693_v41 = vsel %vm3214_vm5, %v688_v13, %v692_v14  ;;  %v2695_v56 = vcombine.low %v794_v25, %v797_v51  ;;  %v1008_v26 = vshrl.u32 %v2638_v28, 16 }
  0x9e   : > { %v2686_v44 = vcombine.low %v683_v40, %v693_v41  ;;  %v790_v57 = vsel %vm3174_vm2, %v788_v34, %v789_v37  ;;  %v2703_v60 = vcombine.low %v3691_v38, %v2638_v28  ;;  %v971_v49 = vshrl.u32 %v3708_v11, 16 }
  0x9f   : > { %1280 = vrot.lane.b32.xlu1 %v2687_v62, %s3053_s5  ;;  %v2694_v63 = vcombine.low %v787_v12, %v790_v57  ;;  %v974_v45 = vshll.u32 %v3708_v11, 16  ;;  %v984_v0 = vshrl.u32 %v3717_v30, 16  ;;  %v2702_v2 = vcombine.low %v3708_v11, %v3717_v30  ;;  %v1147_v1 = vpop.permute.xlu0 %1146  ;;  %v3741_v20 = vpop.permute.xlu1 %1308 }
  0xa0   : > { %1278 = vrot.lane.b32.xlu0 %v2686_v44, %s3053_s5  ;;  %v997_v3 = vrot.slane %v995_v43, 4  ;;  %v1000_v53 = vrot.slane %v998_v15, 5  ;;  %v1004_v7 = vshll.u32 %v2638_v28, 16  ;;  %v1010_v33 = vrot.slane %v1008_v26, 4  ;;  %v2998_v26 = vld [vmem:[%s3115_s24] sm:$0xf] }
  0xa1   : > { %v1014_v4 = vshll.u32 %v2639_v61, 16  ;;  %v973_v5 = vrot.slane %v971_v49, 4  ;;  %v976_v6 = vrot.slane %v974_v45, 5  ;;  %v980_v8 = vshll.u32 %v3717_v30, 16  ;;  %v2999_v44 = vld [vmem:[%s3115_s24 + $0x4] sm:$0xf] }
  0xa2   : > { %v1001_v22 = vor.u32 %v1000_v53, %v997_v3  ;;  %v1006_v27 = vrot.slane %v1004_v7, 5  ;;  %v986_v18 = vrot.slane %v984_v0, 4  ;;  %v990_v14 = vshll.u32 %v3734_v58, 16  ;;  %v3000_v53 = vld [vmem:[%s3115_s24 + $0xc] sm:$0xf] }
  0xa3   : > { %1320 = vrot.lane.b32.xlu1 %v2695_v56, %s3050_s27  ;;  %v1016_v17 = vrot.slane %v1014_v4, 5  ;;  %v977_v16 = vor.u32 %v976_v6, %v973_v5  ;;  %v982_v23 = vrot.slane %v980_v8, 5  ;;  %v2647_v24 = vrot.slane %v3691_v38, 9  ;;  %v3001_v7 = vld [vmem:[%s3115_s24 + $0x10] sm:$0xf] }
  0xa4   : > { %1318 = vrot.lane.b32.xlu0 %v2694_v63, %s3050_s27  ;;  %v1002_v25 = vrot.slane %v1001_v22, 4  ;;  %v1011_v35 = vor.u32 %v1010_v33, %v1006_v27  ;;  %v992_v36 = vrot.slane %v990_v14, 5  ;;  %v1093_v52 = vrot.slane %v2638_v28, 5  ;;  %v1149_v37 = vpop.permute.xlu0 %1148  ;;  %v2985_v33 = vld [vmem:[%s4125_s1 + $0x10] ss:$0 sps:$4 sm:$0x33]  }
  0xa5   : > { %v978_v40 = vrot.slane %v977_v16, 4  ;;  %v987_v13 = vor.u32 %v986_v18, %v982_v23  ;;  %v1096_v43 = vrot.slane %v2639_v61, 5  ;;  %v2646_v15 = vrot.slane %v3708_v11, 9  ;;  %v2992_v18 = vld [vmem:[%s4126_s2] sm:$0xff]   ;;  %v2993_v14 = vld [vmem:[%s4126_s2 + $0x14] sm:$0xff]   ;;  %2909 = vmatprep.subr.msk.bf16.mxu0 %vm1623_vm12, %v2985_v33 }
  0xa6   : > { %v1007_v46 = vsel %vm3214_vm5, %v1002_v25, %v1006_v27  ;;  %v1012_v38 = vrot.slane %v1011_v35, 4  ;;  %v1094_v51 = vsel %vm3174_vm2, %v2647_v24, %v1093_v52  ;;  %v1095_v12 = vrot.slane %v1093_v52, 4  ;;  %v1269_v63 = vpop.permute.xlu1 %1268 }
  0xa7   : > { %1360 = vrot.lane.b32.xlu1 %v2703_v60, %s3049_s26  ;;  %v983_v28 = vsel %vm3214_vm5, %v978_v40, %v982_v23  ;;  %v988_v34 = vrot.slane %v987_v13, 4  ;;  %v1086_v62 = vrot.slane %v3717_v30, 5  ;;  %v1089_v41 = vrot.slane %v3734_v58, 5 }
  0xa8   : > { %1358 = vrot.lane.b32.xlu0 %v2702_v2, %s3049_s26  ;;  %v1017_v11 = vsel %vm3214_vm5, %v1012_v38, %v1016_v17  ;;  %v1097_v56 = vsel %vm3174_vm2, %v1095_v12, %v1096_v43  ;;  %v2648_v57 = vcombine.low %v2998_v26, %v2999_v44  ;;  %v1267_v58 = vpop.permute.xlu0 %1266  ;;  %v2649_v31 = vcombine.low %v3000_v53, %v3001_v7  ;;  %v2995_v43 = vld [vmem:[%s4126_s2 + $0x1c] sm:$0xff]   ;;  %v2996_v38 = vld [vmem:[%s4126_s2 + $0x10] ss:$0 sps:$4 sm:$0x33]   ;;  %v3005_v53 = vld [vmem:[%s3115_s24 + $0x28] sm:$0xf] }
  0xa9   : > { %v2711_v60 = vcombine.low %v1007_v46, %v1017_v11  ;;  %v993_v30 = vsel %vm3214_vm5, %v988_v34, %v992_v36  ;;  %v2719_v49 = vcombine.low %v1094_v51, %v1097_v56  ;;  %v1087_v61 = vsel %vm3174_vm2, %v2646_v15, %v1086_v62  ;;  %v2997_v51 = vld [vmem:[%s4126_s2 + $0x24] ss:$0 sps:$4 sm:$0x33]  }
  0xaa   : > { %v2710_v45 = vcombine.low %v983_v28, %v993_v30  ;;  %v1088_v0 = vrot.slane %v1086_v62, 4  ;;  %v1445_v2 = vsel %vm1442_vm6, %v2648_v57, %v1147_v1  ;;  %v1448_v6 = vsel %vm1442_vm6, %v2649_v31, %v1149_v37  ;;  %v3002_v57 = vld [vmem:[%s3115_s24 + $0x18] sm:$0xf] }
  0xab   : > { %1400 = vrot.lane.b32.xlu1 %v2711_v60, %s3054_s10  ;;  %v1469_v3 = vsel %vm1467_vm7, %v1445_v2, %v3687_v19  ;;  %v2986_v19 = vld [vmem:[%s4125_s1 + $0x24] ss:$0 sps:$4 sm:$0x33]   ;;  %v1471_v22 = vsel %vm1467_vm7, %v1448_v6, %v3721_v48  ;;  %v2654_v23 = vcombine.low %v3575_v55, %v3581_v9  ;;  %v2655_v24 = vcombine.low %v3603_v42, %v3609_v50  ;;  %v3003_v60 = vld [vmem:[%s3115_s24 + $0x1c] sm:$0xf] }
  0xac   : > { %1398 = vrot.lane.b32.xlu0 %v2710_v45, %s3054_s10  ;;  %v1090_v1 = vsel %vm3174_vm2, %v1088_v0, %v1089_v41  ;;  %v1486_v4 = vsel %vm1484_vm8, %v1469_v3, %v3643_v21  ;;  %v1488_v21 = vsel %vm1484_vm8, %v1471_v22, %v3632_v10  ;;  %v1838_v17 = vsel %vm1623_vm12, %v2986_v19, 0  ;;  %2910 = vmatprep.subr.msk.bf16.mxu1 %vm1623_vm12, %v2986_v19  ;;  %v3004_v3 = vld [vmem:[%s3115_s24 + $0x24] sm:$0xf] }
  0xad   : > { %v2718_v5 = vcombine.low %v1087_v61, %v1090_v1  ;;  %v1503_v8 = vsel %vm1501_vm9, %v1486_v4, %v1267_v58  ;;  %v1389_v27 = vpop.permute.xlu1 %1388  ;;  %v1505_v10 = vsel %vm1501_vm9, %v1488_v21, %v1269_v63  ;;  %2848 = vmatpush3.bf16.msra.mxu1 %v1838_v17  ;;  %v2050_v34 = vsel %vm1623_vm12, %v2996_v38, 0 }
  0xae   : > { %v1520_v32 = vsel %vm1518_vm10, %v1503_v8, %v3697_v29  ;;  %v1625_v29 = vsel %vm1623_vm12, %v2985_v33, 0  ;;  %2887 = vmatprep.subr.bf16.mxu1 %v2993_v14  ;;  %v1522_v25 = vsel %vm1518_vm10, %v1505_v10, %v3741_v20  ;;  %v2994_v20 = vld [vmem:[%s4126_s2 + $0x8] sm:$0xff]   ;;  %v2263_v62 = vsel %vm1623_vm12, %v2997_v51, 0 }
  0xaf   : > { %1440 = vrot.lane.b32.xlu1 %v2719_v49, %s3055_s20  ;;  %v1537_v16 = vsel %vm1535_vm11, %v1520_v32, %v3681_v39  ;;  %2826 = vmatpush3.bf16.msra.mxu0 %v1625_v29  ;;  %v1539_v37 = vsel %vm1535_vm11, %v1522_v25, %v3670_v54  ;;  %v2650_v30 = vcombine.low %v3002_v57, %v3003_v60 }
  0xb0   : > { %1438 = vrot.lane.b32.xlu0 %v2718_v5, %s3055_s20  ;;  %v1387_v48 = vpop.permute.xlu0 %1386  ;;  %2865 = vmatprep.subr.bf16.mxu0 %v2992_v18  ;;  %v1556_v40 = vsel %vm1552_vm13, %v1539_v37, %v1389_v27  ;;  %v2651_v7 = vcombine.low %v3004_v3, %v3005_v53 }
  0xb1   : > { %v1554_v35 = vsel %vm1552_vm13, %v1537_v16, %v1387_v48 }
  0xb4   : > { %v1427_v39 = vpop.permute.xlu0 %1426  ;;  %v1151_v36 = vpop.permute.xlu1 %1150 }
  0xb5   : > { %v3813_v52 = vsel %vm1569_vm14, %v1554_v35, %v1427_v39  ;;  %v1451_v63 = vsel %vm1442_vm6, %v2650_v30, %v1151_v36 }
  0xb6   : > { %2827 = vmatprep.mubr.msk.bf16.mxu0 %vm1606_vm15, %v3813_v52  ;;  %2849 = vmatprep.mubr.msk.bf16.mxu1 %vm1606_vm15, %v3813_v52 }
  0xba   : > { %v1429_v13 = vpop.permute.xlu0 %1428 }
  0xbb   : > { %v1153_v15 = vpop.permute.xlu1 %1152  ;;  %v3829_v46 = vsel %vm1569_vm14, %v1556_v40, %v1429_v13  ;;  %v3006_v13 = vld [vmem:[%s3115_s24 + $0x30] sm:$0xf] }
  0xbc   : > { %2828 = vmatmul.mubr.msk.bf16.vlgmr.msra.gmra.mrb[0].mxu0 %vm1606_vm15, %v3829_v46  ;;  %2850 = vmatmul.mubr.msk.bf16.vlgmr.msra.gmra.mrb[0].mxu1 %vm1606_vm15, %v3829_v46  ;;  %v1454_v5 = vsel %vm1442_vm6, %v2651_v7, %v1153_v15 }
  0xbd   : > { %2866 = vmatpush3.bf16.msra.mxu0 %v2992_v18  ;;  %2888 = vmatpush3.bf16.msra.mxu1 %v2993_v14 }
  0xbe   : > { %v1191_v54 = vpop.permute.xlu0 %1190  ;;  %2867 = vmatprep.subr.bf16.mxu0 %v2994_v20  ;;  %2889 = vmatprep.subr.bf16.mxu1 %v2995_v43 }
  0xbf   : > { %v1193_v12 = vpop.permute.xlu1 %1192  ;;  %v1473_v45 = vsel %vm1467_vm7, %v1451_v63, %v1191_v54 }
  0xc0   : > { %v1475_v22 = vsel %vm1467_vm7, %v1454_v5, %v1193_v12 }
  0xc1   : > { %2868 = vmatpush3.bf16.msra.mxu0 %v2994_v20  ;;  %2890 = vmatpush3.bf16.msra.mxu1 %v2995_v43  ;;  %v3007_v20 = vld [vmem:[%s3115_s24 + $0x34] sm:$0xf]  ;;  %s2567_s24 = sshll.u32 %s4143_s13, 1 }
  0xc2   : > { %v1231_v28 = vpop.permute.xlu0 %1230  ;;  %2911 = vmatprep.subr.msk.bf16.mxu0 %vm1623_vm12, %v2996_v38  ;;  %2912 = vmatprep.subr.msk.bf16.mxu1 %vm1623_vm12, %v2997_v51  ;;  %v2652_v43 = vcombine.low %v3006_v13, %v3007_v20  ;;  %s188_s19 = sadd.s32 %s2567_s24, %s4145_s12 }
  0xc3   : > { %v1233_v41 = vpop.permute.xlu1 %1232  ;;  %v1490_v2 = vsel %vm1484_vm8, %v1473_v45, %v1231_v28  ;;  %s2568_s20 = sshll.u32 %s188_s19, 1 }
  0xc4   : > { %v1492_v32 = vsel %vm1484_vm8, %v1475_v22, %v1233_v41  ;;  %s190_s23 = scalar_lea.vmem %s4127_s3, %s2568_s20 }
  0xc5   : > { %2870 = vmatpush3.bf16.msra.mxu0 %v2050_v34  ;;  %2892 = vmatpush3.bf16.msra.mxu1 %v2263_v62  ;;  %v2653_v62 = vcombine.low %v3459_v47, %v3465_v59 }
  0xc7   : > { %v1273_v11 = vpop.permute.xlu1 %1272 }
  0xc8   : > { %v1271_v56 = vpop.permute.xlu0 %1270  ;;  %v1509_v21 = vsel %vm1501_vm9, %v1492_v32, %v1273_v11 }
  0xc9   : > { %v1507_v31 = vsel %vm1501_vm9, %v1490_v2, %v1271_v56 }
  0xcb   : > { %v1313_v26 = vpop.permute.xlu1 %1312 }
  0xcc   : > { %v1311_v44 = vpop.permute.xlu0 %1310  ;;  %v1526_v27 = vsel %vm1518_vm10, %v1509_v21, %v1313_v26 }
  0xcd   : > { %v1524_v33 = vsel %vm1518_vm10, %v1507_v31, %v1311_v44 }
  0xcf   : > { %v1353_v49 = vpop.permute.xlu1 %1352 }
  0xd0   : > { %v1351_v61 = vpop.permute.xlu0 %1350  ;;  %v1543_v18 = vsel %vm1535_vm11, %v1526_v27, %v1353_v49 }
  0xd1   : > { %v1541_v1 = vsel %vm1535_vm11, %v1524_v33, %v1351_v61 }
  0xd3   : > { %v1393_v0 = vpop.permute.xlu1 %1392 }
  0xd4   : > { %v1391_v58 = vpop.permute.xlu0 %1390  ;;  %v1560_v14 = vsel %vm1552_vm13, %v1543_v18, %v1393_v0 }
  0xd5   : > { %v1558_v4 = vsel %vm1552_vm13, %v1541_v1, %v1391_v58 }
  0xd8   : > { %v1431_v19 = vpop.permute.xlu0 %1430 }
  0xd9   : > { %v1155_v6 = vpop.permute.xlu1 %1154  ;;  %v3858_v8 = vsel %vm1569_vm14, %v1558_v4, %v1431_v19 }
  0xda   : > { %2831 = vmatprep.mubr.msk.bf16.mxu0 %vm1606_vm15, %v3858_v8  ;;  %2853 = vmatprep.mubr.msk.bf16.mxu1 %vm1606_vm15, %v3858_v8  ;;  %v1457_v38 = vsel %vm1442_vm6, %v2652_v43, %v1155_v6 }
  0xdf   : > { %v1157_v48 = vpop.permute.xlu1 %1156  ;;  %v1433_v29 = vpop.permute.xlu0 %1432 }
  0xe0   : > { %v3871_v17 = vsel %vm1569_vm14, %v1560_v14, %v1433_v29  ;;  %v1460_v57 = vsel %vm1442_vm6, %v2653_v62, %v1157_v48 }
  0xe1   : > { %2832 = vmatmul.mubr.msk.bf16.gmra.mrb[4].mxu0 %vm1606_vm15, %v3871_v17  ;;  %2854 = vmatmul.mubr.msk.bf16.gmra.mrb[4].mxu1 %vm1606_vm15, %v3871_v17 }
  0xe3   : > { %v1197_v10 = vpop.permute.xlu1 %1196  ;;  %v1195_v16 = vpop.permute.xlu0 %1194 }
  0xe4   : > { %v1477_v51 = vsel %vm1467_vm7, %v1457_v38, %v1195_v16  ;;  %v1479_v49 = vsel %vm1467_vm7, %v1460_v57, %v1197_v10 }
  0xe7   : > { %v1237_v25 = vpop.permute.xlu1 %1236  ;;  %v1235_v35 = vpop.permute.xlu0 %1234 }
  0xe8   : > { %v1494_v28 = vsel %vm1484_vm8, %v1477_v51, %v1235_v35  ;;  %v1496_v47 = vsel %vm1484_vm8, %v1479_v49, %v1237_v25 }
  0xec   : > { %v1277_v39 = vpop.permute.xlu1 %1276 }
  0xed   : > { %v1275_v36 = vpop.permute.xlu0 %1274  ;;  %v1513_v59 = vsel %vm1501_vm9, %v1496_v47, %v1277_v39 }
  0xee   : > { %v1511_v41 = vsel %vm1501_vm9, %v1494_v28, %v1275_v36 }
  0xf0   : > { %v1317_v37 = vpop.permute.xlu1 %1316 }
  0xf1   : > { %v1315_v40 = vpop.permute.xlu0 %1314  ;;  %v1530_v61 = vsel %vm1518_vm10, %v1513_v59, %v1317_v37 }
  0xf2   : > { %v1528_v11 = vsel %vm1518_vm10, %v1511_v41, %v1315_v40 }
  0xf4   : > { %v1357_v15 = vpop.permute.xlu1 %1356 }
  0xf5   : > { %v1355_v54 = vpop.permute.xlu0 %1354  ;;  %v1547_v63 = vsel %vm1535_vm11, %v1530_v61, %v1357_v15 }
  0xf6   : > { %v1545_v56 = vsel %vm1535_vm11, %v1528_v11, %v1355_v54 }
  0xf8   : > { %v1397_v12 = vpop.permute.xlu1 %1396 }
  0xf9   : > { %v1395_v34 = vpop.permute.xlu0 %1394  ;;  %v1564_v45 = vsel %vm1552_vm13, %v1547_v63, %v1397_v12 }
  0xfa   : > { %v1562_v26 = vsel %vm1552_vm13, %v1545_v56, %v1395_v34 }
  0xfd   : > { %v1435_v44 = vpop.permute.xlu0 %1434 }
  0xfe   : > { %v1159_v60 = vpop.permute.xlu1 %1158  ;;  %v1579_v30 = vsel %vm1569_vm14, %v1562_v26, %v1435_v44 }
  0xff   : > { %2835 = vmatprep.mubr.msk.bf16.mxu0 %vm1606_vm15, %v1579_v30  ;;  %2857 = vmatprep.mubr.msk.bf16.mxu1 %vm1606_vm15, %v1579_v30  ;;  %v1463_v32 = vsel %vm1442_vm6, %v2654_v23, %v1159_v60 }
 0x104   : > { %v1161_v0 = vpop.permute.xlu1 %1160  ;;  %v1437_v2 = vpop.permute.xlu0 %1436 }
 0x105   : > { %v1581_v58 = vsel %vm1569_vm14, %v1564_v45, %v1437_v2  ;;  %v1466_v22 = vsel %vm1442_vm6, %v2655_v24, %v1161_v0 }
 0x106   : > { %2836 = vmatmul.mubr.msk.bf16.gmra.mrb[8].mxu0 %vm1606_vm15, %v1581_v58  ;;  %2858 = vmatmul.mubr.msk.bf16.gmra.mrb[8].mxu1 %vm1606_vm15, %v1581_v58 }
 0x108   : > { %v1201_v3 = vpop.permute.xlu1 %1200  ;;  %v1199_v53 = vpop.permute.xlu0 %1198 }
 0x109   : > { %v1483_v21 = vsel %vm1467_vm7, %v1466_v22, %v1201_v3  ;;  %v1481_v27 = vsel %vm1467_vm7, %v1463_v32, %v1199_v53 }
 0x10c   : > { %v1241_v7 = vpop.permute.xlu1 %1240  ;;  %v1239_v31 = vpop.permute.xlu0 %1238 }
 0x10d   : > { %v1500_v18 = vsel %vm1484_vm8, %v1483_v21, %v1241_v7  ;;  %v1498_v48 = vsel %vm1484_vm8, %v1481_v27, %v1239_v31 }
 0x111   : > { %v1281_v33 = vpop.permute.xlu1 %1280 }
 0x112   : > { %v1279_v1 = vpop.permute.xlu0 %1278  ;;  %v1517_v29 = vsel %vm1501_vm9, %v1500_v18, %v1281_v33 }
 0x113   : > { %v1515_v42 = vsel %vm1501_vm9, %v1498_v48, %v1279_v1 }
 0x115   : > { %v1321_v4 = vpop.permute.xlu1 %1320 }
 0x116   : > { %v1319_v19 = vpop.permute.xlu0 %1318  ;;  %v1534_v50 = vsel %vm1518_vm10, %v1517_v29, %v1321_v4 }
 0x117   : > { %v1532_v55 = vsel %vm1518_vm10, %v1515_v42, %v1319_v19 }
 0x119   : > { %v1361_v5 = vpop.permute.xlu1 %1360 }
 0x11a   : > { %v1359_v6 = vpop.permute.xlu0 %1358  ;;  %v1551_v9 = vsel %vm1535_vm11, %v1534_v50, %v1361_v5 }
 0x11b   : > { %v1549_v23 = vsel %vm1535_vm11, %v1532_v55, %v1359_v6 }
 0x11d   : > { %v1401_v14 = vpop.permute.xlu1 %1400 }
 0x11e   : > { %v1399_v10 = vpop.permute.xlu0 %1398  ;;  %v1568_v24 = vsel %vm1552_vm13, %v1551_v9, %v1401_v14 }
 0x11f   : > { %v1566_v25 = vsel %vm1552_vm13, %v1549_v23, %v1399_v10 }
 0x121   : > { %v1441_v16 = vpop.permute.xlu1 %1440 }
 0x122   : > { %v1585_v35 = vsel %vm1569_vm14, %v1568_v24, %v1441_v16  ;;  %v1439_v39 = vpop.permute.xlu0 %1438 }
 0x123   : > { %v1583_v36 = vsel %vm1569_vm14, %v1566_v25, %v1439_v39 }
 0x124   : > { %2839 = vmatprep.mubr.msk.bf16.mxu0 %vm1606_vm15, %v1583_v36  ;;  %2861 = vmatprep.mubr.msk.bf16.mxu1 %vm1606_vm15, %v1583_v36 }
 0x125   : > { %2840 = vmatmul.mubr.msk.bf16.gmra.mrb[12].mxu0 %vm1606_vm15, %v1585_v35  ;;  %2862 = vmatmul.mubr.msk.bf16.gmra.mrb[12].mxu1 %vm1606_vm15, %v1585_v35 }
 0x126   : > { %2871 = vmatprep.mubr.msk.bf16.mxu0 %vm1606_vm15, %v3813_v52  ;;  %2893 = vmatprep.mubr.msk.bf16.mxu1 %vm1606_vm15, %v3813_v52 }
 0x12d   : > { %2872 = vmatmul.mubr.msk.bf16.vlgmr.msra.gmra.mrb[16].mxu0 %vm1606_vm15, %v3829_v46  ;;  %2894 = vmatmul.mubr.msk.bf16.vlgmr.msra.gmra.mrb[16].mxu1 %vm1606_vm15, %v3829_v46 }
 0x12e   : > { %2875 = vmatprep.mubr.msk.bf16.mxu0 %vm1606_vm15, %v3858_v8  ;;  %2897 = vmatprep.mubr.msk.bf16.mxu1 %vm1606_vm15, %v3858_v8 }
 0x135   : > { %2876 = vmatmul.mubr.msk.bf16.gmra.mrb[20].mxu0 %vm1606_vm15, %v3871_v17  ;;  %2898 = vmatmul.mubr.msk.bf16.gmra.mrb[20].mxu1 %vm1606_vm15, %v3871_v17 }
 0x136   : > { %2879 = vmatprep.mubr.msk.bf16.mxu0 %vm1606_vm15, %v1579_v30  ;;  %2901 = vmatprep.mubr.msk.bf16.mxu1 %vm1606_vm15, %v1579_v30 }
 0x13d   : > { %2880 = vmatmul.mubr.msk.bf16.gmra.mrb[24].mxu0 %vm1606_vm15, %v1581_v58  ;;  %2902 = vmatmul.mubr.msk.bf16.gmra.mrb[24].mxu1 %vm1606_vm15, %v1581_v58 }
 0x13e   : > { %2883 = vmatprep.mubr.msk.bf16.mxu0 %vm1606_vm15, %v1583_v36  ;;  %2905 = vmatprep.mubr.msk.bf16.mxu1 %vm1606_vm15, %v1583_v36 }
 0x145   : > { %2884 = vmatmul.mubr.msk.bf16.gmra.mrb[28].mxu0 %vm1606_vm15, %v1585_v35  ;;  %2906 = vmatmul.mubr.msk.bf16.gmra.mrb[28].mxu1 %vm1606_vm15, %v1585_v35 }
 0x18f   : > { %v2829_v52 = vpop.f32.mrb[0].mxu0  ;;  %v2851_v46 = vpop.f32.mrb[0].mxu1 }
 0x190   : > { %v1661_v8 = vpop.f32.mrb[1].mxu0  ;;  %v1874_v17 = vpop.f32.mrb[1].mxu1  ;;  %v1727_v13 = vsel %vm1467_vm7, %v2829_v52, 0.0  ;;  %v1764_v38 = vmul.f32 %v2829_v52, %v2829_v52  ;;  %v1940_v51 = vsel %vm1467_vm7, %v2851_v46, 0.0  ;;  %v1977_v12 = vmul.f32 %v2851_v46, %v2851_v46 }
 0x191   : > { %v2830_v37 = vpop.f32.mrb[2].mxu0  ;;  %v2852_v40 = vpop.f32.mrb[2].mxu1  ;;  %v1762_v20 = vmul.f32 %v1661_v8, %v1661_v8  ;;  %v1975_v43 = vmul.f32 %v1874_v17, %v1874_v17  ;;  %v1724_v28 = vsel %vm1467_vm7, %v1661_v8, 0.0  ;;  %v1937_v34 = vsel %vm1467_vm7, %v1874_v17, 0.0 }
 0x192   : > { %v1664_v15 = vpop.f32.mrb[3].mxu0  ;;  %v1877_v54 = vpop.f32.mrb[3].mxu1  ;;  %v1765_v56 = vmul.f32 %v2830_v37, %v2830_v37  ;;  %v1978_v49 = vmul.f32 %v2852_v40, %v2852_v40  ;;  %v1781_v0 = vsel %vm1467_vm7, %v1764_v38, 0.0  ;;  %v1729_v2 = vsel %vm1467_vm7, %v2830_v37, 0.0 }
 0x193   : > { %v1725_v62 = vsel %vm1467_vm7, %v1664_v15, 0.0  ;;  %v1763_v41 = vmul.f32 %v1664_v15, %v1664_v15  ;;  %v1938_v11 = vsel %vm1467_vm7, %v1877_v54, 0.0  ;;  %v1976_v57 = vmul.f32 %v1877_v54, %v1877_v54 }
 0x194   : > { %v1726_v26 = vadd.f32 %v1725_v62, %v1724_v28  ;;  %v1939_v44 = vadd.f32 %v1938_v11, %v1937_v34  ;;  %v1778_v60 = vsel %vm1467_vm7, %v1762_v20, 0.0  ;;  %v1991_v30 = vsel %vm1467_vm7, %v1975_v43, 0.0 }
 0x195   : > { %v1779_v47 = vsel %vm1467_vm7, %v1763_v41, 0.0  ;;  %v1992_v45 = vsel %vm1467_vm7, %v1976_v57, 0.0  ;;  %v1942_v58 = vsel %vm1467_vm7, %v2852_v40, 0.0  ;;  %v1994_v53 = vsel %vm1467_vm7, %v1977_v12, 0.0 }
 0x196   : > { %v1728_v59 = vadd.f32 %v1727_v13, %v1726_v26  ;;  %v1780_v61 = vadd.f32 %v1779_v47, %v1778_v60  ;;  %v1941_v63 = vadd.f32 %v1940_v51, %v1939_v44  ;;  %v1993_v3 = vadd.f32 %v1992_v45, %v1991_v30 }
 0x197   : > { %v1783_v1 = vsel %vm1467_vm7, %v1765_v56, 0.0  ;;  %v1996_v19 = vsel %vm1467_vm7, %v1978_v49, 0.0 }
 0x198   : > { %v1782_v7 = vadd.f32 %v1781_v0, %v1780_v61  ;;  %v1730_v31 = vadd.f32 %v1729_v2, %v1728_v59  ;;  %v1943_v33 = vadd.f32 %v1942_v58, %v1941_v63  ;;  %v1995_v4 = vadd.f32 %v1994_v53, %v1993_v3 }
 0x19a   : > { %v1784_v5 = vadd.f32 %v1783_v1, %v1782_v7  ;;  %v1997_v6 = vadd.f32 %v1996_v19, %v1995_v4 }
 0x1b4   : > { %v2833_v22 = vpop.f32.mrb[4].mxu0  ;;  %v2855_v32 = vpop.f32.mrb[4].mxu1 }
 0x1b5   : > { %v1677_v21 = vpop.f32.mrb[5].mxu0  ;;  %v1890_v27 = vpop.f32.mrb[5].mxu1  ;;  %v1735_v25 = vsel %vm1467_vm7, %v2833_v22, 0.0  ;;  %v1768_v36 = vmul.f32 %v2833_v22, %v2833_v22  ;;  %v1981_v17 = vmul.f32 %v2855_v32, %v2855_v32  ;;  %v1948_v20 = vsel %vm1467_vm7, %v2855_v32, 0.0 }
 0x1b6   : > { %v1731_v18 = vsel %vm1467_vm7, %v1677_v21, 0.0  ;;  %v1766_v14 = vmul.f32 %v1677_v21, %v1677_v21  ;;  %v1944_v48 = vsel %vm1467_vm7, %v1890_v27, 0.0  ;;  %v1979_v29 = vmul.f32 %v1890_v27, %v1890_v27  ;;  %v2834_v10 = vpop.f32.mrb[6].mxu0  ;;  %v2856_v42 = vpop.f32.mrb[6].mxu1 }
 0x1b7   : > { %v1732_v50 = vadd.f32 %v1731_v18, %v1730_v31  ;;  %v1945_v55 = vadd.f32 %v1944_v48, %v1943_v33  ;;  %v1680_v9 = vpop.f32.mrb[7].mxu0  ;;  %v1893_v23 = vpop.f32.mrb[7].mxu1  ;;  %v1769_v43 = vmul.f32 %v2834_v10, %v2834_v10  ;;  %v1982_v15 = vmul.f32 %v2856_v42, %v2856_v42 }
 0x1b8   : > { %v1785_v24 = vsel %vm1467_vm7, %v1766_v14, 0.0  ;;  %v1998_v16 = vsel %vm1467_vm7, %v1979_v29, 0.0  ;;  %v1733_v52 = vsel %vm1467_vm7, %v1680_v9, 0.0  ;;  %v1767_v46 = vmul.f32 %v1680_v9, %v1680_v9 }
 0x1b9   : > { %v1786_v35 = vadd.f32 %v1785_v24, %v1784_v5  ;;  %v1999_v39 = vadd.f32 %v1998_v16, %v1997_v6  ;;  %v1946_v8 = vsel %vm1467_vm7, %v1893_v23, 0.0  ;;  %v1734_v37 = vadd.f32 %v1733_v52, %v1732_v50 }
 0x1ba   : > { %v1947_v40 = vadd.f32 %v1946_v8, %v1945_v55  ;;  %v1980_v13 = vmul.f32 %v1893_v23, %v1893_v23  ;;  %v1787_v54 = vsel %vm1467_vm7, %v1767_v46, 0.0  ;;  %v1789_v34 = vsel %vm1467_vm7, %v1768_v36, 0.0 }
 0x1bb   : > { %v1736_v38 = vadd.f32 %v1735_v25, %v1734_v37  ;;  %v1788_v51 = vadd.f32 %v1787_v54, %v1786_v35  ;;  %v1737_v62 = vsel %vm1467_vm7, %v2834_v10, 0.0  ;;  %v1950_v41 = vsel %vm1467_vm7, %v2856_v42, 0.0 }
 0x1bc   : > { %v1949_v12 = vadd.f32 %v1948_v20, %v1947_v40  ;;  %v2000_v28 = vsel %vm1467_vm7, %v1980_v13, 0.0  ;;  %v2002_v56 = vsel %vm1467_vm7, %v1981_v17, 0.0  ;;  %v1791_v60 = vsel %vm1467_vm7, %v1769_v43, 0.0 }
 0x1bd   : > { %v2001_v11 = vadd.f32 %v2000_v28, %v1999_v39  ;;  %v1790_v26 = vadd.f32 %v1789_v34, %v1788_v51  ;;  %v1738_v44 = vadd.f32 %v1737_v62, %v1736_v38  ;;  %v2004_v49 = vsel %vm1467_vm7, %v1982_v15, 0.0 }
 0x1be   : > { %v1951_v57 = vadd.f32 %v1950_v41, %v1949_v12 }
 0x1bf   : > { %v2003_v30 = vadd.f32 %v2002_v56, %v2001_v11  ;;  %v1792_v47 = vadd.f32 %v1791_v60, %v1790_v26 }
 0x1c1   : > { %v2005_v59 = vadd.f32 %v2004_v49, %v2003_v30 }
 0x1d9   : > { %v2837_v61 = vpop.f32.mrb[8].mxu0  ;;  %v2859_v63 = vpop.f32.mrb[8].mxu1 }
 0x1da   : > { %v1693_v45 = vpop.f32.mrb[9].mxu0  ;;  %v1906_v0 = vpop.f32.mrb[9].mxu1  ;;  %v1743_v22 = vsel %vm1467_vm7, %v2837_v61, 0.0  ;;  %v1772_v27 = vmul.f32 %v2837_v61, %v2837_v61  ;;  %v1985_v29 = vmul.f32 %v2859_v63, %v2859_v63  ;;  %v1956_v55 = vsel %vm1467_vm7, %v2859_v63, 0.0 }
 0x1db   : > { %v1739_v2 = vsel %vm1467_vm7, %v1693_v45, 0.0  ;;  %v1770_v58 = vmul.f32 %v1693_v45, %v1693_v45  ;;  %v1952_v3 = vsel %vm1467_vm7, %v1906_v0, 0.0  ;;  %v1983_v53 = vmul.f32 %v1906_v0, %v1906_v0  ;;  %v2838_v7 = vpop.f32.mrb[10].mxu0  ;;  %v2860_v31 = vpop.f32.mrb[10].mxu1 }
 0x1dc   : > { %v1740_v33 = vadd.f32 %v1739_v2, %v1738_v44  ;;  %v1953_v1 = vadd.f32 %v1952_v3, %v1951_v57  ;;  %v1696_v4 = vpop.f32.mrb[11].mxu0  ;;  %v1909_v19 = vpop.f32.mrb[11].mxu1  ;;  %v1773_v9 = vmul.f32 %v2838_v7, %v2838_v7  ;;  %v1986_v23 = vmul.f32 %v2860_v31, %v2860_v31 }
 0x1dd   : > { %v1793_v5 = vsel %vm1467_vm7, %v1770_v58, 0.0  ;;  %v2006_v6 = vsel %vm1467_vm7, %v1983_v53, 0.0  ;;  %v1741_v18 = vsel %vm1467_vm7, %v1696_v4, 0.0  ;;  %v1771_v14 = vmul.f32 %v1696_v4, %v1696_v4 }
 0x1de   : > { %v1794_v32 = vadd.f32 %v1793_v5, %v1792_v47  ;;  %v2007_v21 = vadd.f32 %v2006_v6, %v2005_v59  ;;  %v1954_v48 = vsel %vm1467_vm7, %v1909_v19, 0.0  ;;  %v1742_v10 = vadd.f32 %v1741_v18, %v1740_v33 }
 0x1df   : > { %v1955_v42 = vadd.f32 %v1954_v48, %v1953_v1  ;;  %v1984_v50 = vmul.f32 %v1909_v19, %v1909_v19  ;;  %v1795_v24 = vsel %vm1467_vm7, %v1771_v14, 0.0  ;;  %v1797_v36 = vsel %vm1467_vm7, %v1772_v27, 0.0 }
 0x1e0   : > { %v1744_v16 = vadd.f32 %v1743_v22, %v1742_v10  ;;  %v1796_v25 = vadd.f32 %v1795_v24, %v1794_v32  ;;  %v1745_v52 = vsel %vm1467_vm7, %v2838_v7, 0.0  ;;  %v1958_v46 = vsel %vm1467_vm7, %v2860_v31, 0.0 }
 0x1e1   : > { %v1957_v35 = vadd.f32 %v1956_v55, %v1955_v42  ;;  %v2008_v39 = vsel %vm1467_vm7, %v1984_v50, 0.0  ;;  %v2010_v17 = vsel %vm1467_vm7, %v1985_v29, 0.0  ;;  %v1799_v20 = vsel %vm1467_vm7, %v1773_v9, 0.0 }
 0x1e2   : > { %v2009_v8 = vadd.f32 %v2008_v39, %v2007_v21  ;;  %v1798_v37 = vadd.f32 %v1797_v36, %v1796_v25  ;;  %v1746_v40 = vadd.f32 %v1745_v52, %v1744_v16  ;;  %v2012_v15 = vsel %vm1467_vm7, %v1986_v23, 0.0 }
 0x1e3   : > { %v1959_v13 = vadd.f32 %v1958_v46, %v1957_v35 }
 0x1e4   : > { %v2011_v43 = vadd.f32 %v2010_v17, %v2009_v8  ;;  %v1800_v54 = vadd.f32 %v1799_v20, %v1798_v37 }
 0x1e6   : > { %v2013_v38 = vadd.f32 %v2012_v15, %v2011_v43 }
 0x1f8   : > { %v2841_v51 = vpop.f32.mrb[12].mxu0  ;;  %v2863_v12 = vpop.f32.mrb[12].mxu1 }
 0x1f9   : > { %v1776_v28 = vmul.f32 %v2841_v51, %v2841_v51  ;;  %v1989_v34 = vmul.f32 %v2863_v12, %v2863_v12  ;;  %v1709_v62 = vpop.f32.mrb[13].mxu0  ;;  %v1922_v41 = vpop.f32.mrb[13].mxu1  ;;  %v1751_v30 = vsel %vm1467_vm7, %v2841_v51, 0.0  ;;  %v1964_v63 = vsel %vm1467_vm7, %v2863_v12, 0.0 }
 0x1fa   : > { %v1747_v11 = vsel %vm1467_vm7, %v1709_v62, 0.0  ;;  %v1774_v56 = vmul.f32 %v1709_v62, %v1709_v62  ;;  %v1960_v26 = vsel %vm1467_vm7, %v1922_v41, 0.0  ;;  %v1987_v44 = vmul.f32 %v1922_v41, %v1922_v41  ;;  %v2842_v57 = vpop.f32.mrb[14].mxu0  ;;  %v2864_v60 = vpop.f32.mrb[14].mxu1 }
 0x1fb   : > { %v1748_v49 = vadd.f32 %v1747_v11, %v1746_v40  ;;  %v1961_v47 = vadd.f32 %v1960_v26, %v1959_v13  ;;  %v1712_v59 = vpop.f32.mrb[15].mxu0  ;;  %v1925_v61 = vpop.f32.mrb[15].mxu1  ;;  %v1777_v2 = vmul.f32 %v2842_v57, %v2842_v57  ;;  %v1805_v58 = vsel %vm1467_vm7, %v1776_v28, 0.0 }
 0x1fc   : > { %v1801_v45 = vsel %vm1467_vm7, %v1774_v56, 0.0  ;;  %v2014_v0 = vsel %vm1467_vm7, %v1987_v44, 0.0  ;;  %v1990_v7 = vmul.f32 %v2864_v60, %v2864_v60  ;;  %v2018_v31 = vsel %vm1467_vm7, %v1989_v34, 0.0 }
 0x1fd   : > { %v1802_v3 = vadd.f32 %v1801_v45, %v1800_v54  ;;  %v2015_v53 = vadd.f32 %v2014_v0, %v2013_v38  ;;  %v1749_v33 = vsel %vm1467_vm7, %v1712_v59, 0.0  ;;  %v1775_v1 = vmul.f32 %v1712_v59, %v1712_v59 }
 0x1fe   : > { %v1962_v4 = vsel %vm1467_vm7, %v1925_v61, 0.0  ;;  %v1753_v19 = vsel %vm1467_vm7, %v2842_v57, 0.0  ;;  %v1750_v5 = vadd.f32 %v1749_v33, %v1748_v49  ;;  %v1988_v22 = vmul.f32 %v1925_v61, %v1925_v61 }
 0x1ff   : > { %v1963_v6 = vadd.f32 %v1962_v4, %v1961_v47  ;;  %v1807_v32 = vsel %vm1467_vm7, %v1777_v2, 0.0  ;;  %v1966_v21 = vsel %vm1467_vm7, %v2864_v60, 0.0  ;;  %v2020_v27 = vsel %vm1467_vm7, %v1990_v7, 0.0 }
 0x200   : > { %v1803_v18 = vsel %vm1467_vm7, %v1775_v1, 0.0  ;;  %v2873_v14 = vpop.f32.mrb[16].mxu0  ;;  %v2895_v48 = vpop.f32.mrb[16].mxu1  ;;  %v1752_v29 = vadd.f32 %v1751_v30, %v1750_v5  ;;  %v2016_v50 = vsel %vm1467_vm7, %v1988_v22, 0.0 }
 0x201   : > { %v1804_v10 = vadd.f32 %v1803_v18, %v1802_v3  ;;  %v1965_v42 = vadd.f32 %v1964_v63, %v1963_v6  ;;  %v2086_v55 = vpop.f32.mrb[17].mxu0  ;;  %v2299_v9 = vpop.f32.mrb[17].mxu1  ;;  %v2017_v23 = vadd.f32 %v2016_v50, %v2015_v53  ;;  %v2152_v24 = vsel %vm1467_vm7, %v2873_v14, 0.0 }
 0x202   : > { %v2189_v16 = vmul.f32 %v2873_v14, %v2873_v14  ;;  %v2365_v25 = vsel %vm1467_vm7, %v2895_v48, 0.0  ;;  %v2874_v35 = vpop.f32.mrb[18].mxu0  ;;  %v2896_v39 = vpop.f32.mrb[18].mxu1  ;;  %v1754_v36 = vadd.f32 %v1753_v19, %v1752_v29  ;;  %v2402_v8 = vmul.f32 %v2895_v48, %v2895_v48 }
 0x203   : > { %v1806_v52 = vadd.f32 %v1805_v58, %v1804_v10  ;;  %v1967_v46 = vadd.f32 %v1966_v21, %v1965_v42  ;;  %v2089_v17 = vpop.f32.mrb[19].mxu0  ;;  %v2302_v37 = vpop.f32.mrb[19].mxu1  ;;  %v2019_v40 = vadd.f32 %v2018_v31, %v2017_v23  ;;  %v2149_v20 = vsel %vm1467_vm7, %v2086_v55, 0.0 }
 0x204   : > { %v2206_v13 = vsel %vm1467_vm7, %v2189_v16, 0.0  ;;  %v2187_v43 = vmul.f32 %v2086_v55, %v2086_v55  ;;  %v1755_v15 = vrot.slane %v1754_v36, 4  ;;  %v2419_v51 = vsel %vm1467_vm7, %v2402_v8, 0.0 }
 0x205   : > { %v1808_v54 = vadd.f32 %v1807_v32, %v1806_v52  ;;  %v1968_v38 = vrot.slane %v1967_v46, 4  ;;  %v2021_v12 = vadd.f32 %v2020_v27, %v2019_v40  ;;  %v2362_v34 = vsel %vm1467_vm7, %v2299_v9, 0.0 }
 0x206   : > { %v2203_v28 = vsel %vm1467_vm7, %v2187_v43, 0.0  ;;  %v2400_v62 = vmul.f32 %v2299_v9, %v2299_v9  ;;  %v4022_v41 = vadd.f32 %v1755_v15, %v1754_v36  ;;  %v2154_v26 = vsel %vm1467_vm7, %v2874_v35, 0.0 }
 0x207   : > { %v1809_v11 = vrot.slane %v1808_v54, 4  ;;  %v4024_v56 = vadd.f32 %v1968_v38, %v1967_v46  ;;  %v2022_v44 = vrot.slane %v2021_v12, 4  ;;  %v2190_v60 = vmul.f32 %v2874_v35, %v2874_v35 }
 0x208   : > { %v2416_v57 = vsel %vm1467_vm7, %v2400_v62, 0.0  ;;  %v2367_v30 = vsel %vm1467_vm7, %v2896_v39, 0.0  ;;  %v2877_v49 = vpop.f32.mrb[20].mxu0  ;;  %v2899_v47 = vpop.f32.mrb[20].mxu1  ;;  %v1757_v59 = vrot.slane %v4022_v41, 2  ;;  %v2403_v45 = vmul.f32 %v2896_v39, %v2896_v39 }
 0x209   : > { %v4030_v61 = vadd.f32 %v1809_v11, %v1808_v54  ;;  %v1970_v63 = vrot.slane %v4024_v56, 2  ;;  %v2102_v0 = vpop.f32.mrb[21].mxu0  ;;  %v2315_v2 = vpop.f32.mrb[21].mxu1  ;;  %v4033_v58 = vadd.f32 %v2022_v44, %v2021_v12  ;;  %v2208_v3 = vsel %vm1467_vm7, %v2190_v60, 0.0 }
 0x20a   : > { %v2150_v53 = vsel %vm1467_vm7, %v2089_v17, 0.0  ;;  %v2188_v7 = vmul.f32 %v2089_v17, %v2089_v17  ;;  %v2878_v31 = vpop.f32.mrb[22].mxu0  ;;  %v2900_v33 = vpop.f32.mrb[22].mxu1  ;;  %v2421_v1 = vsel %vm1467_vm7, %v2403_v45, 0.0  ;;  %v2363_v19 = vsel %vm1467_vm7, %v2302_v37, 0.0 }
 0x20b   : > { %v2151_v4 = vadd.f32 %v2150_v53, %v2149_v20  ;;  %v2401_v5 = vmul.f32 %v2302_v37, %v2302_v37  ;;  %v2105_v6 = vpop.f32.mrb[23].mxu0  ;;  %v2318_v22 = vpop.f32.mrb[23].mxu1  ;;  %v2364_v21 = vadd.f32 %v2363_v19, %v2362_v34  ;;  %v2160_v27 = vsel %vm1467_vm7, %v2877_v49, 0.0 }
 0x20c   : > { %v2204_v32 = vsel %vm1467_vm7, %v2188_v7, 0.0  ;;  %v2193_v18 = vmul.f32 %v2877_v49, %v2877_v49  ;;  %v2373_v10 = vsel %vm1467_vm7, %v2899_v47, 0.0  ;;  %v2406_v9 = vmul.f32 %v2899_v47, %v2899_v47 }
 0x20d   : > { %v2153_v14 = vadd.f32 %v2152_v24, %v2151_v4  ;;  %v2205_v48 = vadd.f32 %v2204_v32, %v2203_v28  ;;  %v2417_v29 = vsel %vm1467_vm7, %v2401_v5, 0.0  ;;  %v2366_v42 = vadd.f32 %v2365_v25, %v2364_v21 }
 0x20e   : > { %v2418_v50 = vadd.f32 %v2417_v29, %v2416_v57  ;;  %v2214_v55 = vsel %vm1467_vm7, %v2193_v18, 0.0  ;;  %v2156_v35 = vsel %vm1467_vm7, %v2102_v0, 0.0  ;;  %v2191_v39 = vmul.f32 %v2102_v0, %v2102_v0 }
 0x20f   : > { %v2207_v23 = vadd.f32 %v2206_v13, %v2205_v48  ;;  %v2155_v16 = vadd.f32 %v2154_v26, %v2153_v14  ;;  %v2427_v52 = vsel %vm1467_vm7, %v2406_v9, 0.0  ;;  %v2368_v46 = vadd.f32 %v2367_v30, %v2366_v42 }
 0x210   : > { %v2420_v36 = vadd.f32 %v2419_v51, %v2418_v50  ;;  %v2369_v24 = vsel %vm1467_vm7, %v2315_v2, 0.0  ;;  %v2881_v8 = vpop.f32.mrb[24].mxu0  ;;  %v2903_v17 = vpop.f32.mrb[24].mxu1  ;;  %v2210_v25 = vsel %vm1467_vm7, %v2191_v39, 0.0  ;;  %v2404_v20 = vmul.f32 %v2315_v2, %v2315_v2 }
 0x211   : > { %v2157_v37 = vadd.f32 %v2156_v35, %v2155_v16  ;;  %v2209_v40 = vadd.f32 %v2208_v3, %v2207_v23  ;;  %v2118_v43 = vpop.f32.mrb[25].mxu0  ;;  %v2331_v15 = vpop.f32.mrb[25].mxu1  ;;  %v2370_v13 = vadd.f32 %v2369_v24, %v2368_v46  ;;  %v2162_v38 = vsel %vm1467_vm7, %v2878_v31, 0.0 }
 0x212   : > { %v2422_v54 = vadd.f32 %v2421_v1, %v2420_v36  ;;  %v2194_v12 = vmul.f32 %v2878_v31, %v2878_v31  ;;  %v2882_v51 = vpop.f32.mrb[26].mxu0  ;;  %v2904_v28 = vpop.f32.mrb[26].mxu1  ;;  %v2423_v62 = vsel %vm1467_vm7, %v2404_v20, 0.0  ;;  %v2375_v11 = vsel %vm1467_vm7, %v2900_v33, 0.0 }
 0x213   : > { %v2211_v34 = vadd.f32 %v2210_v25, %v2209_v40  ;;  %v2407_v26 = vmul.f32 %v2900_v33, %v2900_v33  ;;  %v2121_v44 = vpop.f32.mrb[27].mxu0  ;;  %v2334_v57 = vpop.f32.mrb[27].mxu1  ;;  %v2158_v49 = vsel %vm1467_vm7, %v2105_v6, 0.0  ;;  %v2192_v47 = vmul.f32 %v2105_v6, %v2105_v6 }
 0x214   : > { %v2424_v60 = vadd.f32 %v2423_v62, %v2422_v54  ;;  %v2216_v30 = vsel %vm1467_vm7, %v2194_v12, 0.0  ;;  %v2159_v0 = vadd.f32 %v2158_v49, %v2157_v37  ;;  %v2371_v2 = vsel %vm1467_vm7, %v2318_v22, 0.0 }
 0x215   : > { %v2429_v45 = vsel %vm1467_vm7, %v2407_v26, 0.0  ;;  %v2405_v3 = vmul.f32 %v2318_v22, %v2318_v22  ;;  %v2212_v53 = vsel %vm1467_vm7, %v2192_v47, 0.0  ;;  %v2372_v7 = vadd.f32 %v2371_v2, %v2370_v13 }
 0x216   : > { %v2168_v31 = vsel %vm1467_vm7, %v2881_v8, 0.0  ;;  %v2197_v33 = vmul.f32 %v2881_v8, %v2881_v8  ;;  %v2161_v1 = vadd.f32 %v2160_v27, %v2159_v0  ;;  %v2213_v4 = vadd.f32 %v2212_v53, %v2211_v34 }
 0x217   : > { %v2425_v19 = vsel %vm1467_vm7, %v2405_v3, 0.0  ;;  %v2381_v5 = vsel %vm1467_vm7, %v2903_v17, 0.0  ;;  %v2374_v32 = vadd.f32 %v2373_v10, %v2372_v7  ;;  %v2410_v18 = vmul.f32 %v2903_v17, %v2903_v17 }
 0x218   : > { %v2426_v6 = vadd.f32 %v2425_v19, %v2424_v60  ;;  %v2222_v21 = vsel %vm1467_vm7, %v2197_v33, 0.0  ;;  %v2885_v14 = vpop.f32.mrb[28].mxu0  ;;  %v2907_v48 = vpop.f32.mrb[28].mxu1  ;;  %v2215_v22 = vadd.f32 %v2214_v55, %v2213_v4  ;;  %v2163_v29 = vadd.f32 %v2162_v38, %v2161_v1 }
 0x219   : > { %v2164_v42 = vsel %vm1467_vm7, %v2118_v43, 0.0  ;;  %v2195_v50 = vmul.f32 %v2118_v43, %v2118_v43  ;;  %v2134_v9 = vpop.f32.mrb[29].mxu0  ;;  %v2347_v23 = vpop.f32.mrb[29].mxu1  ;;  %v2435_v16 = vsel %vm1467_vm7, %v2410_v18, 0.0  ;;  %v2376_v35 = vadd.f32 %v2375_v11, %v2374_v32 }
 0x21a   : > { %v2428_v27 = vadd.f32 %v2427_v52, %v2426_v6  ;;  %v2377_v39 = vsel %vm1467_vm7, %v2331_v15, 0.0  ;;  %v2886_v10 = vpop.f32.mrb[30].mxu0  ;;  %v2908_v36 = vpop.f32.mrb[30].mxu1  ;;  %v2165_v46 = vadd.f32 %v2164_v42, %v2163_v29  ;;  %v2217_v24 = vadd.f32 %v2216_v30, %v2215_v22 }
 0x21b   : > { %v2218_v8 = vsel %vm1467_vm7, %v2195_v50, 0.0  ;;  %v2408_v17 = vmul.f32 %v2331_v15, %v2331_v15  ;;  %v2137_v55 = vpop.f32.mrb[31].mxu0  ;;  %v2350_v37 = vpop.f32.mrb[31].mxu1  ;;  %v2378_v40 = vadd.f32 %v2377_v39, %v2376_v35  ;;  %v2170_v20 = vsel %vm1467_vm7, %v2882_v51, 0.0 }
 0x21c   : > { %v2430_v25 = vadd.f32 %v2429_v45, %v2428_v27  ;;  %v2198_v43 = vmul.f32 %v2882_v51, %v2882_v51  ;;  %v2219_v52 = vadd.f32 %v2218_v8, %v2217_v24  ;;  %v2383_v54 = vsel %vm1467_vm7, %v2904_v28, 0.0 }
 0x21d   : > { %v2431_v13 = vsel %vm1467_vm7, %v2408_v17, 0.0  ;;  %v2411_v38 = vmul.f32 %v2904_v28, %v2904_v28  ;;  %v2166_v62 = vsel %vm1467_vm7, %v2121_v44, 0.0  ;;  %v2196_v11 = vmul.f32 %v2121_v44, %v2121_v44 }
 0x21e   : > { %v2432_v12 = vadd.f32 %v2431_v13, %v2430_v25  ;;  %v2224_v34 = vsel %vm1467_vm7, %v2198_v43, 0.0  ;;  %v2167_v26 = vadd.f32 %v2166_v62, %v2165_v46  ;;  %v2379_v60 = vsel %vm1467_vm7, %v2334_v57, 0.0 }
 0x21f   : > { %v2437_v15 = vsel %vm1467_vm7, %v2411_v38, 0.0  ;;  %v2409_v30 = vmul.f32 %v2334_v57, %v2334_v57  ;;  %v2220_v51 = vsel %vm1467_vm7, %v2196_v11, 0.0  ;;  %v2380_v49 = vadd.f32 %v2379_v60, %v2378_v40 }
 0x220   : > { %v2176_v47 = vsel %vm1467_vm7, %v2885_v14, 0.0  ;;  %v2201_v45 = vmul.f32 %v2885_v14, %v2885_v14  ;;  %v2169_v0 = vadd.f32 %v2168_v31, %v2167_v26  ;;  %v2221_v28 = vadd.f32 %v2220_v51, %v2219_v52 }
 0x221   : > { %v2433_v2 = vsel %vm1467_vm7, %v2409_v30, 0.0  ;;  %v2389_v3 = vsel %vm1467_vm7, %v2907_v48, 0.0  ;;  %v2382_v53 = vadd.f32 %v2381_v5, %v2380_v49  ;;  %v2414_v33 = vmul.f32 %v2907_v48, %v2907_v48 }
 0x222   : > { %v2434_v44 = vadd.f32 %v2433_v2, %v2432_v12  ;;  %v2230_v7 = vsel %vm1467_vm7, %v2201_v45, 0.0  ;;  %v2223_v1 = vadd.f32 %v2222_v21, %v2221_v28  ;;  %v2171_v4 = vadd.f32 %v2170_v20, %v2169_v0 }
 0x223   : > { %v2172_v57 = vsel %vm1467_vm7, %v2134_v9, 0.0  ;;  %v2199_v19 = vmul.f32 %v2134_v9, %v2134_v9  ;;  %v2443_v6 = vsel %vm1467_vm7, %v2414_v33, 0.0  ;;  %v2384_v18 = vadd.f32 %v2383_v54, %v2382_v53 }
 0x224   : > { %v2436_v32 = vadd.f32 %v2435_v16, %v2434_v44  ;;  %v2385_v31 = vsel %vm1467_vm7, %v2347_v23, 0.0  ;;  %v2173_v14 = vadd.f32 %v2172_v57, %v2171_v4  ;;  %v2225_v22 = vadd.f32 %v2224_v34, %v2223_v1 }
 0x225   : > { %v2226_v29 = vsel %vm1467_vm7, %v2199_v19, 0.0  ;;  %v2412_v5 = vmul.f32 %v2347_v23, %v2347_v23  ;;  %v2386_v42 = vadd.f32 %v2385_v31, %v2384_v18  ;;  %v2178_v48 = vsel %vm1467_vm7, %v2886_v10, 0.0 }
 0x226   : > { %v2438_v50 = vadd.f32 %v2437_v15, %v2436_v32  ;;  %v2202_v21 = vmul.f32 %v2886_v10, %v2886_v10  ;;  %v2227_v27 = vadd.f32 %v2226_v29, %v2225_v22  ;;  %v2391_v9 = vsel %vm1467_vm7, %v2908_v36, 0.0 }
 0x227   : > { %v2439_v35 = vsel %vm1467_vm7, %v2412_v5, 0.0  ;;  %v2415_v16 = vmul.f32 %v2908_v36, %v2908_v36  ;;  %v2174_v24 = vsel %vm1467_vm7, %v2137_v55, 0.0  ;;  %v2200_v8 = vmul.f32 %v2137_v55, %v2137_v55 }
 0x228   : > { %v2440_v39 = vadd.f32 %v2439_v35, %v2438_v50  ;;  %v2232_v46 = vsel %vm1467_vm7, %v2202_v21, 0.0  ;;  %v2175_v23 = vadd.f32 %v2174_v24, %v2173_v14  ;;  %v2387_v40 = vsel %vm1467_vm7, %v2350_v37, 0.0 }
 0x229   : > { %v2445_v17 = vsel %vm1467_vm7, %v2415_v16, 0.0  ;;  %v2413_v25 = vmul.f32 %v2350_v37, %v2350_v37  ;;  %v2228_v10 = vsel %vm1467_vm7, %v2200_v8, 0.0  ;;  %v2388_v20 = vadd.f32 %v2387_v40, %v2386_v42 }
 0x22a   : > { %v1971_v43 = vadd.f32 %v1970_v63, %v4024_v56  ;;  %v1758_v36 = vadd.f32 %v1757_v59, %v4022_v41  ;;  %v2177_v52 = vadd.f32 %v2176_v47, %v2175_v23  ;;  %v2229_v13 = vadd.f32 %v2228_v10, %v2227_v27 }
 0x22b   : > { %v2441_v55 = vsel %vm1467_vm7, %v2413_v25, 0.0  ;;  %v2024_v54 = vrot.slane %v4033_v58, 2  ;;  %v2390_v38 = vadd.f32 %v2389_v3, %v2388_v20  ;;  %v1811_v56 = vrot.slane %v4030_v61, 2 }
 0x22c   : > { %v2442_v12 = vadd.f32 %v2441_v55, %v2440_v39  ;;  %v1972_v37 = vrot.slane %v1971_v43, 1  ;;  %v1759_v34 = vrot.slane %v1758_v36, 1  ;;  %v2179_v62 = vadd.f32 %v2178_v48, %v2177_v52 }
 0x22d   : > { %v2231_v11 = vadd.f32 %v2230_v7, %v2229_v13  ;;  %v2025_v15 = vadd.f32 %v2024_v54, %v4033_v58  ;;  %v2392_v63 = vadd.f32 %v2391_v9, %v2390_v38  ;;  %v1812_v49 = vadd.f32 %v1811_v56, %v4030_v61 }
 0x22e   : > { %v2444_v26 = vadd.f32 %v2443_v6, %v2442_v12  ;;  %v1973_v60 = vadd.f32 %v1972_v37, %v1971_v43  ;;  %v1760_v41 = vadd.f32 %v1759_v34, %v1758_v36  ;;  %v2180_v59 = vrot.slane %v2179_v62, 4 }
 0x22f   : > { %v2233_v30 = vadd.f32 %v2232_v46, %v2231_v11  ;;  %v2026_v51 = vrot.slane %v2025_v15, 1  ;;  %v2393_v47 = vrot.slane %v2392_v63, 4  ;;  %v1813_v58 = vrot.slane %v1812_v49, 1 }
 0x230   : > { %v2446_v45 = vadd.f32 %v2445_v17, %v2444_v26  ;;  %v1974_v0 = vadd.f32 %v1973_v60, %v1760_v41  ;;  %v2181_v28 = vadd.f32 %v2180_v59, %v2179_v62 }
 0x231   : > { %v2234_v2 = vrot.slane %v2233_v30, 4  ;;  %v2394_v3 = vadd.f32 %v2393_v47, %v2392_v63  ;;  %v2027_v44 = vadd.f32 %v2026_v51, %v2025_v15  ;;  %v1814_v57 = vadd.f32 %v1813_v58, %v1812_v49 }
 0x232   : > { %v2447_v53 = vrot.slane %v2446_v45, 4  ;;  %v2182_v7 = vrot.slane %v2181_v28, 2 }
 0x233   : > { %v2235_v33 = vadd.f32 %v2234_v2, %v2233_v30  ;;  %v2395_v1 = vrot.slane %v2394_v3, 2  ;;  %v2028_v61 = vadd.f32 %v2027_v44, %v1814_v57 }
 0x234   : > { %v2448_v4 = vadd.f32 %v2447_v53, %v2446_v45  ;;  %v2183_v19 = vadd.f32 %v2182_v7, %v2181_v28 }
 0x235   : > { %v2236_v32 = vrot.slane %v2235_v33, 2  ;;  %v2396_v6 = vadd.f32 %v2395_v1, %v2394_v3 }
 0x236   : > { %v2449_v18 = vrot.slane %v2448_v4, 2  ;;  %v2184_v31 = vrot.slane %v2183_v19, 1 }
 0x237   : > { %v2237_v14 = vadd.f32 %v2236_v32, %v2235_v33  ;;  %v2397_v22 = vrot.slane %v2396_v6, 1 }
 0x238   : > { %v2450_v29 = vadd.f32 %v2449_v18, %v2448_v4  ;;  %v2185_v5 = vadd.f32 %v2184_v31, %v2183_v19 }
 0x239   : > { %v2238_v42 = vrot.slane %v2237_v14, 1  ;;  %v2398_v50 = vadd.f32 %v2397_v22, %v2396_v6 }
 0x23a   : > { %v2451_v48 = vrot.slane %v2450_v29, 1 }
 0x23b   : > { %v2239_v21 = vadd.f32 %v2238_v42, %v2237_v14  ;;  %v2399_v27 = vadd.f32 %v2398_v50, %v2185_v5 }
 0x23c   : > { %v2452_v35 = vadd.f32 %v2451_v48, %v2450_v29 }
 0x23d   : > { %2455 = vrot.lane.b32.xlu1 %v2399_v27, %s3051_s28 }
 0x23e   : > { %v2453_v9 = vadd.f32 %v2452_v35, %v2239_v21 }
 0x240   : > { %2460 = vrot.lane.b32.xlu0 %v2453_v9, %s3051_s28 }
 0x2af   : > { %v2456_v16 = vpop.permute.xlu1 %2455 }
 0x2b0   : > { %v2458_v8 = vsel %vm1467_vm7, %v1974_v0, %v2456_v16 }
 0x2b2   : > { %v2461_v39 = vpop.permute.xlu0 %2460 }
 0x2b3   : > { %v2463_v46 = vsel %vm1467_vm7, %v2028_v61, %v2461_v39 }
 0x2b4   : > { %v2465_v24 = vrot.slane %v2463_v46, 7 }
 0x2b6   : > { %v2468_v17 = vsel %vm2467_vm0, %v2458_v8, %v2465_v24 }
 0x2b7   : > { %2470 = vst.msk [vmem:[%s190_s23] sm:$0x3] %vm2469_vm1, %v2468_v17 }
 0x2b8 PF: > { %s13_s16 = sadd.s32 1, %s3046_s16   ;;  %s4132_s12 = smov %s3038_s14 }
 0x2b9   : > { %p10_p7 = scmp.ge.s32.totalorder %s13_s16, 6   ;;  %s4133_s13 = smov %s3042_s15 }
 0x2ba   : > { %s4134_s14 = smov %s4137_s17  ;;  %s4135_s15 = smov %s4141_s18 }
 0x2bb   :  { %12 = sbr.rel (!%p10_p7) target bundleno = 3 (0x3), region = 67 }

// kernel: upsampling_forward.3
= control target key start
LH: loop header
LB: loop body
LE: loop exit
PB: predicated region body
PF: predicated region fallthrough
CT: control target
= control target key end

     0   :  { %s3951_s15 = smov 0   ;;  %s3953_s16 = smov 0   ;;  %s5829_s0 = inlined_call_operand.vmem [shape: bf16[2,18,18,4], index: 0, kind: input, shape index: {}]   ;;  %s5830_s1 = inlined_call_operand.vmem [shape: bf16[2,36,8], index: 1, kind: input, shape index: {}]   ;;  %s5831_s2 = inlined_call_operand.vmem [shape: bf16[2,36,8], index: 2, kind: input, shape index: {}]   ;;  %s5832_s3 = inlined_call_operand.vmem [shape: f32[4,8], index: 3, kind: input, shape index: {}]   ;;  %s5833_s4 = inlined_call_operand.vmem [shape: f32[2,2,16,128], index: 4, kind: output, shape index: {}]  }
   0x1   :  { %s3955_s17 = smov 0   ;;  %s3957_s18 = smov 0  }
   0x2   :  { %s3959_s19 = smov 0   ;;  %s3961_s20 = smov 0  }
   0x3   :  { %s3963_s21 = smov 0  }
   0x4 LB: > { %s23_s22 = sadd.s32 1, %s3897_s19  ;;  %s26_s23 = sadd.s32 1, %s3901_s20  ;;  %s3905_s21 = sphi %s3963_s21, %s14_s21   ;;  %s3901_s20 = sphi %s3961_s20, %s5846_s20   ;;  %s3897_s19 = sphi %s3959_s19, %s5845_s19   ;;  %s3893_s18 = sphi %s3957_s18, %s5844_s18   ;;  %s3889_s17 = sphi %s3955_s17, %s5843_s17   ;;  %s3885_s16 = sphi %s3953_s16, %s5842_s16   ;;  %s3881_s15 = sphi %s3951_s15, %s5841_s15  }
   0x5   : > { %p24_p0 = scmp.ge.s32.totalorder %s23_s22, 2  ;;  %s3214_s24 = sadd.s32 4294967295, %s3905_s21  }
   0x6   : > { %p134_p1 = scmp.ne.s32.totalorder %s3885_s16, %s3881_s15  ;;  %p135_p2 = scmp.eq.s32.totalorder %s3214_s24, 3 }
   0x7   : > { %s5848_s22 = smov (%p24_p0, %s23_s22), 0  ;;  %s5850_s23 = smov (!%p24_p0, %s26_s23), %s3901_s20 }
   0x8   : > { %s120_s25 = ssub.s32 %s3897_s19, %s5848_s22  ;;  %p28_p3 = scmp.ge.s32.totalorder %s5850_s23, 2 }
   0x9   : > { %p3218_p4 = scmp.ge.s32.totalorder %s3905_s21, 1  ;;  %p3997_p5 = por %p135_p2, %p134_p1 }
   0xa   : > { %p176_p6 = scmp.lt.s32.totalorder %s3905_s21, 5  ;;  %s5852_s23 = smov (%p28_p3, %s5850_s23), 0 }
   0xb   : > { %s119_s27 = ssub.s32 %s3901_s20, %s5852_s23  ;;  %s124_s29 = sadd.s32 1, %s3885_s16 }
   0xc   : > { %p177_p7 = pnand %p3218_p4, %p176_p6  ;;  %s121_s28 = sor.u32 %s120_s25, %s119_s27 }
   0xd   : > { %p122_p8 = scmp.eq.s32.totalorder %s121_s28, 0  ;;  %p201_p9 = scmp.lt.s32.totalorder (!%p177_p7), %s3893_s18, 1  ;;  %vm454_vm0 = vcmask (!%p177_p7), 1042432   ;;  %vm455_vm1 = vcmask (!%p177_p7), 1046532   ;;  %vm235_vm3 = vsmask.f32 (!%p177_p7), 3328 }
   0xe   : > { %180 = sbr.rel (%p177_p7) target bundleno = 770 (0x302), region = 36  ;;  %s3907_s12 = smov (!%p177_p7), 12   ;;  %vm4075_vm2 = vmor (!%p177_p7), %vm454_vm0, %vm455_vm1  ;;  %vm236_vm4 = vsmask.f32 (!%p177_p7), 7440  ;;  %vm1457_vm6 = vcmask (!%p177_p7), 31744   ;;  %vm1482_vm7 = vcmask (!%p177_p7), 64512  }
   0xf   : > { %s4008_s30 = scalar_select %p122_p8, %s3885_s16, %s124_s29  }
  0x10   : > { %s3464_s6 = smul.u32 (!%p177_p7), 96, %s3889_s17  ;;  %s3908_s13 = smov (!%p177_p7), 24   ;;  %vm4115_vm5 = vmor (!%p177_p7), %vm235_vm3, %vm236_vm4  ;;  %vm1499_vm8 = vcmask (!%p177_p7), 97280   ;;  %vm1516_vm9 = vcmask (!%p177_p7), 130048   ;;  %vm1533_vm10 = vcmask (!%p177_p7), 162816   ;;  %vm1550_vm11 = vcmask (!%p177_p7), 195584  }
  0x11   : > { %s3909_s14 = smov (!%p177_p7), 20   ;;  %s3910_s24 = smov (!%p177_p7), 8   ;;  %vm1639_vm12 = vcmask (!%p177_p7), 1041408   ;;  %vm1567_vm13 = vcmask (!%p177_p7), 228352   ;;  %vm1584_vm14 = vcmask (!%p177_p7), 261120   ;;  %vm1622_vm15 = vcmask (!%p177_p7), 293888  }
  0x12   : > { %s3911_s25 = smov (!%p177_p7), 4   ;;  %s3912_s29 = smov (!%p177_p7), 16   ;;  %vm2061_vm0 = vcmask (!%p177_p7), 1041409   ;;  %vm2064_vm1 = vcmask (!%p177_p7), 1042434   ;;  %vm2070_vm3 = vcmask (!%p177_p7), 1044484   ;;  %vm2073_vm4 = vcmask (!%p177_p7), 1045509  }
  0x13   : > { %s3913_s9 = smov (!%p177_p7), 28   ;;  %s3914_s28 = smov (!%p177_p7), 32  }
  0x14   : > { %s3917_s27 = smov (!%p177_p7), 56  }
  0x15   : > { %s202_s5 = scalar_select %p201_p9, %s3893_s18, 1 }
  0x17   : > { %s3601_s7 = smul.u32 216, %s202_s5  ;;  %s3925_s5 = smov 120  }
  0x19   : > { %s205_s10 = scalar_lea.vmem %s5829_s0, %s3601_s7 }
  0x1a   : > { %s4016_s11 = scalar_lea.vmem %s205_s10, %s3464_s6  ;;  %s3916_s10 = smov 40  }
  0x1b   : > { %v4019_v0 = vld [vmem:[%s4016_s11 + $0x18] sm:$0xf]  ;;  %v4022_v1 = vld [vmem:[%s4016_s11 + $0x1c] sm:$0xf]  ;;  %v3234_v2 = vld [vmem:[%s4016_s11 + $0xc] sm:$0xf] }
  0x1c   : > { %v575_v3 = vshll.u32 %v4022_v1, 16  ;;  %v579_v4 = vshrl.u32 %v4022_v1, 16  ;;  %v3325_v5 = vcombine.low %v4019_v0, %v4022_v1  ;;  %v566_v6 = vshrl.u32 %v4019_v0, 16  ;;  %v4031_v7 = vld [vmem:[%s4016_s11 + $0x10] sm:$0xf]  ;;  %s198_s6 = sand.u32 1, %s3881_s15  }
  0x1d   : > { %v569_v8 = vshll.u32 %v4019_v0, 16  ;;  %v551_v9 = vshll.u32 %v4031_v7, 16  ;;  %v555_v10 = vshrl.u32 %v4031_v7, 16  ;;  %v3324_v11 = vcombine.low %v3234_v2, %v4031_v7  ;;  %v4038_v12 = vld [vmem:[%s4016_s11 + $0x24] sm:$0xf]  ;;  %s3219_s7 = sshll.u32 %s198_s6, 4 }
  0x1e   : > { %v4040_v13 = vrot.slane %v579_v4, 4  ;;  %1243 = vrot.lane.b32.xlu1 %v3325_v5, %s3907_s12  ;;  %v4043_v14 = vrot.slane %v566_v6, 4  ;;  %v542_v15 = vshrl.u32 %v3234_v2, 16  ;;  %v545_v16 = vshll.u32 %v3234_v2, 16  ;;  %v4046_v17 = vld [vmem:[%s4016_s11 + $0x28] sm:$0xf] }
  0x1f   : > { %v4048_v18 = vrot.slane %v569_v8, 5  ;;  %v4050_v19 = vrot.slane %v555_v10, 4  ;;  %1241 = vrot.lane.b32.xlu0 %v3324_v11, %s3907_s12  ;;  %v866_v20 = vshrl.u32 %v4038_v12, 16  ;;  %v869_v21 = vshll.u32 %v4038_v12, 16  ;;  %v4056_v22 = vld [vmem:[%s4016_s11 + $0x18] sm:$0xf] }
  0x20   : > { %v4058_v23 = vrot.slane %v542_v15, 4  ;;  %v4060_v24 = vrot.slane %v545_v16, 5  ;;  %v879_v25 = vshrl.u32 %v4046_v17, 16  ;;  %v3349_v26 = vcombine.low %v4038_v12, %v4046_v17  ;;  %v4066_v27 = vld [vmem:[%s4016_s11 + $0x1c] sm:$0xf]  ;;  %s5778_s15 = scalar_lea.vmem [#allocation2], %s3219_s7 }
  0x21   : > { %v842_v28 = vshrl.u32 %v4056_v22, 16  ;;  %v845_v29 = vshll.u32 %v4056_v22, 16  ;;  %v855_v30 = vshrl.u32 %v4066_v27, 16  ;;  %v3348_v31 = vcombine.low %v4056_v22, %v4066_v27  ;;  %v4080_v33 = vld [vmem:[%s4016_s11 + $0x14] sm:$0x1] }
  0x22   : > { %1363 = vrot.lane.b32.xlu1 %v3349_v26, %s3908_s13  ;;  %v3258_v34 = vrot.slane %v3234_v2, 9  ;;  %v759_v35 = vrot.slane %v4031_v7, 5  ;;  %v762_v36 = vrot.slane %v4080_v33, 5  ;;  %v211_v37 = vld [vmem:[%s4016_s11] sm:$0xf]  ;;  %v3259_v38 = vrot.slane %v4019_v0, 9 }
  0x23   : > { %1361 = vrot.lane.b32.xlu0 %v3348_v31, %s3908_s13  ;;  %v212_v39 = vld [vmem:[%s4016_s11 + $0x4] sm:$0xf]  ;;  %v213_v40 = vld [vmem:[%s4016_s11 + $0x8] sm:$0x1]  ;;  %v3224_v41 = vrot.slane %v211_v37, 9  ;;  %v239_v42 = vshrl.u32 %v211_v37, 16  ;;  %v572_v52 = vor.u32 %v4048_v18, %v4043_v14  ;;  %v548_v53 = vor.u32 %v4060_v24, %v4058_v23 }
  0x24   : > { %v760_v43 = vsel %vm4075_vm2, %v3258_v34, %v759_v35  ;;  %v761_v44 = vrot.slane %v759_v35, 4  ;;  %v459_v45 = vrot.slane %v212_v39, 5  ;;  %v462_v46 = vrot.slane %v213_v40, 5  ;;  %v214_v47 = vld [vmem:[%s4016_s11 + $0xc] sm:$0xf] }
  0x25   : > { %v215_v48 = vld [vmem:[%s4016_s11 + $0x10] sm:$0xf]  ;;  %v216_v49 = vld [vmem:[%s4016_s11 + $0x14] sm:$0x1]  ;;  %v3225_v50 = vrot.slane %v214_v47, 9  ;;  %v241_v51 = vrot.slane %v239_v42, 4 }
  0x26   : > { %v763_v54 = vsel %vm4075_vm2, %v761_v44, %v762_v36  ;;  %v460_v55 = vsel %vm4075_vm2, %v3224_v41, %v459_v45  ;;  %v461_v56 = vrot.slane %v459_v45, 4  ;;  %v466_v57 = vrot.slane %v215_v48, 5  ;;  %v3239_v62 = vld [vmem:[%s4016_s11 + $0x20] sm:$0x1] }
  0x27   : > { %v3340_v58 = vcombine.low %v760_v43, %v763_v54  ;;  %v469_v59 = vrot.slane %v216_v49, 5  ;;  %v242_v60 = vshll.u32 %v211_v37, 16  ;;  %v248_v61 = vshll.u32 %v212_v39, 16 }
  0x28   : > { %v463_v63 = vsel %vm4075_vm2, %v461_v56, %v462_v46  ;;  %v467_v0 = vsel %vm4075_vm2, %v3225_v50, %v466_v57  ;;  %v468_v2 = vrot.slane %v466_v57, 4  ;;  %v252_v4 = vshrl.u32 %v212_v39, 16 }
  0x29   : > { %1321 = vrot.lane.b32.xlu0 %v3340_v58, %s3909_s14  ;;  %v3316_v5 = vcombine.low %v460_v55, %v463_v63  ;;  %v244_v6 = vrot.slane %v242_v60, 5  ;;  %v250_v8 = vrot.slane %v248_v61, 5  ;;  %v258_v10 = vshll.u32 %v213_v40, 16 }
  0x2a   : > { %v470_v11 = vsel %vm4075_vm2, %v468_v2, %v469_v59  ;;  %v254_v14 = vrot.slane %v252_v4, 4  ;;  %v766_v15 = vrot.slane %v4022_v1, 5  ;;  %v769_v16 = vrot.slane %v3239_v62, 5 }
  0x2b   : > { %1201 = vrot.lane.b32.xlu1 %v3316_v5, %s3910_s24  ;;  %v3317_v18 = vcombine.low %v467_v0, %v470_v11  ;;  %v245_v23 = vor.u32 %v244_v6, %v241_v51  ;;  %v260_v24 = vrot.slane %v258_v10, 5  ;;  %v263_v26 = vshrl.u32 %v214_v47, 16 }
  0x2c   : > { %v255_v34 = vor.u32 %v254_v14, %v250_v8  ;;  %v767_v35 = vsel %vm4075_vm2, %v3259_v38, %v766_v15  ;;  %v768_v36 = vrot.slane %v766_v15, 4  ;;  %v266_v37 = vshll.u32 %v214_v47, 16 }
  0x2d   : > { %v246_v39 = vrot.slane %v245_v23, 4  ;;  %v265_v40 = vrot.slane %v263_v26, 4  ;;  %v272_v41 = vshll.u32 %v215_v48, 16  ;;  %v276_v42 = vshrl.u32 %v215_v48, 16  ;;  %v4169_v26 = vld [vmem:[%s4016_s11 + $0x18] sm:$0xf] }
  0x2e   : > { %v256_v43 = vrot.slane %v255_v34, 4  ;;  %v770_v44 = vsel %vm4075_vm2, %v768_v36, %v769_v16  ;;  %v268_v45 = vrot.slane %v266_v37, 5  ;;  %v282_v46 = vshll.u32 %v216_v49, 16 }
  0x2f   : > { %1203 = vrot.lane.b32.xlu1 %v3317_v18, %s3910_s24  ;;  %v251_v50 = vsel %vm4115_vm5, %v246_v39, %v250_v8  ;;  %v3341_v51 = vcombine.low %v767_v35, %v770_v44  ;;  %v274_v54 = vrot.slane %v272_v41, 5  ;;  %v278_v38 = vrot.slane %v276_v42, 4  ;;  %v4159_v18 = vld [vmem:[%s4016_s11 + $0x20] sm:$0x1]  ;;  %v4173_v39 = vld [vmem:[%s4016_s11 + $0x1c] sm:$0xf] }
  0x30   : > { %v261_v47 = vsel %vm4115_vm5, %v256_v43, %v260_v24  ;;  %v269_v55 = vor.u32 %v268_v45, %v265_v40  ;;  %v284_v56 = vrot.slane %v282_v46, 5  ;;  %v573_v48 = vrot.slane %v572_v52, 4  ;;  %v4185_v45 = vld [vmem:[%s4016_s11 + $0x20] sm:$0x1] }
  0x31   : > { %v3308_v57 = vcombine.low %v251_v50, %v261_v47  ;;  %v279_v58 = vor.u32 %v278_v38, %v274_v54  ;;  %v577_v59 = vrot.slane %v575_v3, 5  ;;  %v585_v49 = vshll.u32 %v3239_v62, 16  ;;  %v4144_v62 = vld [vmem:[%s4016_s11 + $0x2c] sm:$0x1] }
  0x32   : > { %v270_v60 = vrot.slane %v269_v55, 4  ;;  %v549_v61 = vrot.slane %v548_v53, 4  ;;  %v553_v63 = vrot.slane %v551_v9, 5  ;;  %v561_v0 = vshll.u32 %v4080_v33, 16 }
  0x33   : > { %1161 = vrot.lane.b32.xlu0 %v3308_v57, %s3911_s25  ;;  %1323 = vrot.lane.b32.xlu1 %v3341_v51, %s3909_s14  ;;  %v280_v52 = vrot.slane %v279_v58, 4  ;;  %v578_v2 = vsel %vm4115_vm5, %v573_v48, %v577_v59  ;;  %v582_v1 = vor.u32 %v4040_v13, %v577_v59  ;;  %v587_v3 = vrot.slane %v585_v49, 5  ;;  %v3696_v51 = vld [vmem:[%s5831_s2] sm:$0xff]   ;;  %v3697_v58 = vld [vmem:[%s5830_s1 + $0x8] sm:$0xff]  }
  0x34   : > { %v275_v53 = vsel %vm4115_vm5, %v270_v60, %v274_v54  ;;  %v554_v7 = vsel %vm4115_vm5, %v549_v61, %v553_v63  ;;  %v558_v9 = vor.u32 %v4050_v19, %v553_v63  ;;  %v563_v33 = vrot.slane %v561_v0, 5  ;;  %3531 = vmatprep.subr.bf16.mxu1 %v3696_v51  ;;  %v220_v63 = vld [vmem:[%s4016_s11 + $0x24] sm:$0xf] }
  0x35   : > { %v285_v4 = vsel %vm4115_vm5, %v280_v52, %v284_v56  ;;  %v583_v5 = vrot.slane %v582_v1, 4  ;;  %v868_v13 = vrot.slane %v866_v20, 4  ;;  %v871_v6 = vrot.slane %v869_v21, 5  ;;  %3532 = vmatpush3.bf16.msra.mxu1 %v3696_v51 }
  0x36   : > { %v3309_v8 = vcombine.low %v275_v53, %v285_v4  ;;  %v559_v10 = vrot.slane %v558_v9, 4  ;;  %v875_v11 = vshll.u32 %v4046_v17, 16  ;;  %v881_v19 = vrot.slane %v879_v25, 4 }
  0x37   : > { %v588_v14 = vsel %vm4115_vm5, %v583_v5, %v587_v3  ;;  %v872_v15 = vor.u32 %v871_v6, %v868_v13  ;;  %v885_v16 = vshll.u32 %v4144_v62, 16  ;;  %v844_v20 = vrot.slane %v842_v28, 4  ;;  %v3695_v28 = vld [vmem:[%s5830_s1] sm:$0xff]   ;;  %v222_v6 = vld [vmem:[%s4016_s11 + $0x2c] sm:$0x1] }
  0x38   : > { %1163 = vrot.lane.b32.xlu0 %v3309_v8, %s3911_s25  ;;  %v3333_v21 = vcombine.low %v578_v2, %v588_v14  ;;  %v564_v23 = vsel %vm4115_vm5, %v559_v10, %v563_v33  ;;  %v877_v24 = vrot.slane %v875_v11, 5  ;;  %v847_v25 = vrot.slane %v845_v29, 5  ;;  %3509 = vmatprep.subr.bf16.mxu0 %v3695_v28  ;;  %v221_v33 = vld [vmem:[%s4016_s11 + $0x28] sm:$0xf] }
  0x39   : > { %v3332_v34 = vcombine.low %v554_v7, %v564_v23  ;;  %v873_v35 = vrot.slane %v872_v15, 4  ;;  %v887_v36 = vrot.slane %v885_v16, 5  ;;  %v851_v37 = vshll.u32 %v4066_v27, 16  ;;  %3510 = vmatpush3.bf16.msra.mxu0 %v3695_v28 }
  0x3a   : > { %1283 = vrot.lane.b32.xlu1 %v3333_v21, %s3912_s29  ;;  %v882_v40 = vor.u32 %v881_v19, %v877_v24  ;;  %v848_v41 = vor.u32 %v847_v25, %v844_v20  ;;  %v857_v29 = vrot.slane %v855_v30, 4  ;;  %v861_v42 = vshll.u32 %v4159_v18, 16  ;;  %3511 = vmatprep.subr.bf16.mxu0 %v3697_v58 }
  0x3b   : > { %v878_v43 = vsel %vm4115_vm5, %v873_v35, %v877_v24  ;;  %v853_v44 = vrot.slane %v851_v37, 5  ;;  %v287_v46 = vshrl.u32 %v4169_v26, 16  ;;  %v290_v50 = vshll.u32 %v4169_v26, 16 }
  0x3c   : > { %1281 = vrot.lane.b32.xlu0 %v3332_v34, %s3912_s29  ;;  %v883_v30 = vrot.slane %v882_v40, 4  ;;  %v849_v54 = vrot.slane %v848_v41, 4  ;;  %v863_v38 = vrot.slane %v861_v42, 5  ;;  %v296_v47 = vshll.u32 %v4173_v39, 16 }
  0x3d   : > { %v858_v55 = vor.u32 %v857_v29, %v853_v44  ;;  %v289_v56 = vrot.slane %v287_v46, 4  ;;  %v292_v48 = vrot.slane %v290_v50, 5  ;;  %v300_v57 = vshrl.u32 %v4173_v39, 16  ;;  %3512 = vmatpush3.bf16.msra.mxu0 %v3697_v58 }
  0x3e   : > { %v888_v59 = vsel %vm4115_vm5, %v883_v30, %v887_v36  ;;  %v854_v49 = vsel %vm4115_vm5, %v849_v54, %v853_v44  ;;  %v298_v60 = vrot.slane %v296_v47, 5  ;;  %v306_v61 = vshll.u32 %v4185_v45, 16  ;;  %v4231_v30 = vld [vmem:[%s4016_s11 + $0x30] sm:$0xf]  ;;  %v4238_v47 = vld [vmem:[%s4016_s11 + $0x34] sm:$0xf] }
  0x3f   : > { %v3357_v0 = vcombine.low %v878_v43, %v888_v59  ;;  %v859_v52 = vrot.slane %v858_v55, 4  ;;  %v293_v2 = vor.u32 %v292_v48, %v289_v56  ;;  %v302_v1 = vrot.slane %v300_v57, 4  ;;  %v4245_v57 = vld [vmem:[%s4016_s11 + $0x24] sm:$0xf] }
  0x40   : > { %v308_v3 = vrot.slane %v306_v61, 5  ;;  %v3292_v53 = vrot.slane %v4056_v22, 9  ;;  %v1059_v7 = vrot.slane %v4066_v27, 5  ;;  %v1062_v9 = vrot.slane %v4159_v18, 5  ;;  %v3698_v18 = vld [vmem:[%s5831_s2 + $0x8] sm:$0xff]  }
  0x41   : > { %1403 = vrot.lane.b32.xlu1 %v3357_v0, %s3913_s9  ;;  %v864_v4 = vsel %vm4115_vm5, %v859_v52, %v863_v38  ;;  %v294_v5 = vrot.slane %v293_v2, 4  ;;  %v303_v13 = vor.u32 %v302_v1, %v298_v60  ;;  %v311_v8 = vshrl.u32 %v220_v63, 16  ;;  %3533 = vmatprep.subr.bf16.mxu1 %v3698_v18  ;;  %v4254_v61 = vld [vmem:[%s4016_s11 + $0x28] sm:$0xf]  ;;  %v3245_v52 = vld [vmem:[%s4016_s11 + $0x38] sm:$0x1] }
  0x42   : > { %v3356_v10 = vcombine.low %v854_v49, %v864_v4  ;;  %v1060_v22 = vsel %vm4075_vm2, %v3292_v53, %v1059_v7  ;;  %v1061_v11 = vrot.slane %v1059_v7, 4  ;;  %v314_v27 = vshll.u32 %v220_v63, 16  ;;  %3534 = vmatpush3.bf16.msra.mxu1 %v3698_v18  ;;  %v3242_v7 = vld [vmem:[%s4016_s11 + $0x2c] sm:$0x1] }
  0x43   : > { %v299_v19 = vsel %vm4115_vm5, %v294_v5, %v298_v60  ;;  %v304_v14 = vrot.slane %v303_v13, 4  ;;  %v313_v15 = vrot.slane %v311_v8, 4  ;;  %v320_v16 = vshll.u32 %v221_v33, 16 }
  0x44   : > { %1401 = vrot.lane.b32.xlu0 %v3356_v10, %s3913_s9  ;;  %v1063_v20 = vsel %vm4075_vm2, %v1061_v11, %v1062_v9  ;;  %v316_v21 = vrot.slane %v314_v27, 5  ;;  %v324_v23 = vshrl.u32 %v221_v33, 16  ;;  %v330_v24 = vshll.u32 %v222_v6, 16 }
  0x45   : > { %v309_v25 = vsel %vm4115_vm5, %v304_v14, %v308_v3  ;;  %v3364_v34 = vcombine.low %v1060_v22, %v1063_v20  ;;  %v322_v35 = vrot.slane %v320_v16, 5  ;;  %v3293_v36 = vrot.slane %v4038_v12, 9 }
  0x46   : > { %v3310_v37 = vcombine.low %v299_v19, %v309_v25  ;;  %v317_v28 = vor.u32 %v316_v21, %v313_v15  ;;  %v326_v40 = vrot.slane %v324_v23, 4  ;;  %v332_v41 = vrot.slane %v330_v24, 5 }
  0x47   : > { %v1066_v29 = vrot.slane %v4046_v17, 5  ;;  %v1069_v42 = vrot.slane %v4144_v62, 5  ;;  %v3227_v43 = vrot.slane %v220_v63, 9  ;;  %v480_v44 = vrot.slane %v221_v33, 5 }
  0x48   : > { %1165 = vrot.lane.b32.xlu1 %v3310_v37, %s3911_s25  ;;  %1441 = vrot.lane.b32.xlu0 %v3364_v34, %s3914_s28  ;;  %v318_v12 = vrot.slane %v317_v28, 4  ;;  %v327_v46 = vor.u32 %v326_v40, %v322_v35  ;;  %v483_v50 = vrot.slane %v222_v6, 5  ;;  %v3226_v51 = vrot.slane %v4169_v26, 9 }
  0x49   : > { %v1067_v17 = vsel %vm4075_vm2, %v3293_v36, %v1066_v29  ;;  %v1068_v62 = vrot.slane %v1066_v29, 4  ;;  %v481_v54 = vsel %vm4075_vm2, %v3227_v43, %v480_v44  ;;  %v482_v38 = vrot.slane %v480_v44, 4  ;;  %v4282_v29 = vld [vmem:[%s4016_s11 + $0x3c] sm:$0xf] }
  0x4a   : > { %v323_v55 = vsel %vm4115_vm5, %v318_v12, %v322_v35  ;;  %v328_v56 = vrot.slane %v327_v46, 4  ;;  %v473_v26 = vrot.slane %v4173_v39, 5  ;;  %v476_v48 = vrot.slane %v4185_v45, 5 }
  0x4b   : > { %v1070_v58 = vsel %vm4075_vm2, %v1068_v62, %v1069_v42  ;;  %v484_v59 = vsel %vm4075_vm2, %v482_v38, %v483_v50  ;;  %v614_v49 = vshrl.u32 %v4231_v30, 16  ;;  %v617_v60 = vshll.u32 %v4231_v30, 16 }
  0x4c   : > { %v333_v39 = vsel %vm4115_vm5, %v328_v56, %v332_v41  ;;  %v3365_v63 = vcombine.low %v1067_v17, %v1070_v58  ;;  %v3319_v45 = vcombine.low %v481_v54, %v484_v59  ;;  %v474_v0 = vsel %vm4075_vm2, %v3226_v51, %v473_v26  ;;  %v4291_v17 = vld [vmem:[%s4016_s11 + $0x40] sm:$0xf]  ;;  %v4307_v58 = vld [vmem:[%s4016_s11 + $0x34] sm:$0xf] }
  0x4d   : > { %v3311_v2 = vcombine.low %v323_v55, %v333_v39  ;;  %v475_v1 = vrot.slane %v473_v26, 4  ;;  %v627_v3 = vshrl.u32 %v4238_v47, 16  ;;  %v3327_v53 = vcombine.low %v4231_v30, %v4238_v47  ;;  %v4300_v55 = vld [vmem:[%s4016_s11 + $0x30] sm:$0xf] }
  0x4e   : > { %1443 = vrot.lane.b32.xlu0 %v3365_v63, %s3914_s28  ;;  %v590_v9 = vshrl.u32 %v4245_v57, 16  ;;  %v593_v33 = vshll.u32 %v4245_v57, 16  ;;  %v603_v4 = vshrl.u32 %v4254_v61, 16  ;;  %v3326_v5 = vcombine.low %v4245_v57, %v4254_v61 }
  0x4f   : > { %1167 = vrot.lane.b32.xlu1 %v3311_v2, %s3911_s25  ;;  %v477_v13 = vsel %vm4075_vm2, %v475_v1, %v476_v48  ;;  %v616_v6 = vrot.slane %v614_v49, 4  ;;  %v619_v8 = vrot.slane %v617_v60, 5  ;;  %v623_v10 = vshll.u32 %v4238_v47, 16 }
  0x50   : > { %v3318_v22 = vcombine.low %v474_v0, %v477_v13  ;;  %v629_v11 = vrot.slane %v627_v3, 4  ;;  %v633_v27 = vshll.u32 %v3245_v52, 16  ;;  %v592_v19 = vrot.slane %v590_v9, 4  ;;  %v4332_v13 = vld [vmem:[%s4016_s11 + $0x30] sm:$0xf] }
  0x51   : > { %v620_v14 = vor.u32 %v619_v8, %v616_v6  ;;  %v625_v15 = vrot.slane %v623_v10, 5  ;;  %v595_v16 = vrot.slane %v593_v33, 5  ;;  %v599_v18 = vshll.u32 %v4254_v61, 16 }
  0x52   : > { %1205 = vrot.lane.b32.xlu0 %v3318_v22, %s3910_s24  ;;  %v635_v20 = vrot.slane %v633_v27, 5  ;;  %v605_v21 = vrot.slane %v603_v4, 4  ;;  %v609_v23 = vshll.u32 %v3242_v7, 16  ;;  %v3261_v24 = vrot.slane %v4231_v30, 9 }
  0x53   : > { %1207 = vrot.lane.b32.xlu1 %v3319_v45, %s3910_s24  ;;  %v621_v25 = vrot.slane %v620_v14, 4  ;;  %v630_v34 = vor.u32 %v629_v11, %v625_v15  ;;  %v596_v35 = vor.u32 %v595_v16, %v592_v19  ;;  %v601_v36 = vrot.slane %v599_v18, 5 }
  0x54   : > { %v611_v37 = vrot.slane %v609_v23, 5  ;;  %v780_v28 = vrot.slane %v4238_v47, 5  ;;  %v783_v40 = vrot.slane %v3245_v52, 5  ;;  %v3260_v41 = vrot.slane %v4245_v57, 9  ;;  %v4319_v52 = vld [vmem:[%s4016_s11 + $0x44] sm:$0x1] }
  0x55   : > { %v626_v42 = vsel %vm4115_vm5, %v621_v25, %v625_v15  ;;  %v631_v43 = vrot.slane %v630_v34, 4  ;;  %v597_v44 = vrot.slane %v596_v35, 4  ;;  %v606_v12 = vor.u32 %v605_v21, %v601_v36  ;;  %v4338_v15 = vld [vmem:[%s4016_s11 + $0x34] sm:$0xf]  ;;  %v4344_v34 = vld [vmem:[%s4016_s11 + $0x38] sm:$0x1] }
  0x56   : > { %1245 = vrot.lane.b32.xlu0 %v3326_v5, %s3907_s12  ;;  %v781_v46 = vsel %vm4075_vm2, %v3261_v24, %v780_v28  ;;  %v782_v50 = vrot.slane %v780_v28, 4  ;;  %v773_v51 = vrot.slane %v4254_v61, 5  ;;  %v776_v30 = vrot.slane %v3242_v7, 5  ;;  %v4327_v7 = vld [vmem:[%s4016_s11 + $0x38] sm:$0x1] }
  0x57   : > { %1247 = vrot.lane.b32.xlu1 %v3327_v53, %s3907_s12  ;;  %v636_v62 = vsel %vm4115_vm5, %v631_v43, %v635_v20  ;;  %v602_v54 = vsel %vm4115_vm5, %v597_v44, %v601_v36  ;;  %v607_v38 = vrot.slane %v606_v12, 4  ;;  %v914_v47 = vshrl.u32 %v4282_v29, 16 }
  0x58   : > { %v3335_v56 = vcombine.low %v626_v42, %v636_v62  ;;  %v784_v26 = vsel %vm4075_vm2, %v782_v50, %v783_v40  ;;  %v774_v48 = vsel %vm4075_vm2, %v3260_v41, %v773_v51  ;;  %v775_v57 = vrot.slane %v773_v51, 4 }
  0x59   : > { %v612_v59 = vsel %vm4115_vm5, %v607_v38, %v611_v37  ;;  %v3343_v49 = vcombine.low %v781_v46, %v784_v26  ;;  %v917_v60 = vshll.u32 %v4282_v29, 16  ;;  %v927_v61 = vshrl.u32 %v4291_v17, 16 }
  0x5a   : > { %v3334_v39 = vcombine.low %v602_v54, %v612_v59  ;;  %v777_v63 = vsel %vm4075_vm2, %v775_v57, %v776_v30  ;;  %v3351_v45 = vcombine.low %v4282_v29, %v4291_v17  ;;  %v890_v0 = vshrl.u32 %v4300_v55, 16  ;;  %v4366_v59 = vld [vmem:[%s4016_s11 + $0x40] sm:$0xf] }
  0x5b   : > { %1287 = vrot.lane.b32.xlu1 %v3335_v56, %s3912_s29  ;;  %v3342_v2 = vcombine.low %v774_v48, %v777_v63  ;;  %v893_v1 = vshll.u32 %v4300_v55, 16  ;;  %v903_v3 = vshrl.u32 %v4307_v58, 16  ;;  %v3350_v53 = vcombine.low %v4300_v55, %v4307_v58  ;;  %v228_v63 = vld [vmem:[%s4016_s11 + $0x44] sm:$0x1] }
  0x5c   : > { %1285 = vrot.lane.b32.xlu0 %v3334_v39, %s3912_s29  ;;  %v916_v9 = vrot.slane %v914_v47, 4  ;;  %v919_v33 = vrot.slane %v917_v60, 5  ;;  %v923_v4 = vshll.u32 %v4291_v17, 16  ;;  %v929_v5 = vrot.slane %v927_v61, 4  ;;  %v4360_v47 = vld [vmem:[%s4016_s11 + $0x3c] sm:$0xf] }
  0x5d   : > { %v933_v6 = vshll.u32 %v4319_v52, 16  ;;  %v892_v8 = vrot.slane %v890_v0, 4  ;;  %v895_v10 = vrot.slane %v893_v1, 5  ;;  %v899_v22 = vshll.u32 %v4307_v58, 16 }
  0x5e   : > { %v920_v11 = vor.u32 %v919_v33, %v916_v9  ;;  %v925_v27 = vrot.slane %v923_v4, 5  ;;  %v905_v19 = vrot.slane %v903_v3, 4  ;;  %v909_v14 = vshll.u32 %v4327_v7, 16 }
  0x5f   : > { %1327 = vrot.lane.b32.xlu1 %v3343_v49, %s3909_s14  ;;  %v935_v16 = vrot.slane %v933_v6, 5  ;;  %v896_v18 = vor.u32 %v895_v10, %v892_v8  ;;  %v901_v20 = vrot.slane %v899_v22, 5  ;;  %v335_v21 = vshrl.u32 %v4332_v13, 16 }
  0x60   : > { %1325 = vrot.lane.b32.xlu0 %v3342_v2, %s3909_s14  ;;  %v921_v23 = vrot.slane %v920_v11, 4  ;;  %v930_v24 = vor.u32 %v929_v5, %v925_v27  ;;  %v911_v25 = vrot.slane %v909_v14, 5  ;;  %v338_v35 = vshll.u32 %v4332_v13, 16 }
  0x61   : > { %v897_v36 = vrot.slane %v896_v18, 4  ;;  %v906_v37 = vor.u32 %v905_v19, %v901_v20  ;;  %v337_v28 = vrot.slane %v335_v21, 4  ;;  %v344_v40 = vshll.u32 %v4338_v15, 16 }
  0x62   : > { %v926_v41 = vsel %vm4115_vm5, %v921_v23, %v925_v27  ;;  %v931_v42 = vrot.slane %v930_v24, 4  ;;  %v340_v43 = vrot.slane %v338_v35, 5  ;;  %v348_v44 = vshrl.u32 %v4338_v15, 16 }
  0x63   : > { %1367 = vrot.lane.b32.xlu1 %v3351_v45, %s3908_s13  ;;  %v902_v12 = vsel %vm4115_vm5, %v897_v36, %v901_v20  ;;  %v907_v46 = vrot.slane %v906_v37, 4  ;;  %v346_v50 = vrot.slane %v344_v40, 5  ;;  %v354_v51 = vshll.u32 %v4344_v34, 16 }
  0x64   : > { %1365 = vrot.lane.b32.xlu0 %v3350_v53, %s3908_s13  ;;  %v936_v30 = vsel %vm4115_vm5, %v931_v42, %v935_v16  ;;  %v341_v62 = vor.u32 %v340_v43, %v337_v28  ;;  %v350_v54 = vrot.slane %v348_v44, 4  ;;  %v3294_v38 = vrot.slane %v4300_v55, 9 }
  0x65   : > { %v3359_v56 = vcombine.low %v926_v41, %v936_v30  ;;  %v912_v26 = vsel %vm4115_vm5, %v907_v46, %v911_v25  ;;  %v356_v48 = vrot.slane %v354_v51, 5  ;;  %v1073_v57 = vrot.slane %v4307_v58, 5  ;;  %v3247_v30 = vld [vmem:[%s4016_s11 + $0x40] sm:$0xf] }
  0x66   : > { %v3358_v49 = vcombine.low %v902_v12, %v912_v26  ;;  %v342_v60 = vrot.slane %v341_v62, 4  ;;  %v351_v61 = vor.u32 %v350_v54, %v346_v50  ;;  %v1076_v39 = vrot.slane %v4327_v7, 5  ;;  %v4409_v12 = vld [vmem:[%s4016_s11 + $0x3c] sm:$0xf]  ;;  %v3251_v26 = vld [vmem:[%s4016_s11 + $0x50] sm:$0x1] }
  0x67   : > { %1407 = vrot.lane.b32.xlu1 %v3359_v56, %s3913_s9  ;;  %v1074_v55 = vsel %vm4075_vm2, %v3294_v38, %v1073_v57  ;;  %v1075_v45 = vrot.slane %v1073_v57, 4  ;;  %v359_v0 = vshrl.u32 %v4360_v47, 16  ;;  %v362_v2 = vshll.u32 %v4360_v47, 16 }
  0x68   : > { %1405 = vrot.lane.b32.xlu0 %v3358_v49, %s3913_s9  ;;  %v347_v58 = vsel %vm4115_vm5, %v342_v60, %v346_v50  ;;  %v352_v1 = vrot.slane %v351_v61, 4  ;;  %v368_v3 = vshll.u32 %v4366_v59, 16  ;;  %v372_v53 = vshrl.u32 %v4366_v59, 16 }
  0x69   : > { %v1077_v7 = vsel %vm4075_vm2, %v1075_v45, %v1076_v39  ;;  %v361_v9 = vrot.slane %v359_v0, 4  ;;  %v364_v33 = vrot.slane %v362_v2, 5  ;;  %v378_v4 = vshll.u32 %v228_v63, 16  ;;  %v3248_v45 = vld [vmem:[%s4016_s11 + $0x44] sm:$0x1] }
  0x6a   : > { %v357_v5 = vsel %vm4115_vm5, %v352_v1, %v356_v48  ;;  %v3366_v6 = vcombine.low %v1074_v55, %v1077_v7  ;;  %v370_v8 = vrot.slane %v368_v3, 5  ;;  %v374_v10 = vrot.slane %v372_v53, 4 }
  0x6b   : > { %v3312_v22 = vcombine.low %v347_v58, %v357_v5  ;;  %v365_v11 = vor.u32 %v364_v33, %v361_v9  ;;  %v380_v27 = vrot.slane %v378_v4, 5  ;;  %v3295_v19 = vrot.slane %v4282_v29, 9 }
  0x6c   : > { %1445 = vrot.lane.b32.xlu0 %v3366_v6, %s3914_s28  ;;  %v375_v14 = vor.u32 %v374_v10, %v370_v8  ;;  %v1080_v16 = vrot.slane %v4291_v17, 5  ;;  %v1083_v18 = vrot.slane %v4319_v52, 5  ;;  %v3229_v20 = vrot.slane %v4360_v47, 9  ;;  %v3249_v52 = vld [vmem:[%s4016_s11 + $0x48] sm:$0xf] }
  0x6d   : > { %1169 = vrot.lane.b32.xlu1 %v3312_v22, %s3911_s25  ;;  %v366_v21 = vrot.slane %v365_v11, 4  ;;  %v494_v23 = vrot.slane %v4366_v59, 5  ;;  %v497_v24 = vrot.slane %v228_v63, 5  ;;  %v3228_v25 = vrot.slane %v4332_v13, 9  ;;  %v3250_v13 = vld [vmem:[%s4016_s11 + $0x4c] sm:$0xf] }
  0x6e   : > { %v376_v29 = vrot.slane %v375_v14, 4  ;;  %v1081_v35 = vsel %vm4075_vm2, %v3295_v19, %v1080_v16  ;;  %v1082_v36 = vrot.slane %v1080_v16, 4  ;;  %v487_v17 = vrot.slane %v4338_v15, 5 }
  0x6f   : > { %v371_v37 = vsel %vm4115_vm5, %v366_v21, %v370_v8  ;;  %v495_v28 = vsel %vm4075_vm2, %v3229_v20, %v494_v23  ;;  %v496_v40 = vrot.slane %v494_v23, 4  ;;  %v490_v41 = vrot.slane %v4344_v34, 5 }
  0x70   : > { %v381_v42 = vsel %vm4115_vm5, %v376_v29, %v380_v27  ;;  %v1084_v43 = vsel %vm4075_vm2, %v1082_v36, %v1083_v18  ;;  %v488_v15 = vsel %vm4075_vm2, %v3228_v25, %v487_v17  ;;  %v489_v44 = vrot.slane %v487_v17, 4  ;;  %v4427_v18 = vld [vmem:[%s4016_s11 + $0x54] sm:$0xf]  ;;  %v4436_v17 = vld [vmem:[%s4016_s11 + $0x58] sm:$0xf] }
  0x71   : > { %v3313_v46 = vcombine.low %v371_v37, %v381_v42  ;;  %v3367_v50 = vcombine.low %v1081_v35, %v1084_v43  ;;  %v498_v51 = vsel %vm4075_vm2, %v496_v40, %v497_v24  ;;  %v662_v34 = vshrl.u32 %v3249_v52, 16 }
  0x72   : > { %v3321_v62 = vcombine.low %v495_v28, %v498_v51  ;;  %v491_v54 = vsel %vm4075_vm2, %v489_v44, %v490_v41  ;;  %v665_v38 = vshll.u32 %v3249_v52, 16  ;;  %v675_v56 = vshrl.u32 %v3250_v13, 16  ;;  %v4443_v41 = vld [vmem:[%s4016_s11 + $0x48] sm:$0xf]  ;;  %v4452_v44 = vld [vmem:[%s4016_s11 + $0x4c] sm:$0xf] }
  0x73   : > { %1171 = vrot.lane.b32.xlu1 %v3313_v46, %s3911_s25  ;;  %1447 = vrot.lane.b32.xlu0 %v3367_v50, %s3914_s28  ;;  %v3320_v48 = vcombine.low %v488_v15, %v491_v54  ;;  %v3329_v57 = vcombine.low %v3249_v52, %v3250_v13  ;;  %v638_v49 = vshrl.u32 %v4409_v12, 16  ;;  %v641_v60 = vshll.u32 %v4409_v12, 16 }
  0x74   : > { %v651_v61 = vshrl.u32 %v3247_v30, 16  ;;  %v3328_v39 = vcombine.low %v4409_v12, %v3247_v30  ;;  %v664_v63 = vrot.slane %v662_v34, 4  ;;  %v667_v55 = vrot.slane %v665_v38, 5  ;;  %v4463_v38 = vld [vmem:[%s4016_s11 + $0x5c] sm:$0x1] }
  0x75   : > { %v671_v0 = vshll.u32 %v3250_v13, 16  ;;  %v677_v2 = vrot.slane %v675_v56, 4  ;;  %v681_v58 = vshll.u32 %v3251_v26, 16  ;;  %v640_v1 = vrot.slane %v638_v49, 4  ;;  %v4471_v49 = vld [vmem:[%s4016_s11 + $0x50] sm:$0x1] }
  0x76   : > { %v668_v3 = vor.u32 %v667_v55, %v664_v63  ;;  %v643_v53 = vrot.slane %v641_v60, 5  ;;  %v647_v7 = vshll.u32 %v3247_v30, 16  ;;  %v653_v9 = vrot.slane %v651_v61, 4  ;;  %v4476_v55 = vld [vmem:[%s4016_s11 + $0x48] sm:$0xf] }
  0x77   : > { %1211 = vrot.lane.b32.xlu1 %v3321_v62, %s3910_s24  ;;  %1209 = vrot.lane.b32.xlu0 %v3320_v48, %s3910_s24  ;;  %v673_v33 = vrot.slane %v671_v0, 5  ;;  %v683_v4 = vrot.slane %v681_v58, 5  ;;  %v657_v5 = vshll.u32 %v3248_v45, 16  ;;  %v3263_v6 = vrot.slane %v3249_v52, 9 }
  0x78   : > { %v669_v8 = vrot.slane %v668_v3, 4  ;;  %v644_v10 = vor.u32 %v643_v53, %v640_v1  ;;  %v649_v22 = vrot.slane %v647_v7, 5  ;;  %v794_v11 = vrot.slane %v3250_v13, 5 }
  0x79   : > { %v678_v27 = vor.u32 %v677_v2, %v673_v33  ;;  %v659_v19 = vrot.slane %v657_v5, 5  ;;  %v797_v14 = vrot.slane %v3251_v26, 5  ;;  %v3262_v16 = vrot.slane %v4409_v12, 9 }
  0x7a   : > { %v674_v20 = vsel %vm4115_vm5, %v669_v8, %v673_v33  ;;  %v645_v21 = vrot.slane %v644_v10, 4  ;;  %v654_v23 = vor.u32 %v653_v9, %v649_v22  ;;  %v795_v24 = vsel %vm4075_vm2, %v3263_v6, %v794_v11  ;;  %v4482_v9 = vld [vmem:[%s4016_s11 + $0x4c] sm:$0xf] }
  0x7b   : > { %1251 = vrot.lane.b32.xlu1 %v3329_v57, %s3907_s12  ;;  %1249 = vrot.lane.b32.xlu0 %v3328_v39, %s3907_s12  ;;  %v679_v25 = vrot.slane %v678_v27, 4  ;;  %v796_v29 = vrot.slane %v794_v11, 4  ;;  %v787_v35 = vrot.slane %v3247_v30, 5  ;;  %v790_v36 = vrot.slane %v3248_v45, 5  ;;  %v4488_v11 = vld [vmem:[%s4016_s11 + $0x50] sm:$0x1] }
  0x7c   : > { %v650_v52 = vsel %vm4115_vm5, %v645_v21, %v649_v22  ;;  %v655_v37 = vrot.slane %v654_v23, 4  ;;  %v962_v28 = vshrl.u32 %v4427_v18, 16  ;;  %v965_v40 = vshll.u32 %v4427_v18, 16 }
  0x7d   : > { %v684_v13 = vsel %vm4115_vm5, %v679_v25, %v683_v4  ;;  %v798_v42 = vsel %vm4075_vm2, %v796_v29, %v797_v14  ;;  %v788_v43 = vsel %vm4075_vm2, %v3262_v16, %v787_v35  ;;  %v789_v15 = vrot.slane %v787_v35, 4 }
  0x7e   : > { %v3337_v12 = vcombine.low %v674_v20, %v684_v13  ;;  %v660_v46 = vsel %vm4115_vm5, %v655_v37, %v659_v19  ;;  %v3345_v50 = vcombine.low %v795_v24, %v798_v42  ;;  %v975_v51 = vshrl.u32 %v4436_v17, 16  ;;  %v4504_v42 = vld [vmem:[%s4016_s11 + $0x54] sm:$0xf] }
  0x7f   : > { %v3336_v34 = vcombine.low %v650_v52, %v660_v46  ;;  %v791_v30 = vsel %vm4075_vm2, %v789_v15, %v790_v36  ;;  %v3353_v62 = vcombine.low %v4427_v18, %v4436_v17  ;;  %v938_v54 = vshrl.u32 %v4443_v41, 16 }
  0x80   : > { %1291 = vrot.lane.b32.xlu1 %v3337_v12, %s3912_s29  ;;  %v3344_v56 = vcombine.low %v788_v43, %v791_v30  ;;  %v941_v26 = vshll.u32 %v4443_v41, 16  ;;  %v951_v48 = vshrl.u32 %v4452_v44, 16  ;;  %v3352_v57 = vcombine.low %v4443_v41, %v4452_v44 }
  0x81   : > { %1289 = vrot.lane.b32.xlu0 %v3336_v34, %s3912_s29  ;;  %v964_v60 = vrot.slane %v962_v28, 4  ;;  %v967_v61 = vrot.slane %v965_v40, 5  ;;  %v971_v39 = vshll.u32 %v4436_v17, 16  ;;  %v977_v63 = vrot.slane %v975_v51, 4 }
  0x82   : > { %v981_v45 = vshll.u32 %v4463_v38, 16  ;;  %v940_v0 = vrot.slane %v938_v54, 4  ;;  %v943_v2 = vrot.slane %v941_v26, 5  ;;  %v947_v58 = vshll.u32 %v4452_v44, 16  ;;  %v234_v54 = vld [vmem:[%s4016_s11 + $0x5c] sm:$0x1] }
  0x83   : > { %v968_v1 = vor.u32 %v967_v61, %v964_v60  ;;  %v973_v3 = vrot.slane %v971_v39, 5  ;;  %v953_v53 = vrot.slane %v951_v48, 4  ;;  %v957_v7 = vshll.u32 %v4471_v49, 16 }
  0x84   : > { %1331 = vrot.lane.b32.xlu1 %v3345_v50, %s3909_s14  ;;  %v983_v33 = vrot.slane %v981_v45, 5  ;;  %v944_v4 = vor.u32 %v943_v2, %v940_v0  ;;  %v949_v5 = vrot.slane %v947_v58, 5  ;;  %v383_v6 = vshrl.u32 %v4476_v55, 16  ;;  %v4510_v50 = vld [vmem:[%s4016_s11 + $0x58] sm:$0xf] }
  0x85   : > { %1329 = vrot.lane.b32.xlu0 %v3344_v56, %s3909_s14  ;;  %v969_v8 = vrot.slane %v968_v1, 4  ;;  %v978_v10 = vor.u32 %v977_v63, %v973_v3  ;;  %v959_v22 = vrot.slane %v957_v7, 5  ;;  %v386_v27 = vshll.u32 %v4476_v55, 16 }
  0x86   : > { %v945_v19 = vrot.slane %v944_v4, 4  ;;  %v954_v14 = vor.u32 %v953_v53, %v949_v5  ;;  %v385_v16 = vrot.slane %v383_v6, 4  ;;  %v392_v20 = vshll.u32 %v4482_v9, 16 }
  0x87   : > { %v974_v21 = vsel %vm4115_vm5, %v969_v8, %v973_v3  ;;  %v979_v23 = vrot.slane %v978_v10, 4  ;;  %v388_v24 = vrot.slane %v386_v27, 5  ;;  %v396_v25 = vshrl.u32 %v4482_v9, 16 }
  0x88   : > { %1371 = vrot.lane.b32.xlu1 %v3353_v62, %s3908_s13  ;;  %v950_v29 = vsel %vm4115_vm5, %v945_v19, %v949_v5  ;;  %v955_v35 = vrot.slane %v954_v14, 4  ;;  %v394_v36 = vrot.slane %v392_v20, 5  ;;  %v402_v52 = vshll.u32 %v4488_v11, 16  ;;  %v4542_v20 = vld [vmem:[%s4016_s11 + $0x60] sm:$0xf] }
  0x89   : > { %1369 = vrot.lane.b32.xlu0 %v3352_v57, %s3908_s13  ;;  %v984_v37 = vsel %vm4115_vm5, %v979_v23, %v983_v33  ;;  %v389_v28 = vor.u32 %v388_v24, %v385_v16  ;;  %v398_v40 = vrot.slane %v396_v25, 4  ;;  %v3296_v13 = vrot.slane %v4443_v41, 9 }
  0x8a   : > { %v3361_v43 = vcombine.low %v974_v21, %v984_v37  ;;  %v960_v15 = vsel %vm4115_vm5, %v955_v35, %v959_v22  ;;  %v404_v12 = vrot.slane %v402_v52, 5  ;;  %v1087_v46 = vrot.slane %v4452_v44, 5  ;;  %v3256_v35 = vld [vmem:[%s4016_s11 + $0x64] sm:$0xf] }
  0x8b   : > { %v3360_v51 = vcombine.low %v950_v29, %v960_v15  ;;  %v390_v34 = vrot.slane %v389_v28, 4  ;;  %v399_v30 = vor.u32 %v398_v40, %v394_v36  ;;  %v1090_v62 = vrot.slane %v4471_v49, 5  ;;  %v4559_v40 = vld [vmem:[%s4016_s11 + $0x54] sm:$0xf] }
  0x8c   : > { %1411 = vrot.lane.b32.xlu1 %v3361_v43, %s3913_s9  ;;  %v1088_v41 = vsel %vm4075_vm2, %v3296_v13, %v1087_v46  ;;  %v1089_v56 = vrot.slane %v1087_v46, 4  ;;  %v407_v26 = vshrl.u32 %v4504_v42, 16  ;;  %v410_v48 = vshll.u32 %v4504_v42, 16 }
  0x8d   : > { %1409 = vrot.lane.b32.xlu0 %v3360_v51, %s3913_s9  ;;  %v395_v44 = vsel %vm4115_vm5, %v390_v34, %v394_v36  ;;  %v400_v57 = vrot.slane %v399_v30, 4  ;;  %v416_v60 = vshll.u32 %v4510_v50, 16  ;;  %v420_v49 = vshrl.u32 %v4510_v50, 16 }
  0x8e   : > { %v1091_v61 = vsel %vm4075_vm2, %v1089_v56, %v1090_v62  ;;  %v409_v39 = vrot.slane %v407_v26, 4  ;;  %v412_v63 = vrot.slane %v410_v48, 5  ;;  %v426_v45 = vshll.u32 %v234_v54, 16  ;;  %v3257_v62 = vld [vmem:[%s4016_s11 + $0x68] sm:$0x1] }
  0x8f   : > { %v405_v0 = vsel %vm4115_vm5, %v400_v57, %v404_v12  ;;  %v3368_v2 = vcombine.low %v1088_v41, %v1091_v61  ;;  %v418_v58 = vrot.slane %v416_v60, 5  ;;  %v422_v1 = vrot.slane %v420_v49, 4  ;;  %v4565_v12 = vld [vmem:[%s4016_s11 + $0x58] sm:$0xf]  ;;  %v3254_v61 = vld [vmem:[%s4016_s11 + $0x5c] sm:$0x1] }
  0x90   : > { %v3314_v3 = vcombine.low %v395_v44, %v405_v0  ;;  %v413_v53 = vor.u32 %v412_v63, %v409_v39  ;;  %v428_v7 = vrot.slane %v426_v45, 5  ;;  %v3297_v33 = vrot.slane %v4427_v18, 9  ;;  %v4533_v10 = vpop.permute.xlu1 %1243 }
  0x91   : > { %1449 = vrot.lane.b32.xlu0 %v3368_v2, %s3914_s28  ;;  %v423_v4 = vor.u32 %v422_v1, %v418_v58  ;;  %v1094_v5 = vrot.slane %v4436_v17, 5  ;;  %v1097_v6 = vrot.slane %v4463_v38, 5  ;;  %v3231_v8 = vrot.slane %v4504_v42, 9  ;;  %v4544_v21 = vpop.permute.xlu0 %1241 }
  0x92   : > { %1173 = vrot.lane.b32.xlu1 %v3314_v3, %s3911_s25  ;;  %v414_v22 = vrot.slane %v413_v53, 4  ;;  %v508_v27 = vrot.slane %v4510_v50, 5  ;;  %v511_v19 = vrot.slane %v234_v54, 5  ;;  %v3230_v18 = vrot.slane %v4476_v55, 9 }
  0x93   : > { %v424_v14 = vrot.slane %v423_v4, 4  ;;  %v1095_v17 = vsel %vm4075_vm2, %v3297_v33, %v1094_v5  ;;  %v1096_v16 = vrot.slane %v1094_v5, 4  ;;  %v501_v38 = vrot.slane %v4482_v9, 5 }
  0x94   : > { %v419_v23 = vsel %vm4115_vm5, %v414_v22, %v418_v58  ;;  %v509_v24 = vsel %vm4075_vm2, %v3231_v8, %v508_v27  ;;  %v510_v25 = vrot.slane %v508_v27, 4  ;;  %v504_v29 = vrot.slane %v4488_v11, 5  ;;  %v4571_v54 = vpop.permute.xlu1 %1363 }
  0x95   : > { %v429_v36 = vsel %vm4115_vm5, %v424_v14, %v428_v7  ;;  %v1098_v52 = vsel %vm4075_vm2, %v1096_v16, %v1097_v6  ;;  %v502_v37 = vsel %vm4075_vm2, %v3230_v18, %v501_v38  ;;  %v503_v28 = vrot.slane %v501_v38, 4  ;;  %v4582_v39 = vpop.permute.xlu0 %1361  ;;  %v4592_v38 = vld [vmem:[%s4016_s11 + $0x6c] sm:$0xf] }
  0x96   : > { %v3315_v13 = vcombine.low %v419_v23, %v429_v36  ;;  %v3369_v43 = vcombine.low %v1095_v17, %v1098_v52  ;;  %v512_v15 = vsel %vm4075_vm2, %v510_v25, %v511_v19  ;;  %v710_v11 = vshrl.u32 %v4542_v20, 16 }
  0x97   : > { %v3323_v46 = vcombine.low %v509_v24, %v512_v15  ;;  %v505_v51 = vsel %vm4075_vm2, %v503_v28, %v504_v29  ;;  %v713_v34 = vshll.u32 %v4542_v20, 16  ;;  %v723_v30 = vshrl.u32 %v3256_v35, 16  ;;  %v3290_v28 = vld [vmem:[%s4016_s11 + $0x70] sm:$0xf] }
  0x98   : > { %1175 = vrot.lane.b32.xlu1 %v3315_v13, %s3911_s25  ;;  %1451 = vrot.lane.b32.xlu0 %v3369_v43, %s3914_s28  ;;  %v3322_v41 = vcombine.low %v502_v37, %v505_v51  ;;  %v3331_v56 = vcombine.low %v4542_v20, %v3256_v35  ;;  %v686_v26 = vshrl.u32 %v4559_v40, 16  ;;  %v689_v48 = vshll.u32 %v4559_v40, 16  ;;  %s3924_s25 = smov 104  }
  0x99   : > { %v699_v44 = vshrl.u32 %v4565_v12, 16  ;;  %v3330_v57 = vcombine.low %v4559_v40, %v4565_v12  ;;  %v712_v60 = vrot.slane %v710_v11, 4  ;;  %v715_v49 = vrot.slane %v713_v34, 5  ;;  %v4609_v11 = vld [vmem:[%s4016_s11 + $0x60] sm:$0xf] }
  0x9a   : > { %v719_v63 = vshll.u32 %v3256_v35, 16  ;;  %v725_v45 = vrot.slane %v723_v30, 4  ;;  %v729_v0 = vshll.u32 %v3257_v62, 16  ;;  %v688_v2 = vrot.slane %v686_v26, 4  ;;  %v4618_v30 = vld [vmem:[%s4016_s11 + $0x64] sm:$0xf] }
  0x9b   : > { %v716_v58 = vor.u32 %v715_v49, %v712_v60  ;;  %v691_v1 = vrot.slane %v689_v48, 5  ;;  %v695_v3 = vshll.u32 %v4565_v12, 16  ;;  %v701_v53 = vrot.slane %v699_v44, 4  ;;  %v4598_v29 = vpop.permute.xlu0 %1321 }
  0x9c   : > { %1215 = vrot.lane.b32.xlu1 %v3323_v46, %s3910_s24  ;;  %1213 = vrot.lane.b32.xlu0 %v3322_v41, %s3910_s24  ;;  %v721_v7 = vrot.slane %v719_v63, 5  ;;  %v731_v33 = vrot.slane %v729_v0, 5  ;;  %v705_v4 = vshll.u32 %v3254_v61, 16  ;;  %v3265_v5 = vrot.slane %v4542_v20, 9 }
  0x9d   : > { %v717_v6 = vrot.slane %v716_v58, 4  ;;  %v692_v8 = vor.u32 %v691_v1, %v688_v2  ;;  %v697_v22 = vrot.slane %v695_v3, 5  ;;  %v808_v27 = vrot.slane %v3256_v35, 5  ;;  %v4588_v19 = vpop.permute.xlu1 %1201  ;;  %v4635_v58 = vld [vmem:[%s4016_s11 + $0x68] sm:$0x1] }
  0x9e   : > { %v726_v18 = vor.u32 %v725_v45, %v721_v7  ;;  %v707_v14 = vrot.slane %v705_v4, 5  ;;  %v811_v17 = vrot.slane %v3257_v62, 5  ;;  %v3264_v16 = vrot.slane %v4559_v40, 9 }
  0x9f   : > { %v722_v23 = vsel %vm4115_vm5, %v717_v6, %v721_v7  ;;  %v693_v24 = vrot.slane %v692_v8, 4  ;;  %v702_v20 = vor.u32 %v701_v53, %v697_v22  ;;  %v809_v25 = vsel %vm4075_vm2, %v3265_v5, %v808_v27 }
  0xa0   : > { %1255 = vrot.lane.b32.xlu1 %v3331_v56, %s3907_s12  ;;  %1253 = vrot.lane.b32.xlu0 %v3330_v57, %s3907_s12  ;;  %v727_v35 = vrot.slane %v726_v18, 4  ;;  %v810_v36 = vrot.slane %v808_v27, 4  ;;  %v801_v52 = vrot.slane %v4565_v12, 5  ;;  %v804_v37 = vrot.slane %v3254_v61, 5  ;;  %v3291_v61 = vld [vmem:[%s4016_s11 + $0x74] sm:$0x1] }
  0xa1   : > { %v698_v40 = vsel %vm4115_vm5, %v693_v24, %v697_v22  ;;  %v703_v13 = vrot.slane %v702_v20, 4  ;;  %v1010_v43 = vshrl.u32 %v4592_v38, 16  ;;  %v1013_v15 = vshll.u32 %v4592_v38, 16  ;;  %v4622_v48 = vpop.permute.xlu1 %1203  ;;  %s3918_s12 = smov 112  }
  0xa2   : > { %v732_v46 = vsel %vm4115_vm5, %v727_v35, %v731_v33  ;;  %v812_v51 = vsel %vm4075_vm2, %v810_v36, %v811_v17  ;;  %v802_v12 = vsel %vm4075_vm2, %v3264_v16, %v801_v52  ;;  %v803_v34 = vrot.slane %v801_v52, 4 }
  0xa3   : > { %v3339_v62 = vcombine.low %v722_v23, %v732_v46  ;;  %v708_v41 = vsel %vm4115_vm5, %v703_v13, %v707_v14  ;;  %v3347_v56 = vcombine.low %v809_v25, %v812_v51  ;;  %v1023_v26 = vshrl.u32 %v3290_v28, 16 }
  0xa4   : > { %v3338_v44 = vcombine.low %v698_v40, %v708_v41  ;;  %v805_v57 = vsel %vm4075_vm2, %v803_v34, %v804_v37  ;;  %v3355_v60 = vcombine.low %v4592_v38, %v3290_v28  ;;  %v986_v49 = vshrl.u32 %v4609_v11, 16 }
  0xa5   : > { %1295 = vrot.lane.b32.xlu1 %v3339_v62, %s3912_s29  ;;  %v3346_v63 = vcombine.low %v802_v12, %v805_v57  ;;  %v989_v45 = vshll.u32 %v4609_v11, 16  ;;  %v999_v0 = vshrl.u32 %v4618_v30, 16  ;;  %v3354_v2 = vcombine.low %v4609_v11, %v4618_v30  ;;  %v1162_v1 = vpop.permute.xlu0 %1161  ;;  %v4642_v20 = vpop.permute.xlu1 %1323 }
  0xa6   : > { %1293 = vrot.lane.b32.xlu0 %v3338_v44, %s3912_s29  ;;  %v1012_v3 = vrot.slane %v1010_v43, 4  ;;  %v1015_v53 = vrot.slane %v1013_v15, 5  ;;  %v1019_v7 = vshll.u32 %v3290_v28, 16  ;;  %v1025_v33 = vrot.slane %v1023_v26, 4  ;;  %v3841_v26 = vld [vmem:[%s4016_s11] sm:$0xf] }
  0xa7   : > { %v1029_v4 = vshll.u32 %v3291_v61, 16  ;;  %v988_v5 = vrot.slane %v986_v49, 4  ;;  %v991_v6 = vrot.slane %v989_v45, 5  ;;  %v995_v8 = vshll.u32 %v4618_v30, 16  ;;  %v3842_v44 = vld [vmem:[%s4016_s11 + $0x4] sm:$0xf] }
  0xa8   : > { %v1016_v22 = vor.u32 %v1015_v53, %v1012_v3  ;;  %v1021_v27 = vrot.slane %v1019_v7, 5  ;;  %v1001_v18 = vrot.slane %v999_v0, 4  ;;  %v1005_v14 = vshll.u32 %v4635_v58, 16  ;;  %v3843_v53 = vld [vmem:[%s4016_s11 + $0xc] sm:$0xf] }
  0xa9   : > { %1335 = vrot.lane.b32.xlu1 %v3347_v56, %s3909_s14  ;;  %v1031_v17 = vrot.slane %v1029_v4, 5  ;;  %v992_v16 = vor.u32 %v991_v6, %v988_v5  ;;  %v997_v23 = vrot.slane %v995_v8, 5  ;;  %v3299_v24 = vrot.slane %v4592_v38, 9  ;;  %v3844_v7 = vld [vmem:[%s4016_s11 + $0x10] sm:$0xf] }
  0xaa   : > { %1333 = vrot.lane.b32.xlu0 %v3346_v63, %s3909_s14  ;;  %v1017_v25 = vrot.slane %v1016_v22, 4  ;;  %v1026_v35 = vor.u32 %v1025_v33, %v1021_v27  ;;  %v1007_v36 = vrot.slane %v1005_v14, 5  ;;  %v1108_v52 = vrot.slane %v3290_v28, 5  ;;  %v1164_v37 = vpop.permute.xlu0 %1163  ;;  %v3700_v33 = vld [vmem:[%s5830_s1 + $0x10] ss:$0 sps:$4 sm:$0x33]  }
  0xab   : > { %v993_v40 = vrot.slane %v992_v16, 4  ;;  %v1002_v13 = vor.u32 %v1001_v18, %v997_v23  ;;  %v1111_v43 = vrot.slane %v3291_v61, 5  ;;  %v3298_v15 = vrot.slane %v4609_v11, 9  ;;  %v3707_v18 = vld [vmem:[%s5831_s2 + $0x14] sm:$0xff]   ;;  %3597 = vmatprep.subr.msk.bf16.mxu0 %vm1639_vm12, %v3700_v33  ;;  %s3921_s14 = smov 80  }
  0xac   : > { %v1022_v46 = vsel %vm4115_vm5, %v1017_v25, %v1021_v27  ;;  %v1027_v38 = vrot.slane %v1026_v35, 4  ;;  %v1109_v51 = vsel %vm4075_vm2, %v3299_v24, %v1108_v52  ;;  %v1110_v12 = vrot.slane %v1108_v52, 4  ;;  %v1284_v63 = vpop.permute.xlu1 %1283  ;;  %v3709_v14 = vld [vmem:[%s5830_s1 + $0x14] sm:$0xff]  }
  0xad   : > { %1375 = vrot.lane.b32.xlu1 %v3355_v60, %s3908_s13  ;;  %v998_v28 = vsel %vm4115_vm5, %v993_v40, %v997_v23  ;;  %v1003_v34 = vrot.slane %v1002_v13, 4  ;;  %v1101_v62 = vrot.slane %v4618_v30, 5  ;;  %v1104_v41 = vrot.slane %v4635_v58, 5 }
  0xae   : > { %1373 = vrot.lane.b32.xlu0 %v3354_v2, %s3908_s13  ;;  %v1032_v11 = vsel %vm4115_vm5, %v1027_v38, %v1031_v17  ;;  %v1112_v56 = vsel %vm4075_vm2, %v1110_v12, %v1111_v43  ;;  %v3300_v57 = vcombine.low %v3841_v26, %v3842_v44  ;;  %v1282_v58 = vpop.permute.xlu0 %1281  ;;  %v3301_v31 = vcombine.low %v3843_v53, %v3844_v7  ;;  %v3711_v43 = vld [vmem:[%s5830_s1 + $0x1c] sm:$0xff]   ;;  %v3710_v38 = vld [vmem:[%s5831_s2 + $0x24] ss:$0 sps:$4 sm:$0x33]   ;;  %v3848_v53 = vld [vmem:[%s4016_s11 + $0x28] sm:$0xf] }
  0xaf   : > { %v3363_v60 = vcombine.low %v1022_v46, %v1032_v11  ;;  %v1008_v30 = vsel %vm4115_vm5, %v1003_v34, %v1007_v36  ;;  %v3371_v49 = vcombine.low %v1109_v51, %v1112_v56  ;;  %v1102_v61 = vsel %vm4075_vm2, %v3298_v15, %v1101_v62  ;;  %v3712_v51 = vld [vmem:[%s5830_s1 + $0x24] ss:$0 sps:$4 sm:$0x33]  }
  0xb0   : > { %v3362_v45 = vcombine.low %v998_v28, %v1008_v30  ;;  %v1103_v0 = vrot.slane %v1101_v62, 4  ;;  %v1460_v2 = vsel %vm1457_vm6, %v3300_v57, %v1162_v1  ;;  %v1463_v6 = vsel %vm1457_vm6, %v3301_v31, %v1164_v37  ;;  %v3845_v57 = vld [vmem:[%s4016_s11 + $0x18] sm:$0xf] }
  0xb1   : > { %1415 = vrot.lane.b32.xlu1 %v3363_v60, %s3913_s9  ;;  %v1484_v3 = vsel %vm1482_vm7, %v1460_v2, %v4588_v19  ;;  %v3701_v19 = vld [vmem:[%s5831_s2 + $0x10] ss:$0 sps:$4 sm:$0x33]   ;;  %v1486_v22 = vsel %vm1482_vm7, %v1463_v6, %v4622_v48  ;;  %v3306_v23 = vcombine.low %v4476_v55, %v4482_v9  ;;  %v3307_v24 = vcombine.low %v4504_v42, %v4510_v50  ;;  %v3846_v60 = vld [vmem:[%s4016_s11 + $0x1c] sm:$0xf] }
  0xb2   : > { %1413 = vrot.lane.b32.xlu0 %v3362_v45, %s3913_s9  ;;  %v1105_v1 = vsel %vm4075_vm2, %v1103_v0, %v1104_v41  ;;  %v1501_v4 = vsel %vm1499_vm8, %v1484_v3, %v4544_v21  ;;  %v1503_v21 = vsel %vm1499_vm8, %v1486_v22, %v4533_v10  ;;  %v1761_v17 = vsel %vm1639_vm12, %v3701_v19, 0  ;;  %3598 = vmatprep.subr.msk.bf16.mxu1 %vm1639_vm12, %v3701_v19  ;;  %v3847_v3 = vld [vmem:[%s4016_s11 + $0x24] sm:$0xf]  ;;  %s3915_s9 = smov 48  }
  0xb3   : > { %v3370_v5 = vcombine.low %v1102_v61, %v1105_v1  ;;  %v1518_v8 = vsel %vm1516_vm9, %v1501_v4, %v1282_v58  ;;  %v1404_v27 = vpop.permute.xlu1 %1403  ;;  %v1520_v10 = vsel %vm1516_vm9, %v1503_v21, %v1284_v63  ;;  %3536 = vmatpush3.bf16.msra.mxu1 %v1761_v17  ;;  %v2515_v34 = vsel %vm1639_vm12, %v3710_v38, 0 }
  0xb4   : > { %v1535_v32 = vsel %vm1533_vm10, %v1518_v8, %v4598_v29  ;;  %v1641_v29 = vsel %vm1639_vm12, %v3700_v33, 0  ;;  %3575 = vmatprep.subr.bf16.mxu1 %v3707_v18  ;;  %v1537_v25 = vsel %vm1533_vm10, %v1520_v10, %v4642_v20  ;;  %v3708_v20 = vld [vmem:[%s5831_s2 + $0x1c] sm:$0xff]   ;;  %v2394_v62 = vsel %vm1639_vm12, %v3712_v51, 0 }
  0xb5   : > { %1455 = vrot.lane.b32.xlu1 %v3371_v49, %s3914_s28  ;;  %v1552_v16 = vsel %vm1550_vm11, %v1535_v32, %v4582_v39  ;;  %3514 = vmatpush3.bf16.msra.mxu0 %v1641_v29  ;;  %v1554_v37 = vsel %vm1550_vm11, %v1537_v25, %v4571_v54  ;;  %v3302_v30 = vcombine.low %v3845_v57, %v3846_v60  ;;  %vm2067_vm2 = vcmask 1043459  }
  0xb6   : > { %1453 = vrot.lane.b32.xlu0 %v3370_v5, %s3914_s28  ;;  %v1402_v48 = vpop.permute.xlu0 %1401  ;;  %3553 = vmatprep.subr.bf16.mxu0 %v3709_v14  ;;  %v1571_v40 = vsel %vm1567_vm13, %v1554_v37, %v1404_v27  ;;  %v3303_v7 = vcombine.low %v3847_v3, %v3848_v53  ;;  %vm2076_vm5 = vcmask 1046534  }
  0xb7   : > { %v1569_v35 = vsel %vm1567_vm13, %v1552_v16, %v1402_v48 }
  0xba   : > { %v1442_v39 = vpop.permute.xlu0 %1441  ;;  %v1166_v36 = vpop.permute.xlu1 %1165 }
  0xbb   : > { %v4714_v52 = vsel %vm1584_vm14, %v1569_v35, %v1442_v39  ;;  %v1466_v63 = vsel %vm1457_vm6, %v3302_v30, %v1166_v36 }
  0xbc   : > { %3515 = vmatprep.mubr.msk.bf16.mxu0 %vm1622_vm15, %v4714_v52  ;;  %3537 = vmatprep.mubr.msk.bf16.mxu1 %vm1622_vm15, %v4714_v52 }
  0xc0   : > { %v1444_v13 = vpop.permute.xlu0 %1443 }
  0xc1   : > { %v1168_v15 = vpop.permute.xlu1 %1167  ;;  %v4730_v46 = vsel %vm1584_vm14, %v1571_v40, %v1444_v13  ;;  %v3849_v13 = vld [vmem:[%s4016_s11 + $0x30] sm:$0xf] }
  0xc2   : > { %3516 = vmatmul.mubr.msk.bf16.vlgmr.msra.gmra.mrb[0].mxu0 %vm1622_vm15, %v4730_v46  ;;  %3538 = vmatmul.mubr.msk.bf16.vlgmr.msra.gmra.mrb[0].mxu1 %vm1622_vm15, %v4730_v46  ;;  %v1469_v5 = vsel %vm1457_vm6, %v3303_v7, %v1168_v15 }
  0xc3   : > { %3576 = vmatpush3.bf16.msra.mxu1 %v3707_v18  ;;  %3554 = vmatpush3.bf16.msra.mxu0 %v3709_v14 }
  0xc4   : > { %v1206_v54 = vpop.permute.xlu0 %1205  ;;  %3577 = vmatprep.subr.bf16.mxu1 %v3708_v20  ;;  %3555 = vmatprep.subr.bf16.mxu0 %v3711_v43 }
  0xc5   : > { %v1208_v12 = vpop.permute.xlu1 %1207  ;;  %v1488_v45 = vsel %vm1482_vm7, %v1466_v63, %v1206_v54 }
  0xc6   : > { %v1490_v22 = vsel %vm1482_vm7, %v1469_v5, %v1208_v12 }
  0xc7   : > { %3578 = vmatpush3.bf16.msra.mxu1 %v3708_v20  ;;  %3556 = vmatpush3.bf16.msra.mxu0 %v3711_v43  ;;  %v3850_v20 = vld [vmem:[%s4016_s11 + $0x34] sm:$0xf]  ;;  %s3460_s11 = sshll.u32 (%p3997_p5), %s3893_s18, 2 }
  0xc8   : > { %v1246_v28 = vpop.permute.xlu0 %1245  ;;  %3600 = vmatprep.subr.msk.bf16.mxu1 %vm1639_vm12, %v3710_v38  ;;  %3599 = vmatprep.subr.msk.bf16.mxu0 %vm1639_vm12, %v3712_v51  ;;  %v3304_v43 = vcombine.low %v3849_v13, %v3850_v20  ;;  %vm2353_vm12 = vcmask 457728   ;;  %s3101_s8 = sadd.s32 (%p3997_p5), %s3889_s17, %s3460_s11 }
  0xc9   : > { %v1248_v41 = vpop.permute.xlu1 %1247  ;;  %v1505_v2 = vsel %vm1499_vm8, %v1488_v45, %v1246_v28 }
  0xca   : > { %v1507_v32 = vsel %vm1499_vm8, %v1490_v22, %v1248_v41 }
  0xcb   : > { %3580 = vmatpush3.bf16.msra.mxu1 %v2515_v34  ;;  %3558 = vmatpush3.bf16.msra.mxu0 %v2394_v62  ;;  %v3305_v62 = vcombine.low %v4360_v47, %v4366_v59 }
  0xcd   : > { %v1288_v11 = vpop.permute.xlu1 %1287 }
  0xce   : > { %v1286_v56 = vpop.permute.xlu0 %1285  ;;  %v1524_v21 = vsel %vm1516_vm9, %v1507_v32, %v1288_v11 }
  0xcf   : > { %v1522_v31 = vsel %vm1516_vm9, %v1505_v2, %v1286_v56 }
  0xd1   : > { %v1328_v26 = vpop.permute.xlu1 %1327 }
  0xd2   : > { %v1326_v44 = vpop.permute.xlu0 %1325  ;;  %v1541_v27 = vsel %vm1533_vm10, %v1524_v21, %v1328_v26 }
  0xd3   : > { %v1539_v33 = vsel %vm1533_vm10, %v1522_v31, %v1326_v44 }
  0xd5   : > { %v1368_v49 = vpop.permute.xlu1 %1367 }
  0xd6   : > { %v1366_v61 = vpop.permute.xlu0 %1365  ;;  %v1558_v18 = vsel %vm1550_vm11, %v1541_v27, %v1368_v49 }
  0xd7   : > { %v1556_v1 = vsel %vm1550_vm11, %v1539_v33, %v1366_v61 }
  0xd9   : > { %v1408_v0 = vpop.permute.xlu1 %1407 }
  0xda   : > { %v1406_v58 = vpop.permute.xlu0 %1405  ;;  %v1575_v14 = vsel %vm1567_vm13, %v1558_v18, %v1408_v0 }
  0xdb   : > { %v1573_v4 = vsel %vm1567_vm13, %v1556_v1, %v1406_v58 }
  0xde   : > { %v1446_v19 = vpop.permute.xlu0 %1445 }
  0xdf   : > { %v1170_v6 = vpop.permute.xlu1 %1169  ;;  %v4759_v8 = vsel %vm1584_vm14, %v1573_v4, %v1446_v19 }
  0xe0   : > { %3519 = vmatprep.mubr.msk.bf16.mxu0 %vm1622_vm15, %v4759_v8  ;;  %3541 = vmatprep.mubr.msk.bf16.mxu1 %vm1622_vm15, %v4759_v8  ;;  %v1472_v38 = vsel %vm1457_vm6, %v3304_v43, %v1170_v6 }
  0xe5   : > { %v1172_v48 = vpop.permute.xlu1 %1171  ;;  %v1448_v29 = vpop.permute.xlu0 %1447 }
  0xe6   : > { %v4772_v17 = vsel %vm1584_vm14, %v1575_v14, %v1448_v29  ;;  %v1475_v57 = vsel %vm1457_vm6, %v3305_v62, %v1172_v48 }
  0xe7   : > { %3520 = vmatmul.mubr.msk.bf16.gmra.mrb[4].mxu0 %vm1622_vm15, %v4772_v17  ;;  %3542 = vmatmul.mubr.msk.bf16.gmra.mrb[4].mxu1 %vm1622_vm15, %v4772_v17 }
  0xe9   : > { %v1212_v10 = vpop.permute.xlu1 %1211  ;;  %v1210_v16 = vpop.permute.xlu0 %1209 }
  0xea   : > { %v1492_v51 = vsel %vm1482_vm7, %v1472_v38, %v1210_v16  ;;  %v1494_v49 = vsel %vm1482_vm7, %v1475_v57, %v1212_v10 }
  0xed   : > { %v1252_v25 = vpop.permute.xlu1 %1251  ;;  %v1250_v35 = vpop.permute.xlu0 %1249 }
  0xee   : > { %v1509_v28 = vsel %vm1499_vm8, %v1492_v51, %v1250_v35  ;;  %v1511_v47 = vsel %vm1499_vm8, %v1494_v49, %v1252_v25 }
  0xf2   : > { %v1292_v39 = vpop.permute.xlu1 %1291 }
  0xf3   : > { %v1290_v36 = vpop.permute.xlu0 %1289  ;;  %v1528_v59 = vsel %vm1516_vm9, %v1511_v47, %v1292_v39 }
  0xf4   : > { %v1526_v41 = vsel %vm1516_vm9, %v1509_v28, %v1290_v36 }
  0xf6   : > { %v1332_v37 = vpop.permute.xlu1 %1331 }
  0xf7   : > { %v1330_v40 = vpop.permute.xlu0 %1329  ;;  %v1545_v61 = vsel %vm1533_vm10, %v1528_v59, %v1332_v37 }
  0xf8   : > { %v1543_v11 = vsel %vm1533_vm10, %v1526_v41, %v1330_v40 }
  0xfa   : > { %v1372_v15 = vpop.permute.xlu1 %1371 }
  0xfb   : > { %v1370_v54 = vpop.permute.xlu0 %1369  ;;  %v1562_v63 = vsel %vm1550_vm11, %v1545_v61, %v1372_v15 }
  0xfc   : > { %v1560_v56 = vsel %vm1550_vm11, %v1543_v11, %v1370_v54 }
  0xfe   : > { %v1412_v12 = vpop.permute.xlu1 %1411 }
  0xff   : > { %v1410_v34 = vpop.permute.xlu0 %1409  ;;  %v1579_v45 = vsel %vm1567_vm13, %v1562_v63, %v1412_v12 }
 0x100   : > { %v1577_v26 = vsel %vm1567_vm13, %v1560_v56, %v1410_v34 }
 0x103   : > { %v1450_v44 = vpop.permute.xlu0 %1449 }
 0x104   : > { %v1174_v60 = vpop.permute.xlu1 %1173  ;;  %v1594_v30 = vsel %vm1584_vm14, %v1577_v26, %v1450_v44 }
 0x105   : > { %3523 = vmatprep.mubr.msk.bf16.mxu0 %vm1622_vm15, %v1594_v30  ;;  %3545 = vmatprep.mubr.msk.bf16.mxu1 %vm1622_vm15, %v1594_v30  ;;  %v1478_v32 = vsel %vm1457_vm6, %v3306_v23, %v1174_v60 }
 0x10a   : > { %v1176_v0 = vpop.permute.xlu1 %1175  ;;  %v1452_v2 = vpop.permute.xlu0 %1451 }
 0x10b   : > { %v1596_v58 = vsel %vm1584_vm14, %v1579_v45, %v1452_v2  ;;  %v1481_v22 = vsel %vm1457_vm6, %v3307_v24, %v1176_v0  ;;  %vm2079_vm6 = vcmask 1047559  }
 0x10c   : > { %3524 = vmatmul.mubr.msk.bf16.gmra.mrb[8].mxu0 %vm1622_vm15, %v1596_v58  ;;  %3546 = vmatmul.mubr.msk.bf16.gmra.mrb[8].mxu1 %vm1622_vm15, %v1596_v58 }
 0x10e   : > { %v1216_v3 = vpop.permute.xlu1 %1215  ;;  %v1214_v53 = vpop.permute.xlu0 %1213 }
 0x10f   : > { %v1498_v21 = vsel %vm1482_vm7, %v1481_v22, %v1216_v3  ;;  %v1496_v27 = vsel %vm1482_vm7, %v1478_v32, %v1214_v53 }
 0x112   : > { %v1256_v7 = vpop.permute.xlu1 %1255  ;;  %v1254_v31 = vpop.permute.xlu0 %1253 }
 0x113   : > { %v1515_v18 = vsel %vm1499_vm8, %v1498_v21, %v1256_v7  ;;  %v1513_v48 = vsel %vm1499_vm8, %v1496_v27, %v1254_v31  ;;  %vm2349_vm8 = vcmask 326656  }
 0x117   : > { %v1296_v33 = vpop.permute.xlu1 %1295 }
 0x118   : > { %v1294_v1 = vpop.permute.xlu0 %1293  ;;  %v1532_v29 = vsel %vm1516_vm9, %v1515_v18, %v1296_v33 }
 0x119   : > { %v1530_v42 = vsel %vm1516_vm9, %v1513_v48, %v1294_v1 }
 0x11b   : > { %v1336_v4 = vpop.permute.xlu1 %1335 }
 0x11c   : > { %v1334_v19 = vpop.permute.xlu0 %1333  ;;  %v1549_v50 = vsel %vm1533_vm10, %v1532_v29, %v1336_v4 }
 0x11d   : > { %v1547_v55 = vsel %vm1533_vm10, %v1530_v42, %v1334_v19  ;;  %vm2351_vm10 = vcmask 392192  }
 0x11f   : > { %v1376_v5 = vpop.permute.xlu1 %1375 }
 0x120   : > { %v1374_v6 = vpop.permute.xlu0 %1373  ;;  %v1566_v9 = vsel %vm1550_vm11, %v1549_v50, %v1376_v5 }
 0x121   : > { %v1564_v23 = vsel %vm1550_vm11, %v1547_v55, %v1374_v6 }
 0x123   : > { %v1416_v14 = vpop.permute.xlu1 %1415 }
 0x124   : > { %v1414_v10 = vpop.permute.xlu0 %1413  ;;  %v1583_v24 = vsel %vm1567_vm13, %v1566_v9, %v1416_v14 }
 0x125   : > { %v1581_v25 = vsel %vm1567_vm13, %v1564_v23, %v1414_v10  ;;  %vm2355_vm13 = vcmask 523264  }
 0x127   : > { %v1456_v16 = vpop.permute.xlu1 %1455 }
 0x128   : > { %v1600_v35 = vsel %vm1584_vm14, %v1583_v24, %v1456_v16  ;;  %v1454_v39 = vpop.permute.xlu0 %1453 }
 0x129   : > { %v1598_v36 = vsel %vm1584_vm14, %v1581_v25, %v1454_v39 }
 0x12a   : > { %3527 = vmatprep.mubr.msk.bf16.mxu0 %vm1622_vm15, %v1598_v36  ;;  %3549 = vmatprep.mubr.msk.bf16.mxu1 %vm1622_vm15, %v1598_v36 }
 0x12b   : > { %3528 = vmatmul.mubr.msk.bf16.gmra.mrb[12].mxu0 %vm1622_vm15, %v1600_v35  ;;  %3550 = vmatmul.mubr.msk.bf16.gmra.mrb[12].mxu1 %vm1622_vm15, %v1600_v35 }
 0x12c   : > { %3559 = vmatprep.mubr.msk.bf16.mxu0 %vm1622_vm15, %v4714_v52  ;;  %3581 = vmatprep.mubr.msk.bf16.mxu1 %vm1622_vm15, %v4714_v52  ;;  %v1860_v52 = vlaneseq }
 0x133   : > { %3560 = vmatmul.mubr.msk.bf16.vlgmr.msra.gmra.mrb[16].mxu0 %vm1622_vm15, %v4730_v46  ;;  %3582 = vmatmul.mubr.msk.bf16.vlgmr.msra.gmra.mrb[16].mxu1 %vm1622_vm15, %v4730_v46  ;;  %v1861_v46 = vshrl.u32 %v1860_v52, 7 }
 0x134   : > { %3563 = vmatprep.mubr.msk.bf16.mxu0 %vm1622_vm15, %v4759_v8  ;;  %3585 = vmatprep.mubr.msk.bf16.mxu1 %vm1622_vm15, %v4759_v8 }
 0x135   : > { %v1902_v8 = vsub.s32 2, %v1861_v46  ;;  %v1922_v37 = vsub.s32 3, %v1861_v46  ;;  %v1862_v61 = vsub.s32 0, %v1861_v46  ;;  %v1882_v7 = vsub.s32 1, %v1861_v46 }
 0x13b   : > { %3564 = vmatmul.mubr.msk.bf16.gmra.mrb[20].mxu0 %vm1622_vm15, %v4772_v17  ;;  %3586 = vmatmul.mubr.msk.bf16.gmra.mrb[20].mxu1 %vm1622_vm15, %v4772_v17  ;;  %v1601_v17 = vld [vmem:[%s5832_s3] sm:$0xf] }
 0x13c   : > { %3567 = vmatprep.mubr.msk.bf16.mxu0 %vm1622_vm15, %v1594_v30  ;;  %3589 = vmatprep.mubr.msk.bf16.mxu1 %vm1622_vm15, %v1594_v30  ;;  %v4855_v40 = vrot.slane %v1601_v17, %v1902_v8  ;;  %v4857_v13 = vrot.slane %v1601_v17, %v1922_v37  ;;  %v4867_v53 = vrot.slane %v1601_v17, %v1862_v61 }
 0x13d   : > { %v4870_v1 = vrot.slane %v1601_v17, %v1882_v7 }
 0x143   : > { %3568 = vmatmul.mubr.msk.bf16.gmra.mrb[24].mxu0 %vm1622_vm15, %v1596_v58  ;;  %3590 = vmatmul.mubr.msk.bf16.gmra.mrb[24].mxu1 %vm1622_vm15, %v1596_v58 }
 0x144   : > { %3571 = vmatprep.mubr.msk.bf16.mxu0 %vm1622_vm15, %v1598_v36  ;;  %3593 = vmatprep.mubr.msk.bf16.mxu1 %vm1622_vm15, %v1598_v36 }
 0x14b   : > { %3572 = vmatmul.mubr.msk.bf16.gmra.mrb[28].mxu0 %vm1622_vm15, %v1600_v35  ;;  %3594 = vmatmul.mubr.msk.bf16.gmra.mrb[28].mxu1 %vm1622_vm15, %v1600_v35  ;;  %vm2357_vm15 = vcmask 588800  }
 0x195   : > { %v3517_v20 = vpop.f32.mrb[0].mxu0  ;;  %v3539_v43 = vpop.f32.mrb[0].mxu1 }
 0x196   : > { %v1906_v15 = vmul.f32 %v3539_v43, %v4855_v40  ;;  %v1677_v54 = vpop.f32.mrb[1].mxu0  ;;  %v1797_v38 = vpop.f32.mrb[1].mxu1  ;;  %v1866_v33 = vmul.f32 %v3517_v20, %v4867_v53 }
 0x197   : > { %v1904_v51 = vmul.f32 %v4855_v40, %v1797_v38  ;;  %v3518_v12 = vpop.f32.mrb[2].mxu0  ;;  %v3540_v28 = vpop.f32.mrb[2].mxu1  ;;  %v1864_v4 = vmul.f32 %v4867_v53, %v1677_v54 }
 0x198   : > { %v1926_v34 = vadd.f32 %v4857_v13, %v1906_v15  ;;  %v1907_v62 = vmul.f32 %v3540_v28, %v4855_v40  ;;  %v1680_v41 = vpop.f32.mrb[3].mxu0  ;;  %v1800_v11 = vpop.f32.mrb[3].mxu1  ;;  %v1867_v19 = vmul.f32 %v3518_v12, %v4867_v53  ;;  %v1886_v6 = vadd.f32 %v4870_v1, %v1866_v33 }
 0x199   : > { %v1924_v56 = vadd.f32 %v4857_v13, %v1904_v51  ;;  %v1905_v26 = vmul.f32 %v4855_v40, %v1800_v11  ;;  %v1865_v5 = vmul.f32 %v4867_v53, %v1680_v41  ;;  %v1884_v32 = vadd.f32 %v4870_v1, %v1864_v4 }
 0x19a   : > { %v3396_v44 = vmul.f32 -1.442695, %v1926_v34  ;;  %v1927_v57 = vadd.f32 %v4857_v13, %v1907_v62  ;;  %v1887_v18 = vadd.f32 %v4870_v1, %v1867_v19 }
 0x19b   : > { %v3394_v60 = vmul.f32 -1.442695, %v1924_v56  ;;  %v1925_v30 = vadd.f32 %v4857_v13, %v1905_v26  ;;  %v1885_v29 = vadd.f32 %v4870_v1, %v1865_v5 }
 0x19c   : > { %3713 = vpow2.f32 %v3396_v44  ;;  %v3397_v49 = vmul.f32 -1.442695, %v1927_v57 }
 0x19d   : > { %3715 = vpow2.f32 %v3394_v60  ;;  %v3395_v47 = vmul.f32 -1.442695, %v1925_v30 }
 0x19e   : > { %3717 = vpow2.f32 %v3397_v49 }
 0x19f   : > { %3719 = vpow2.f32 %v3395_v47 }
 0x1a6   : > { %v3714_v59 = vpop.eup %3713 }
 0x1a7   : > { %v3716_v63 = vpop.eup %3715  ;;  %v1990_v45 = vadd.f32 1.0, %v3714_v59 }
 0x1a8   : > { %v3718_v0 = vpop.eup %3717  ;;  %v1988_v2 = vadd.f32 1.0, %v3716_v63 }
 0x1a9   : > { %v3720_v58 = vpop.eup %3719  ;;  %3721 = vrcp.f32 %v1990_v45  ;;  %v1991_v3 = vadd.f32 1.0, %v3718_v0 }
 0x1aa   : > { %3723 = vrcp.f32 %v1988_v2  ;;  %v1989_v31 = vadd.f32 1.0, %v3720_v58 }
 0x1ab   : > { %3725 = vrcp.f32 %v1991_v3 }
 0x1ac   : > { %3727 = vrcp.f32 %v1989_v31 }
 0x1b3   : > { %v3722_v22 = vpop.eup %3721 }
 0x1b4   : > { %v3724_v21 = vpop.eup %3723  ;;  %v4877_v27 = vmul.f32 %v3722_v22, %v1886_v6 }
 0x1b5   : > { %v3726_v14 = vpop.eup %3725  ;;  %v4880_v48 = vmul.f32 %v3724_v21, %v1884_v32 }
 0x1b6   : > { %v3728_v10 = vpop.eup %3727  ;;  %v4883_v42 = vmul.f32 %v3726_v14, %v1887_v18  ;;  %v2168_v50 = vrot.slane %v4877_v27, 5  ;;  %v2100_v55 = vrot.slane %v4877_v27, 1  ;;  %v2117_v9 = vrot.slane %v4877_v27, 2 }
 0x1b7   : > { %v4888_v23 = vmul.f32 %v3728_v10, %v1885_v29  ;;  %v2167_v24 = vrot.slane %v4880_v48, 6  ;;  %v2082_v16 = vrot.slane %v4880_v48, 1  ;;  %v2099_v25 = vrot.slane %v4880_v48, 2 }
 0x1b8   : > { %v2116_v35 = vrot.slane %v4880_v48, 3  ;;  %v2133_v39 = vrot.slane %v4880_v48, 4  ;;  %v2134_v36 = vrot.slane %v4877_v27, 3  ;;  %v2150_v52 = vrot.slane %v4880_v48, 5 }
 0x1b9   : > { %v4898_v46 = vsel %vm2061_vm0, %v2168_v50, %v2167_v24  ;;  %v4902_v8 = vsel %vm2061_vm0, %v4877_v27, %v2082_v16  ;;  %v4905_v17 = vsel %vm2061_vm0, %v2100_v55, %v2099_v25  ;;  %v2151_v37 = vrot.slane %v4877_v27, 4 }
 0x1ba   : > { %v4908_v20 = vpop.f32.mrb[4].mxu0  ;;  %v3543_v43 = vpop.f32.mrb[4].mxu1  ;;  %v4911_v15 = vsel %vm2061_vm0, %v2117_v9, %v2116_v35  ;;  %v4914_v54 = vsel %vm2061_vm0, %v2134_v36, %v2133_v39  ;;  %v2184_v38 = vrot.slane %v4880_v48, 7  ;;  %v2185_v51 = vrot.slane %v4877_v27, 6 }
 0x1bb   : > { %v1910_v12 = vmul.f32 %v3543_v43, %v4855_v40  ;;  %v1693_v28 = vpop.f32.mrb[5].mxu0  ;;  %v1813_v34 = vpop.f32.mrb[5].mxu1  ;;  %v4920_v62 = vsel %vm2061_vm0, %v2151_v37, %v2150_v52  ;;  %v2311_v41 = vrot.slane %v4888_v23, 6  ;;  %v2312_v57 = vrot.slane %v4883_v42, 5 }
 0x1bc   : > { %v1908_v11 = vmul.f32 %v4855_v40, %v1813_v34  ;;  %v3522_v56 = vpop.f32.mrb[6].mxu0  ;;  %v3544_v26 = vpop.f32.mrb[6].mxu1  ;;  %v4925_v44 = vsel %vm2061_vm0, %v2185_v51, %v2184_v38  ;;  %v2209_v3 = vrot.slane %v4883_v42, 7  ;;  %v2226_v31 = vrot.slane %v4888_v23, 1 }
 0x1bd   : > { %v1930_v60 = vadd.f32 %v4857_v13, %v1910_v12  ;;  %v1911_v30 = vmul.f32 %v3544_v26, %v4855_v40  ;;  %v1696_v49 = vpop.f32.mrb[7].mxu0  ;;  %v1816_v47 = vpop.f32.mrb[7].mxu1  ;;  %v4934_v0 = vsel %vm2061_vm0, %v2312_v57, %v2311_v41  ;;  %v2243_v33 = vrot.slane %v4888_v23, 2 }
 0x1be   : > { %v1928_v59 = vadd.f32 %v4857_v13, %v1908_v11  ;;  %v1909_v61 = vmul.f32 %v4855_v40, %v1816_v47  ;;  %v4942_v19 = vsel %vm2061_vm0, %v2209_v3, %v4888_v23  ;;  %v2244_v5 = vrot.slane %v4883_v42, 1 }
 0x1bf   : > { %v3400_v63 = vmul.f32 -1.442695, %v1930_v60  ;;  %v1931_v45 = vadd.f32 %v4857_v13, %v1911_v30  ;;  %v4947_v6 = vsel %vm2061_vm0, %v4883_v42, %v2226_v31  ;;  %v2260_v22 = vrot.slane %v4888_v23, 3 }
 0x1c0   : > { %v3398_v2 = vmul.f32 -1.442695, %v1928_v59  ;;  %v1929_v58 = vadd.f32 %v4857_v13, %v1909_v61  ;;  %v2261_v32 = vrot.slane %v4883_v42, 2  ;;  %v4952_v21 = vsel %vm2061_vm0, %v2244_v5, %v2243_v33 }
 0x1c1   : > { %3729 = vpow2.f32 %v3400_v63  ;;  %v3401_v7 = vmul.f32 -1.442695, %v1931_v45  ;;  %v2277_v18 = vrot.slane %v4888_v23, 4  ;;  %v2278_v14 = vrot.slane %v4883_v42, 3 }
 0x1c2   : > { %3731 = vpow2.f32 %v3398_v2  ;;  %v3399_v4 = vmul.f32 -1.442695, %v1929_v58  ;;  %v4957_v29 = vsel %vm2061_vm0, %v2261_v32, %v2260_v22  ;;  %v2294_v10 = vrot.slane %v4888_v23, 5 }
 0x1c3   : > { %3733 = vpow2.f32 %v3401_v7  ;;  %v2295_v50 = vrot.slane %v4883_v42, 4  ;;  %v2328_v55 = vrot.slane %v4888_v23, 7  ;;  %v4963_v9 = vsel %vm2061_vm0, %v2278_v14, %v2277_v18 }
 0x1c4   : > { %3735 = vpow2.f32 %v3399_v4  ;;  %v2329_v24 = vrot.slane %v4883_v42, 6  ;;  %v2060_v16 = vrot.slane %v4877_v27, 7  ;;  %v1870_v51 = vmul.f32 %v4908_v20, %v4867_v53 }
 0x1c5   : > { %v4968_v25 = vsel %vm2061_vm0, %v2295_v50, %v2294_v10  ;;  %v1868_v12 = vmul.f32 %v4867_v53, %v1693_v28  ;;  %v1869_v34 = vmul.f32 %v4867_v53, %v1696_v49 }
 0x1c6   : > { %v4971_v35 = vsel %vm2061_vm0, %v2329_v24, %v2328_v55  ;;  %v4975_v39 = vsel %vm2061_vm0, %v2060_v16, %v4880_v48  ;;  %v1871_v48 = vmul.f32 %v3522_v56, %v4867_v53  ;;  %v1890_v41 = vadd.f32 %v4870_v1, %v1870_v51 }
 0x1c7   : > { %v1888_v26 = vadd.f32 %v4870_v1, %v1868_v12  ;;  %v1889_v20 = vadd.f32 %v4870_v1, %v1869_v34 }
 0x1c8   : > { %v1891_v30 = vadd.f32 %v4870_v1, %v1871_v48 }
 0x1cb   : > { %v3730_v36 = vpop.eup %3729 }
 0x1cc   : > { %v3732_v52 = vpop.eup %3731  ;;  %v1994_v23 = vadd.f32 1.0, %v3730_v36 }
 0x1cd   : > { %v3734_v37 = vpop.eup %3733  ;;  %v1992_v43 = vadd.f32 1.0, %v3732_v52 }
 0x1ce   : > { %v3736_v38 = vpop.eup %3735  ;;  %3737 = vrcp.f32 %v1994_v23  ;;  %v1995_v42 = vadd.f32 1.0, %v3734_v37 }
 0x1cf   : > { %3739 = vrcp.f32 %v1992_v43  ;;  %v1993_v27 = vadd.f32 1.0, %v3736_v38 }
 0x1d0   : > { %3741 = vrcp.f32 %v1995_v42 }
 0x1d1   : > { %3743 = vrcp.f32 %v1993_v27 }
 0x1d8   : > { %v3738_v11 = vpop.eup %3737 }
 0x1d9   : > { %v3740_v57 = vpop.eup %3739  ;;  %v4984_v60 = vmul.f32 %v3738_v11, %v1890_v41 }
 0x1da   : > { %v3742_v47 = vpop.eup %3741  ;;  %v4987_v59 = vmul.f32 %v3740_v57, %v1888_v26 }
 0x1db   : > { %v3744_v28 = vpop.eup %3743  ;;  %v4990_v56 = vmul.f32 %v3742_v47, %v1891_v30  ;;  %v2172_v49 = vrot.slane %v4984_v60, 3  ;;  %v2103_v61 = vrot.slane %v4984_v60, 7  ;;  %v2086_v3 = vrot.slane %v4984_v60, 6 }
 0x1dc   : > { %v4994_v63 = vmul.f32 %v3744_v28, %v1889_v20  ;;  %v2170_v45 = vrot.slane %v4987_v59, 4  ;;  %v2084_v2 = vrot.slane %v4987_v59, 7  ;;  %v2102_v58 = vsel %vm2064_vm1, %v4987_v59, %v4905_v17 }
 0x1dd   : > { %v5003_v7 = vsel %vm2067_vm2, %v2103_v61, %v2102_v58  ;;  %v2119_v31 = vrot.slane %v4987_v59, 1  ;;  %v2136_v33 = vrot.slane %v4987_v59, 2  ;;  %v2138_v22 = vrot.slane %v4984_v60, 1 }
 0x1de   : > { %v2171_v4 = vsel %vm2064_vm1, %v2170_v45, %v4898_v46  ;;  %v2085_v5 = vsel %vm2064_vm1, %v2084_v2, %v4902_v8  ;;  %v2153_v32 = vrot.slane %v4987_v59, 3  ;;  %v2187_v37 = vrot.slane %v4987_v59, 5 }
 0x1df   : > { %v5013_v17 = vpop.f32.mrb[8].mxu0  ;;  %v3547_v18 = vpop.f32.mrb[8].mxu1  ;;  %v5016_v14 = vsel %vm2067_vm2, %v2172_v49, %v2171_v4  ;;  %v5019_v10 = vsel %vm2067_vm2, %v2086_v3, %v2085_v5  ;;  %v2120_v50 = vsel %vm2064_vm1, %v2119_v31, %v4911_v15  ;;  %v2137_v46 = vsel %vm2064_vm1, %v2136_v33, %v4914_v54 }
 0x1e0   : > { %v1914_v8 = vmul.f32 %v3547_v18, %v4855_v40  ;;  %v5026_v55 = vpop.f32.mrb[9].mxu0  ;;  %v1829_v24 = vpop.f32.mrb[9].mxu1  ;;  %v5030_v16 = vsel %vm2067_vm2, %v4984_v60, %v2120_v50  ;;  %v5033_v36 = vsel %vm2067_vm2, %v2138_v22, %v2137_v46  ;;  %v2154_v54 = vsel %vm2064_vm1, %v2153_v32, %v4920_v62 }
 0x1e1   : > { %v1912_v52 = vmul.f32 %v4855_v40, %v1829_v24  ;;  %v5036_v23 = vpop.f32.mrb[10].mxu0  ;;  %v3548_v15 = vpop.f32.mrb[10].mxu1  ;;  %v2155_v51 = vrot.slane %v4984_v60, 2  ;;  %v2188_v57 = vsel %vm2064_vm1, %v2187_v37, %v4925_v44  ;;  %v2189_v47 = vrot.slane %v4984_v60, 4 }
 0x1e2   : > { %v1934_v43 = vadd.f32 %v4857_v13, %v1914_v8  ;;  %v1915_v38 = vmul.f32 %v3548_v15, %v4855_v40  ;;  %v5043_v42 = vpop.f32.mrb[11].mxu0  ;;  %v1832_v27 = vpop.f32.mrb[11].mxu1  ;;  %v2314_v20 = vrot.slane %v4994_v63, 4  ;;  %v2316_v49 = vrot.slane %v4990_v56, 3 }
 0x1e3   : > { %v1932_v12 = vadd.f32 %v4857_v13, %v1912_v52  ;;  %v1913_v48 = vmul.f32 %v4855_v40, %v1832_v27  ;;  %v5050_v62 = vsel %vm2067_vm2, %v2155_v51, %v2154_v54  ;;  %v2211_v61 = vrot.slane %v4994_v63, 6 }
 0x1e4   : > { %v3404_v34 = vmul.f32 -1.442695, %v1934_v43  ;;  %v1935_v41 = vadd.f32 %v4857_v13, %v1915_v38  ;;  %v5060_v45 = vsel %vm2067_vm2, %v2189_v47, %v2188_v57  ;;  %v2315_v2 = vsel %vm2064_vm1, %v2314_v20, %v4934_v0 }
 0x1e5   : > { %v3402_v11 = vmul.f32 -1.442695, %v1932_v12  ;;  %v1933_v26 = vadd.f32 %v4857_v13, %v1913_v48  ;;  %v2213_v44 = vrot.slane %v4990_v56, 5  ;;  %v5066_v58 = vsel %vm2067_vm2, %v2316_v49, %v2315_v2 }
 0x1e6   : > { %3745 = vpow2.f32 %v3404_v34  ;;  %v3405_v30 = vmul.f32 -1.442695, %v1935_v41  ;;  %v2212_v3 = vsel %vm2064_vm1, %v2211_v61, %v4942_v19  ;;  %v2228_v31 = vrot.slane %v4994_v63, 7 }
 0x1e7   : > { %3747 = vpow2.f32 %v3402_v11  ;;  %v3403_v28 = vmul.f32 -1.442695, %v1933_v26  ;;  %v5072_v33 = vsel %vm2067_vm2, %v2213_v44, %v2212_v3  ;;  %v2230_v4 = vrot.slane %v4990_v56, 6 }
 0x1e8   : > { %3749 = vpow2.f32 %v3405_v30  ;;  %v2246_v0 = vsel %vm2064_vm1, %v4994_v63, %v4952_v21  ;;  %v2247_v5 = vrot.slane %v4990_v56, 7  ;;  %v2229_v22 = vsel %vm2064_vm1, %v2228_v31, %v4947_v6 }
 0x1e9   : > { %3751 = vpow2.f32 %v3403_v28  ;;  %v2263_v32 = vrot.slane %v4994_v63, 1  ;;  %v2280_v19 = vrot.slane %v4994_v63, 2  ;;  %v2282_v18 = vrot.slane %v4990_v56, 1 }
 0x1ea   : > { %v5085_v50 = vsel %vm2067_vm2, %v2230_v4, %v2229_v22  ;;  %v5088_v46 = vsel %vm2067_vm2, %v2247_v5, %v2246_v0  ;;  %v2297_v8 = vrot.slane %v4994_v63, 3  ;;  %v2299_v21 = vrot.slane %v4990_v56, 2 }
 0x1eb   : > { %v2264_v24 = vsel %vm2064_vm1, %v2263_v32, %v4957_v29  ;;  %v2281_v6 = vsel %vm2064_vm1, %v2280_v19, %v4963_v9  ;;  %v2331_v52 = vrot.slane %v4994_v63, 5  ;;  %v2333_v15 = vrot.slane %v4990_v56, 4 }
 0x1ec   : > { %v5100_v54 = vsel %vm2067_vm2, %v4990_v56, %v2264_v24  ;;  %v5103_v37 = vsel %vm2067_vm2, %v2282_v18, %v2281_v6  ;;  %v2298_v43 = vsel %vm2064_vm1, %v2297_v8, %v4968_v25  ;;  %v2063_v38 = vrot.slane %v4987_v59, 6 }
 0x1ed   : > { %v5109_v29 = vsel %vm2067_vm2, %v2299_v21, %v2298_v43  ;;  %v2332_v9 = vsel %vm2064_vm1, %v2331_v52, %v4971_v35  ;;  %v2066_v63 = vrot.slane %v4984_v60, 5  ;;  %v1874_v60 = vmul.f32 %v5013_v17, %v4867_v53 }
 0x1ee   : > { %v5115_v56 = vsel %vm2067_vm2, %v2333_v15, %v2332_v9  ;;  %v2065_v51 = vsel %vm2064_vm1, %v2063_v38, %v4975_v39  ;;  %v1872_v39 = vmul.f32 %v4867_v53, %v5026_v55  ;;  %v1875_v26 = vmul.f32 %v5036_v23, %v4867_v53 }
 0x1ef   : > { %v5120_v25 = vsel %vm2067_vm2, %v2066_v63, %v2065_v51  ;;  %v1873_v57 = vmul.f32 %v4867_v53, %v5043_v42  ;;  %v1894_v30 = vadd.f32 %v4870_v1, %v1874_v60 }
 0x1f0   : > { %v3746_v27 = vpop.eup %3745  ;;  %v1892_v20 = vadd.f32 %v4870_v1, %v1872_v39  ;;  %v1895_v61 = vadd.f32 %v4870_v1, %v1875_v26 }
 0x1f1   : > { %v3748_v12 = vpop.eup %3747  ;;  %v1998_v48 = vadd.f32 1.0, %v3746_v27  ;;  %v1893_v23 = vadd.f32 %v4870_v1, %v1873_v57 }
 0x1f2   : > { %v3750_v59 = vpop.eup %3749  ;;  %v1996_v34 = vadd.f32 1.0, %v3748_v12 }
 0x1f3   : > { %v3752_v41 = vpop.eup %3751  ;;  %3753 = vrcp.f32 %v1998_v48  ;;  %v1999_v11 = vadd.f32 1.0, %v3750_v59 }
 0x1f4   : > { %3755 = vrcp.f32 %v1996_v34  ;;  %v1997_v35 = vadd.f32 1.0, %v3752_v41 }
 0x1f5   : > { %3757 = vrcp.f32 %v1999_v11 }
 0x1f6   : > { %3759 = vrcp.f32 %v1997_v35 }
 0x1fd   : > { %v3754_v47 = vpop.eup %3753 }
 0x1fe   : > { %v3756_v28 = vpop.eup %3755  ;;  %v5132_v49 = vmul.f32 %v3754_v47, %v1894_v30  ;;  %v3529_v17 = vpop.f32.mrb[12].mxu0 }
 0x1ff   : > { %v3551_v2 = vpop.f32.mrb[12].mxu1  ;;  %v3758_v55 = vpop.eup %3757  ;;  %v5135_v44 = vmul.f32 %v3756_v28, %v1892_v20  ;;  %v1878_v42 = vmul.f32 %v3529_v17, %v4867_v53 }
 0x200   : > { %v1918_v3 = vmul.f32 %v3551_v2, %v4855_v40  ;;  %v1725_v31 = vpop.f32.mrb[13].mxu0  ;;  %v1845_v4 = vpop.f32.mrb[13].mxu1  ;;  %v5140_v5 = vmul.f32 %v3758_v55, %v1895_v61  ;;  %v2176_v8 = vrot.slane %v5132_v49, 1  ;;  %v2090_v26 = vrot.slane %v5132_v49, 4 }
 0x201   : > { %v3760_v0 = vpop.eup %3759  ;;  %v1876_v22 = vmul.f32 %v4867_v53, %v1725_v31  ;;  %v1916_v32 = vmul.f32 %v4855_v40, %v1845_v4  ;;  %v3530_v19 = vpop.f32.mrb[14].mxu0  ;;  %v5148_v24 = vadd.f32 %v4870_v1, %v1878_v42  ;;  %v2174_v59 = vrot.slane %v5135_v44, 2 }
 0x202   : > { %v3552_v18 = vpop.f32.mrb[14].mxu1  ;;  %v5145_v21 = vmul.f32 %v3760_v0, %v1893_v23  ;;  %v1938_v6 = vadd.f32 %v4857_v13, %v1918_v3  ;;  %v1879_v52 = vmul.f32 %v3530_v19, %v4867_v53  ;;  %v1728_v15 = vpop.f32.mrb[15].mxu0  ;;  %v2088_v35 = vrot.slane %v5135_v44, 5 }
 0x203   : > { %v1848_v43 = vpop.f32.mrb[15].mxu1  ;;  %v5153_v38 = vadd.f32 %v4870_v1, %v1876_v22  ;;  %v1936_v9 = vadd.f32 %v4857_v13, %v1916_v32  ;;  %v1919_v63 = vmul.f32 %v3552_v18, %v4855_v40  ;;  %v1877_v27 = vmul.f32 %v4867_v53, %v1728_v15 }
 0x204   : > { %v3408_v51 = vmul.f32 -1.442695, %v1938_v6  ;;  %v5159_v12 = vadd.f32 %v4870_v1, %v1879_v52  ;;  %v1917_v48 = vmul.f32 %v4855_v40, %v1848_v43  ;;  %v2175_v39 = vsel %vm2070_vm3, %v2174_v59, %v5016_v14 }
 0x205   : > { %v3406_v34 = vmul.f32 -1.442695, %v1936_v9  ;;  %v1939_v41 = vadd.f32 %v4857_v13, %v1919_v63  ;;  %v5165_v11 = vadd.f32 %v4870_v1, %v1877_v27  ;;  %v5173_v20 = vsel %vm2073_vm4, %v2176_v8, %v2175_v39 }
 0x206   : > { %3761 = vpow2.f32 %v3408_v51  ;;  %v1937_v60 = vadd.f32 %v4857_v13, %v1917_v48  ;;  %v3561_v30 = vpop.f32.mrb[16].mxu0  ;;  %v3583_v47 = vpop.f32.mrb[16].mxu1  ;;  %v2089_v28 = vsel %vm2070_vm3, %v2088_v35, %v5019_v10  ;;  %v2105_v0 = vrot.slane %v5135_v44, 6 }
 0x207   : > { %3763 = vpow2.f32 %v3406_v34  ;;  %v3409_v57 = vmul.f32 -1.442695, %v1939_v41  ;;  %v2616_v17 = vmul.f32 %v3561_v30, %v4867_v53  ;;  %v2648_v2 = vmul.f32 %v3583_v47, %v4855_v40  ;;  %v2430_v55 = vpop.f32.mrb[17].mxu0  ;;  %v2551_v23 = vpop.f32.mrb[17].mxu1 }
 0x208   : > { %v3407_v61 = vmul.f32 -1.442695, %v1937_v60  ;;  %v5180_v14 = vsel %vm2073_vm4, %v2090_v26, %v2089_v28  ;;  %v2614_v42 = vmul.f32 %v2430_v55, %v4867_v53  ;;  %v2646_v3 = vmul.f32 %v2551_v23, %v4855_v40  ;;  %v3562_v31 = vpop.f32.mrb[18].mxu0  ;;  %v3584_v4 = vpop.f32.mrb[18].mxu1 }
 0x209   : > { %3765 = vpow2.f32 %v3409_v57  ;;  %v5186_v10 = vadd.f32 %v2616_v17, %v4870_v1  ;;  %v2664_v22 = vadd.f32 %v2648_v2, %v4857_v13  ;;  %v2617_v32 = vmul.f32 %v3562_v31, %v4867_v53  ;;  %v2433_v19 = vpop.f32.mrb[19].mxu0  ;;  %v2554_v18 = vpop.f32.mrb[19].mxu1 }
 0x20a   : > { %3767 = vpow2.f32 %v3407_v61  ;;  %v5191_v8 = vadd.f32 %v2614_v42, %v4870_v1  ;;  %v2662_v6 = vadd.f32 %v2646_v3, %v4857_v13  ;;  %v2649_v52 = vmul.f32 %v3584_v4, %v4855_v40 }
 0x20b   : > { %v2615_v15 = vmul.f32 %v2433_v19, %v4867_v53  ;;  %v3444_v43 = vmul.f32 -1.442695, %v2664_v22  ;;  %v5197_v9 = vadd.f32 %v2617_v32, %v4870_v1  ;;  %v2647_v63 = vmul.f32 %v2554_v18, %v4855_v40 }
 0x20c   : > { %v2106_v27 = vsel %vm2070_vm3, %v2105_v0, %v5003_v7  ;;  %v3442_v51 = vmul.f32 -1.442695, %v2662_v6  ;;  %v2665_v48 = vadd.f32 %v2649_v52, %v4857_v13  ;;  %v2107_v34 = vrot.slane %v5132_v49, 5 }
 0x20d   : > { %v5204_v59 = vadd.f32 %v2615_v15, %v4870_v1  ;;  %3769 = vpow2.f32 %v3444_v43  ;;  %v2663_v41 = vadd.f32 %v2647_v63, %v4857_v13  ;;  %v2122_v35 = vrot.slane %v5135_v44, 7 }
 0x20e   : > { %v2124_v60 = vrot.slane %v5132_v49, 6  ;;  %3771 = vpow2.f32 %v3442_v51  ;;  %v3445_v39 = vmul.f32 -1.442695, %v2665_v48  ;;  %v3565_v26 = vpop.f32.mrb[20].mxu0  ;;  %v3587_v57 = vpop.f32.mrb[20].mxu1  ;;  %v5211_v7 = vsel %vm2073_vm4, %v2107_v34, %v2106_v27 }
 0x20f   : > { %v5216_v30 = vsel %vm2070_vm3, %v5135_v44, %v5033_v36  ;;  %v3443_v28 = vmul.f32 -1.442695, %v2663_v41  ;;  %v2620_v61 = vmul.f32 %v3565_v26, %v4867_v53  ;;  %v2652_v17 = vmul.f32 %v3587_v57, %v4855_v40  ;;  %v2446_v2 = vpop.f32.mrb[21].mxu0  ;;  %v2567_v55 = vpop.f32.mrb[21].mxu1 }
 0x210   : > { %v3762_v47 = vpop.eup %3761  ;;  %v2123_v23 = vsel %vm2070_vm3, %v2122_v35, %v5030_v16  ;;  %3773 = vpow2.f32 %v3445_v39  ;;  %v2618_v31 = vmul.f32 %v2446_v2, %v4867_v53  ;;  %v2650_v4 = vmul.f32 %v2567_v55, %v4855_v40  ;;  %v3566_v36 = vpop.f32.mrb[22].mxu0 }
 0x211   : > { %v3764_v42 = vpop.eup %3763  ;;  %v2002_v3 = vadd.f32 1.0, %v3762_v47  ;;  %v3588_v0 = vpop.f32.mrb[22].mxu1  ;;  %3775 = vpow2.f32 %v3443_v28  ;;  %v5225_v32 = vadd.f32 %v2620_v61, %v4870_v1  ;;  %v2668_v19 = vadd.f32 %v2652_v17, %v4857_v13 }
 0x212   : > { %v2000_v22 = vadd.f32 1.0, %v3764_v42  ;;  %v2449_v18 = vpop.f32.mrb[23].mxu0  ;;  %v2570_v6 = vpop.f32.mrb[23].mxu1  ;;  %v5229_v16 = vadd.f32 %v2618_v31, %v4870_v1  ;;  %v2666_v15 = vadd.f32 %v2650_v4, %v4857_v13  ;;  %v2621_v43 = vmul.f32 %v3566_v36, %v4867_v53 }
 0x213   : > { %v3766_v52 = vpop.eup %3765  ;;  %3777 = vrcp.f32 %v2002_v3  ;;  %v3448_v51 = vmul.f32 -1.442695, %v2668_v19  ;;  %v2653_v48 = vmul.f32 %v3588_v0, %v4855_v40  ;;  %v2619_v39 = vmul.f32 %v2449_v18, %v4867_v53 }
 0x214   : > { %v3768_v63 = vpop.eup %3767  ;;  %3779 = vrcp.f32 %v2000_v22  ;;  %v2003_v27 = vadd.f32 1.0, %v3766_v52  ;;  %v3446_v41 = vmul.f32 -1.442695, %v2666_v15  ;;  %v5235_v35 = vadd.f32 %v2621_v43, %v4870_v1 }
 0x215   : > { %v2001_v34 = vadd.f32 1.0, %v3768_v63  ;;  %v2669_v26 = vadd.f32 %v2653_v48, %v4857_v13  ;;  %v2651_v57 = vmul.f32 %v2570_v6, %v4855_v40  ;;  %v5241_v47 = vsel %vm2073_vm4, %v2124_v60, %v2123_v23 }
 0x216   : > { %3781 = vrcp.f32 %v2003_v27  ;;  %v5244_v28 = vadd.f32 %v2619_v39, %v4870_v1  ;;  %v3569_v61 = vpop.f32.mrb[24].mxu0  ;;  %v3591_v17 = vpop.f32.mrb[24].mxu1 }
 0x217   : > { %3783 = vrcp.f32 %v2001_v34  ;;  %v3770_v42 = vpop.eup %3769  ;;  %v3449_v3 = vmul.f32 -1.442695, %v2669_v26  ;;  %v2667_v31 = vadd.f32 %v2651_v57, %v4857_v13  ;;  %v2624_v4 = vmul.f32 %v3569_v61, %v4867_v53  ;;  %v2462_v36 = vpop.f32.mrb[25].mxu0 }
 0x218   : > { %3785 = vpow2.f32 %v3448_v51  ;;  %v2583_v60 = vpop.f32.mrb[25].mxu1  ;;  %v3772_v23 = vpop.eup %3771  ;;  %v2728_v0 = vadd.f32 1.0, %v3770_v42  ;;  %v2656_v22 = vmul.f32 %v3591_v17, %v4855_v40  ;;  %v2622_v19 = vmul.f32 %v2462_v36, %v4867_v53 }
 0x219   : > { %3787 = vpow2.f32 %v3446_v41  ;;  %v3570_v18 = vpop.f32.mrb[26].mxu0  ;;  %v3592_v6 = vpop.f32.mrb[26].mxu1  ;;  %v2726_v52 = vadd.f32 1.0, %v3772_v23  ;;  %v3447_v15 = vmul.f32 -1.442695, %v2667_v31  ;;  %v5253_v43 = vadd.f32 %v2624_v4, %v4870_v1 }
 0x21a   : > { %3789 = vpow2.f32 %v3449_v3  ;;  %v2465_v63 = vpop.f32.mrb[27].mxu0  ;;  %v2586_v27 = vpop.f32.mrb[27].mxu1  ;;  %v2672_v48 = vadd.f32 %v2656_v22, %v4857_v13  ;;  %v5257_v34 = vadd.f32 %v2622_v19, %v4870_v1  ;;  %v2654_v41 = vmul.f32 %v2583_v60, %v4855_v40 }
 0x21b   : > { %v3774_v51 = vpop.eup %3773  ;;  %3791 = vrcp.f32 %v2728_v0  ;;  %v2625_v57 = vmul.f32 %v3570_v18, %v4867_v53  ;;  %v2657_v61 = vmul.f32 %v3592_v6, %v4855_v40  ;;  %v2623_v19 = vmul.f32 %v2465_v63, %v4867_v53 }
 0x21c   : > { %v3776_v39 = vpop.eup %3775  ;;  %3793 = vrcp.f32 %v2726_v52  ;;  %v2729_v26 = vadd.f32 1.0, %v3774_v51  ;;  %v3452_v3 = vmul.f32 -1.442695, %v2672_v48  ;;  %v2670_v31 = vadd.f32 %v2654_v41, %v4857_v13 }
 0x21d   : > { %v3778_v17 = vpop.eup %3777  ;;  %v2727_v42 = vadd.f32 1.0, %v3776_v39  ;;  %3795 = vpow2.f32 %v3447_v15  ;;  %v5267_v60 = vadd.f32 %v2625_v57, %v4870_v1  ;;  %v2673_v23 = vadd.f32 %v2657_v61, %v4857_v13 }
 0x21e   : > { %v3780_v4 = vpop.eup %3779  ;;  %v5264_v36 = vmul.f32 %v3778_v17, %v5148_v24  ;;  %3797 = vrcp.f32 %v2729_v26  ;;  %v3450_v22 = vmul.f32 -1.442695, %v2670_v31  ;;  %v3573_v18 = vpop.f32.mrb[28].mxu0  ;;  %v2655_v15 = vmul.f32 %v2586_v27, %v4855_v40 }
 0x21f   : > { %v5271_v0 = vmul.f32 %v3780_v4, %v5153_v38  ;;  %3799 = vrcp.f32 %v2727_v42  ;;  %v3595_v6 = vpop.f32.mrb[28].mxu1  ;;  %v3453_v24 = vmul.f32 -1.442695, %v2673_v23  ;;  %v2628_v51 = vmul.f32 %v3573_v18, %v4867_v53  ;;  %v2478_v48 = vpop.f32.mrb[29].mxu0 }
 0x220   : > { %v3782_v52 = vpop.eup %3781  ;;  %3801 = vpow2.f32 %v3452_v3  ;;  %v2599_v41 = vpop.f32.mrb[29].mxu1  ;;  %v5280_v26 = vadd.f32 %v2623_v19, %v4870_v1  ;;  %v2660_v63 = vmul.f32 %v3595_v6, %v4855_v40  ;;  %v2671_v27 = vadd.f32 %v2655_v15, %v4857_v13 }
 0x221   : > { %v3784_v39 = vpop.eup %3783  ;;  %v5277_v38 = vmul.f32 %v3782_v52, %v5159_v12  ;;  %3803 = vpow2.f32 %v3450_v22  ;;  %v3574_v57 = vpop.f32.mrb[30].mxu0  ;;  %v5288_v3 = vadd.f32 %v2628_v51, %v4870_v1  ;;  %v2626_v19 = vmul.f32 %v2478_v48, %v4867_v53 }
 0x222   : > { %v3596_v61 = vpop.f32.mrb[30].mxu1  ;;  %v3786_v17 = vpop.eup %3785  ;;  %v5284_v42 = vmul.f32 %v3784_v39, %v5165_v11  ;;  %3805 = vpow2.f32 %v3453_v24  ;;  %v2676_v22 = vadd.f32 %v2660_v63, %v4857_v13  ;;  %v2658_v18 = vmul.f32 %v2599_v41, %v4855_v40 }
 0x223   : > { %v2481_v12 = vpop.f32.mrb[31].mxu0  ;;  %v2602_v31 = vpop.f32.mrb[31].mxu1  ;;  %v2732_v23 = vadd.f32 1.0, %v3786_v17  ;;  %v3451_v52 = vmul.f32 -1.442695, %v2671_v27  ;;  %v2629_v24 = vmul.f32 %v3574_v57, %v4867_v53  ;;  %v2661_v15 = vmul.f32 %v3596_v61, %v4855_v40 }
 0x224   : > { %v3788_v4 = vpop.eup %3787  ;;  %v3456_v55 = vmul.f32 -1.442695, %v2676_v22  ;;  %v5296_v2 = vadd.f32 %v2626_v19, %v4870_v1  ;;  %v2674_v48 = vadd.f32 %v2658_v18, %v4857_v13  ;;  %v2659_v19 = vmul.f32 %v2602_v31, %v4855_v40 }
 0x225   : > { %v3790_v6 = vpop.eup %3789  ;;  %v2730_v11 = vadd.f32 1.0, %v3788_v4  ;;  %3807 = vrcp.f32 %v2732_v23  ;;  %v5303_v41 = vadd.f32 %v2629_v24, %v4870_v1  ;;  %v2677_v27 = vadd.f32 %v2661_v15, %v4857_v13 }
 0x226   : > { %v3792_v51 = vpop.eup %3791  ;;  %v2733_v39 = vadd.f32 1.0, %v3790_v6  ;;  %v2627_v4 = vmul.f32 %v2481_v12, %v4867_v53  ;;  %v2675_v53 = vadd.f32 %v2659_v19, %v4857_v13  ;;  %v2178_v40 = vsel %vm2076_vm5, %v5271_v0, %v5173_v20 }
 0x227   : > { %v3794_v17 = vpop.eup %3793  ;;  %v5299_v63 = vmul.f32 %v3792_v51, %v5186_v10  ;;  %3809 = vrcp.f32 %v2730_v11  ;;  %v3454_v10 = vmul.f32 -1.442695, %v2674_v48  ;;  %v3457_v11 = vmul.f32 -1.442695, %v2677_v27 }
 0x228   : > { %v3796_v57 = vpop.eup %3795  ;;  %v5306_v61 = vmul.f32 %v3794_v17, %v5191_v8  ;;  %3811 = vrcp.f32 %v2733_v39  ;;  %v5315_v8 = vadd.f32 %v2627_v4, %v4870_v1  ;;  %v3455_v51 = vmul.f32 -1.442695, %v2675_v53 }
 0x229   : > { %v3798_v23 = vpop.eup %3797  ;;  %v2731_v22 = vadd.f32 1.0, %v3796_v57  ;;  %3813 = vpow2.f32 %v3451_v52  ;;  %v2109_v48 = vrot.slane %v5271_v0, 4  ;;  %v2111_v57 = vrot.slane %v5264_v36, 3 }
 0x22a   : > { %v3800_v6 = vpop.eup %3799  ;;  %v5312_v18 = vmul.f32 %v3798_v23, %v5197_v9  ;;  %3815 = vpow2.f32 %v3456_v55  ;;  %v2179_v9 = vrot.slane %v5264_v36, 7  ;;  %v2092_v55 = vrot.slane %v5271_v0, 3 }
 0x22b   : > { %v3802_v24 = vpop.eup %3801  ;;  %v5318_v15 = vmul.f32 %v3800_v6, %v5204_v59  ;;  %3817 = vrcp.f32 %v2731_v22  ;;  %v2094_v59 = vrot.slane %v5264_v36, 2  ;;  %v2126_v4 = vrot.slane %v5271_v0, 5 }
 0x22c   : > { %v3804_v12 = vpop.eup %3803  ;;  %v2736_v31 = vadd.f32 1.0, %v3802_v24  ;;  %3819 = vpow2.f32 %v3454_v10  ;;  %v2180_v13 = vsel %vm2079_vm6, %v2179_v9, %v2178_v40  ;;  %v2093_v20 = vsel %vm2076_vm5, %v2092_v55, %v5180_v14 }
 0x22d   : > { %v3806_v1 = vpop.eup %3805  ;;  %v2734_v52 = vadd.f32 1.0, %v3804_v12  ;;  %3821 = vpow2.f32 %v3457_v11  ;;  %2181 = vrot.lane.b32.xlu0 %v2180_v13, %s3915_s9  ;;  %v2095_v17 = vsel %vm2079_vm6, %v2094_v59, %v2093_v20  ;;  %v2128_v23 = vrot.slane %v5264_v36, 4 }
 0x22e   : > { %3823 = vrcp.f32 %v2736_v31  ;;  %v2737_v39 = vadd.f32 1.0, %v3806_v1  ;;  %v5839_v22 = vrot.slane %v5132_v49, 7  ;;  %v2110_v6 = vsel %vm2076_vm5, %v2109_v48, %v5211_v7 }
 0x22f   : > { %3825 = vrcp.f32 %v2734_v52  ;;  %v3808_v27 = vpop.eup %3807  ;;  %v2143_v11 = vrot.slane %v5271_v0, 6  ;;  %v2112_v40 = vsel %vm2079_vm6, %v2111_v57, %v2110_v6  ;;  %v2127_v12 = vsel %vm2076_vm5, %v2126_v4, %v5241_v47 }
 0x230   : > { %3827 = vrcp.f32 %v2737_v39  ;;  %v2142_v14 = vsel %vm2073_vm4, %v5839_v22, %v5216_v30  ;;  %v5341_v19 = vmul.f32 %v3808_v27, %v5225_v32  ;;  %v2145_v30 = vrot.slane %v5264_v36, 5 }
 0x231   : > { %v3810_v10 = vpop.eup %3809  ;;  %3829 = vpow2.f32 %v3455_v51  ;;  %2096 = vrot.lane.b32.xlu0 %v2095_v17, %s3910_s24  ;;  %v2129_v7 = vsel %vm2079_vm6, %v2128_v23, %v2127_v12  ;;  %v2144_v9 = vsel %vm2076_vm5, %v2143_v11, %v2142_v14  ;;  %v2162_v13 = vrot.slane %v5264_v36, 6 }
 0x232   : > { %v3812_v24 = vpop.eup %3811  ;;  %v5347_v53 = vmul.f32 %v3810_v10, %v5229_v16  ;;  %v5840_v16 = vrot.slane %v5135_v44, 1  ;;  %v2146_v47 = vsel %vm2079_vm6, %v2145_v30, %v2144_v9  ;;  %v2191_v20 = vrot.slane %v5135_v44, 3 }
 0x233   : > { %v3814_v31 = vpop.eup %3813  ;;  %v5354_v32 = vmul.f32 %v3812_v24, %v5235_v35  ;;  %v2160_v35 = vrot.slane %v5271_v0, 7  ;;  %v2193_v17 = vrot.slane %v5132_v49, 2  ;;  %v2195_v27 = vrot.slane %v5271_v0, 1 }
 0x234   : > { %v2158_v55 = vsel %vm2070_vm3, %v5840_v16, %v5050_v62  ;;  %v3816_v1 = vpop.eup %3815  ;;  %v2735_v52 = vadd.f32 1.0, %v3814_v31  ;;  %v2192_v14 = vsel %vm2070_vm3, %v2191_v20, %v5060_v45  ;;  %v2318_v11 = vrot.slane %v5145_v21, 2 }
 0x235   : > { %v2159_v51 = vsel %vm2073_vm4, %v5132_v49, %v2158_v55  ;;  %v3818_v59 = vpop.eup %3817  ;;  %v2740_v39 = vadd.f32 1.0, %v3816_v1  ;;  %2113 = vrot.lane.b32.xlu0 %v2112_v40, %s3912_s29  ;;  %v2320_v24 = vrot.slane %v5140_v5, 1  ;;  %v2323_v31 = vrot.slane %v5277_v38, 7 }
 0x236   : > { %v3820_v48 = vpop.eup %3819  ;;  %v5371_v62 = vmul.f32 %v3818_v59, %v5244_v28  ;;  %3831 = vrcp.f32 %v2735_v52  ;;  %v2161_v57 = vsel %vm2076_vm5, %v2160_v35, %v2159_v51  ;;  %v2194_v28 = vsel %vm2073_vm4, %v2193_v17, %v2192_v14 }
 0x237   : > { %v3822_v4 = vpop.eup %3821  ;;  %3833 = vrcp.f32 %v2740_v39  ;;  %v2738_v23 = vadd.f32 1.0, %v3820_v48  ;;  %v2163_v22 = vsel %vm2079_vm6, %v2162_v13, %v2161_v57  ;;  %v2196_v40 = vsel %vm2076_vm5, %v2195_v27, %v2194_v28 }
 0x238   : > { %v3824_v10 = vpop.eup %3823  ;;  %v2741_v6 = vadd.f32 1.0, %v3822_v4  ;;  %v2197_v16 = vsel %vm2079_vm6, %v5264_v36, %v2196_v40  ;;  %v2319_v55 = vsel %vm2070_vm3, %v2318_v11, %v5066_v58  ;;  %v2898_v51 = vrot.slane %v5306_v61, 6 }
 0x239   : > { %v3826_v12 = vpop.eup %3825  ;;  %v5383_v30 = vmul.f32 %v3824_v10, %v5253_v43  ;;  %3835 = vrcp.f32 %v2738_v23  ;;  %2130 = vrot.lane.b32.xlu0 %v2129_v7, %s3908_s13  ;;  %v2321_v52 = vsel %vm2073_vm4, %v2320_v24, %v2319_v55  ;;  %v2901_v39 = vrot.slane %v5347_v53, 4 }
 0x23a   : > { %v3828_v9 = vpop.eup %3827  ;;  %v5388_v45 = vmul.f32 %v3826_v12, %v5257_v34  ;;  %3837 = vrcp.f32 %v2741_v6  ;;  %v2899_v34 = vrot.slane %v5299_v63, 5  ;;  %v2322_v59 = vsel %vm2076_vm5, %v5284_v42, %v2321_v52 }
 0x23b   : > { %v3830_v1 = vpop.eup %3829  ;;  %v5395_v43 = vmul.f32 %v3828_v9, %v5267_v60  ;;  %v2903_v58 = vrot.slane %v5341_v19, 3  ;;  %v5406_v13 = vsel %vm2079_vm6, %v2323_v31, %v2322_v59  ;;  %v2907_v20 = vrot.slane %v5383_v30, 1 }
 0x23c   : > { %v2739_v35 = vadd.f32 1.0, %v3830_v1  ;;  %v2900_v60 = vsel %vm2061_vm0, %v2899_v34, %v2898_v51  ;;  %v2905_v7 = vrot.slane %v5388_v45, 2  ;;  %v2215_v48 = vrot.slane %v5145_v21, 4 }
 0x23d   : > { %v2902_v17 = vsel %vm2064_vm1, %v2901_v39, %v2900_v60  ;;  %v2217_v57 = vrot.slane %v5140_v5, 3  ;;  %2147 = vrot.lane.b32.xlu0 %v2146_v47, %s3914_s28  ;;  %v2219_v4 = vrot.slane %v5284_v42, 2  ;;  %v2221_v23 = vrot.slane %v5277_v38, 1 }
 0x23e   : > { %3839 = vrcp.f32 %v2739_v35  ;;  %v2904_v27 = vsel %vm2067_vm2, %v2903_v58, %v2902_v17  ;;  %v2813_v14 = vrot.slane %v5306_v61, 1  ;;  %v2216_v28 = vsel %vm2070_vm3, %v2215_v48, %v5072_v33 }
 0x23f   : > { %v2906_v6 = vsel %vm2070_vm3, %v2905_v7, %v2904_v27  ;;  %v2815_v11 = vrot.slane %v5347_v53, 7  ;;  %v2817_v24 = vrot.slane %v5341_v19, 6  ;;  %v2218_v31 = vsel %vm2073_vm4, %v2217_v57, %v2216_v28 }
 0x240   : > { %v3832_v10 = vpop.eup %3831  ;;  %v2908_v40 = vsel %vm2073_vm4, %v2907_v20, %v2906_v6  ;;  %v2814_v9 = vsel %vm2061_vm0, %v5299_v63, %v2813_v14  ;;  %v2220_v33 = vsel %vm2076_vm5, %v2219_v4, %v2218_v31  ;;  %v2819_v52 = vrot.slane %v5388_v45, 5 }
 0x241   : > { %v3834_v12 = vpop.eup %3833  ;;  %v5425_v47 = vmul.f32 %v3832_v10, %v5280_v26  ;;  %v2816_v1 = vsel %vm2064_vm1, %v2815_v11, %v2814_v9  ;;  %2164 = vrot.lane.b32.xlu0 %v2163_v22, %s3916_s10  ;;  %v2222_v26 = vsel %vm2079_vm6, %v2221_v23, %v2220_v33  ;;  %v2821_v35 = vrot.slane %v5383_v30, 4 }
 0x242   : > { %v5432_v55 = vmul.f32 %v3834_v12, %v5288_v3  ;;  %v2818_v34 = vsel %vm2067_vm2, %v2817_v24, %v2816_v1  ;;  %v2232_v59 = vrot.slane %v5145_v21, 5  ;;  %v2234_v48 = vrot.slane %v5140_v5, 4 }
 0x243   : > { %v3836_v51 = vpop.eup %3835  ;;  %v2820_v60 = vsel %vm2070_vm3, %v2819_v52, %v2818_v34  ;;  %v2236_v27 = vrot.slane %v5284_v42, 3  ;;  %v2238_v4 = vrot.slane %v5277_v38, 2  ;;  %v2831_v14 = vrot.slane %v5299_v63, 1 }
 0x244   : > { %v3838_v3 = vpop.eup %3837  ;;  %v5443_v39 = vmul.f32 %v3836_v51, %v5296_v2  ;;  %v2910_v58 = vrot.slane %v5432_v55, 7  ;;  %v2825_v7 = vrot.slane %v5432_v55, 2  ;;  %v2822_v20 = vsel %vm2073_vm4, %v2821_v35, %v2820_v60 }
 0x245   : > { %v5449_v22 = vmul.f32 %v3838_v3, %v5303_v41  ;;  %v2233_v17 = vsel %vm2070_vm3, %v2232_v59, %v5085_v50  ;;  %2198 = vrot.lane.b32.xlu0 %v2197_v16, %s3917_s27  ;;  %v2830_v50 = vrot.slane %v5306_v61, 2  ;;  %v2834_v11 = vrot.slane %v5341_v19, 7 }
 0x246   : > { %v2909_v2 = vsel %vm2076_vm5, %v5443_v39, %v2908_v40  ;;  %v2823_v57 = vrot.slane %v5443_v39, 3  ;;  %v2235_v23 = vsel %vm2073_vm4, %v2234_v48, %v2233_v17  ;;  %v2836_v24 = vrot.slane %v5388_v45, 6 }
 0x247   : > { %v2911_v41 = vsel %vm2079_vm6, %v2910_v58, %v2909_v2  ;;  %v2237_v28 = vsel %vm2076_vm5, %v2236_v27, %v2235_v23  ;;  %v2832_v31 = vsel %vm2061_vm0, %v2831_v14, %v2830_v50  ;;  %v2838_v33 = vrot.slane %v5383_v30, 5 }
 0x248   : > { %v3840_v10 = vpop.eup %3839  ;;  %2912 = vrot.lane.b32.xlu1 %v2911_v41, %s3915_s9  ;;  %v2824_v6 = vsel %vm2076_vm5, %v2823_v57, %v2822_v20  ;;  %v2239_v40 = vsel %vm2079_vm6, %v2238_v4, %v2237_v28  ;;  %v2833_v9 = vsel %vm2064_vm1, %v5347_v53, %v2832_v31  ;;  %v2840_v1 = vrot.slane %v5443_v39, 4  ;;  %s3461_s9 = sshll.u32 (%p3997_p5), %s3101_s8, 3 }
 0x249   : > { %v5471_v16 = vmul.f32 %v3840_v10, %v5315_v8  ;;  %v2826_v12 = vsel %vm2079_vm6, %v2825_v7, %v2824_v6  ;;  %v2842_v52 = vrot.slane %v5432_v55, 3  ;;  %2325 = vrot.lane.b32.xlu0 %v5406_v13, %s3918_s12  ;;  %v2835_v8 = vsel %vm2067_vm2, %v2834_v11, %v2833_v9 }
 0x24a   : > { %v2249_v51 = vrot.slane %v5145_v21, 6  ;;  %v2251_v34 = vrot.slane %v5140_v5, 5  ;;  %v2253_v35 = vrot.slane %v5284_v42, 4  ;;  %v2837_v59 = vsel %vm2070_vm3, %v2836_v24, %v2835_v8 }
 0x24b   : > { %v2255_v3 = vrot.slane %v5277_v38, 3  ;;  %v2847_v58 = vrot.slane %v5306_v61, 3  ;;  %v2848_v60 = vrot.slane %v5299_v63, 2  ;;  %v2839_v13 = vsel %vm2073_vm4, %v2838_v33, %v2837_v59 }
 0x24c   : > { %2827 = vrot.lane.b32.xlu1 %v2826_v12, %s3910_s24  ;;  %v2250_v7 = vsel %vm2070_vm3, %v2249_v51, %v5088_v46  ;;  %v2850_v20 = vrot.slane %v5347_v53, 1  ;;  %v2853_v17 = vrot.slane %v5388_v45, 7  ;;  %v2841_v48 = vsel %vm2076_vm5, %v2840_v1, %v2839_v13  ;;  %s3919_s24 = smov 64  }
 0x24d   : > { %v2252_v2 = vsel %vm2073_vm4, %v2251_v34, %v2250_v7  ;;  %v2849_v57 = vsel %vm2061_vm0, %v2848_v60, %v2847_v58  ;;  %v2855_v27 = vrot.slane %v5383_v30, 6  ;;  %2223 = vrot.lane.b32.xlu0 %v2222_v26, %s3919_s24  ;;  %v2843_v4 = vsel %vm2079_vm6, %v2842_v52, %v2841_v48 }
 0x24e   : > { %v2254_v41 = vsel %vm2076_vm5, %v2253_v35, %v2252_v2  ;;  %v2851_v46 = vsel %vm2064_vm1, %v2850_v20, %v2849_v57  ;;  %v2857_v23 = vrot.slane %v5443_v39, 5  ;;  %v2859_v10 = vrot.slane %v5432_v55, 4 }
 0x24f   : > { %v2256_v50 = vsel %vm2079_vm6, %v2255_v3, %v2254_v41  ;;  %v2852_v14 = vsel %vm2067_vm2, %v5341_v19, %v2851_v46  ;;  %v2266_v6 = vrot.slane %v5145_v21, 7  ;;  %v2268_v28 = vrot.slane %v5140_v5, 6 }
 0x250   : > { %2844 = vrot.lane.b32.xlu1 %v2843_v4, %s3912_s29  ;;  %v2854_v26 = vsel %vm2070_vm3, %v2853_v17, %v2852_v14  ;;  %v2270_v11 = vrot.slane %v5284_v42, 5  ;;  %v2272_v24 = vrot.slane %v5277_v38, 4  ;;  %v2864_v9 = vrot.slane %v5306_v61, 4  ;;  %s3920_s29 = smov 72  }
 0x251   : > { %v2856_v12 = vsel %vm2073_vm4, %v2855_v27, %v2854_v26  ;;  %v2267_v31 = vsel %vm2070_vm3, %v2266_v6, %v5100_v54  ;;  %v2865_v33 = vrot.slane %v5299_v63, 3  ;;  %2240 = vrot.lane.b32.xlu0 %v2239_v40, %s3920_s29  ;;  %v2867_v8 = vrot.slane %v5347_v53, 2 }
 0x252   : > { %v2858_v1 = vsel %vm2076_vm5, %v2857_v23, %v2856_v12  ;;  %v2269_v52 = vsel %vm2073_vm4, %v2268_v28, %v2267_v31  ;;  %v2869_v51 = vrot.slane %v5341_v19, 1  ;;  %v2872_v59 = vrot.slane %v5383_v30, 7 }
 0x253   : > { %v2860_v34 = vsel %vm2079_vm6, %v2859_v10, %v2858_v1  ;;  %v2271_v35 = vsel %vm2076_vm5, %v2270_v11, %v2269_v52  ;;  %v2866_v54 = vsel %vm2061_vm0, %v2865_v33, %v2864_v9  ;;  %v2874_v58 = vrot.slane %v5443_v39, 6 }
 0x254   : > { %2861 = vrot.lane.b32.xlu1 %v2860_v34, %s3908_s13  ;;  %v2273_v40 = vsel %vm2079_vm6, %v2272_v24, %v2271_v35  ;;  %v2868_v3 = vsel %vm2064_vm1, %v2867_v8, %v2866_v54  ;;  %v2876_v60 = vrot.slane %v5432_v55, 5  ;;  %v2284_v7 = vsel %vm2070_vm3, %v5145_v21, %v5103_v37  ;;  %s3922_s13 = smov 88  }
 0x255   : > { %v2870_v13 = vsel %vm2067_vm2, %v2869_v51, %v2868_v3  ;;  %v2285_v20 = vrot.slane %v5140_v5, 7  ;;  %v2287_v17 = vrot.slane %v5284_v42, 6  ;;  %2257 = vrot.lane.b32.xlu0 %v2256_v50, %s3921_s14  ;;  %v2289_v2 = vrot.slane %v5277_v38, 5 }
 0x256   : > { %v2871_v48 = vsel %vm2070_vm3, %v5388_v45, %v2870_v13  ;;  %v2881_v57 = vrot.slane %v5306_v61, 5  ;;  %v2882_v27 = vrot.slane %v5299_v63, 4  ;;  %v2884_v41 = vrot.slane %v5347_v53, 3 }
 0x257   : > { %v2873_v4 = vsel %vm2073_vm4, %v2872_v59, %v2871_v48  ;;  %v2286_v37 = vsel %vm2073_vm4, %v2285_v20, %v2284_v7  ;;  %v2886_v46 = vrot.slane %v5341_v19, 2  ;;  %v2888_v10 = vrot.slane %v5388_v45, 1 }
 0x258   : > { %v2875_v23 = vsel %vm2076_vm5, %v2874_v58, %v2873_v4  ;;  %v2288_v50 = vsel %vm2076_vm5, %v2287_v17, %v2286_v37  ;;  %v2883_v14 = vsel %vm2061_vm0, %v2882_v27, %v2881_v57  ;;  %v2891_v11 = vrot.slane %v5443_v39, 7 }
 0x259   : > { %v2877_v6 = vsel %vm2079_vm6, %v2876_v60, %v2875_v23  ;;  %v2290_v26 = vsel %vm2079_vm6, %v2289_v2, %v2288_v50  ;;  %v2885_v28 = vsel %vm2064_vm1, %v2884_v41, %v2883_v14  ;;  %2274 = vrot.lane.b32.xlu0 %v2273_v40, %s3922_s13  ;;  %v2893_v12 = vrot.slane %v5432_v55, 6 }
 0x25a   : > { %2878 = vrot.lane.b32.xlu1 %v2877_v6, %s3914_s28  ;;  %v2887_v24 = vsel %vm2067_vm2, %v2886_v46, %v2885_v28  ;;  %v2301_v31 = vrot.slane %v5145_v21, 1  ;;  %v2304_v9 = vrot.slane %v5284_v42, 7  ;;  %v2306_v1 = vrot.slane %v5277_v38, 6  ;;  %s3923_s28 = smov 96  }
 0x25b   : > { %v2889_v33 = vsel %vm2070_vm3, %v2888_v10, %v2887_v24  ;;  %v2915_v52 = vrot.slane %v5306_v61, 7  ;;  %v2916_v8 = vrot.slane %v5299_v63, 6  ;;  %v2918_v35 = vrot.slane %v5347_v53, 5 }
 0x25c   : > { %v2890_v51 = vsel %vm2073_vm4, %v5383_v30, %v2889_v33  ;;  %v2302_v34 = vsel %vm2070_vm3, %v2301_v31, %v5109_v29  ;;  %v2920_v54 = vrot.slane %v5341_v19, 4  ;;  %v2922_v58 = vrot.slane %v5388_v45, 3 }
 0x25d   : > { %v2892_v59 = vsel %vm2076_vm5, %v2891_v11, %v2890_v51  ;;  %v2303_v40 = vsel %vm2073_vm4, %v5140_v5, %v2302_v34  ;;  %v2917_v3 = vsel %vm2061_vm0, %v2916_v8, %v2915_v52  ;;  %2291 = vrot.lane.b32.xlu0 %v2290_v26, %s3923_s28  ;;  %v2924_v7 = vrot.slane %v5383_v30, 2 }
 0x25e   : > { %v2894_v60 = vsel %vm2079_vm6, %v2893_v12, %v2892_v59  ;;  %v2305_v29 = vsel %vm2076_vm5, %v2304_v9, %v2303_v40  ;;  %v2919_v13 = vsel %vm2064_vm1, %v2918_v35, %v2917_v3  ;;  %v2926_v48 = vrot.slane %v5443_v39, 1 }
 0x25f   : > { %2895 = vrot.lane.b32.xlu1 %v2894_v60, %s3916_s10  ;;  %v2307_v20 = vsel %vm2079_vm6, %v2306_v1, %v2305_v29  ;;  %v2921_v17 = vsel %vm2067_vm2, %v2920_v54, %v2919_v13  ;;  %v2335_v2 = vrot.slane %v5145_v21, 3  ;;  %v2337_v27 = vrot.slane %v5140_v5, 2 }
 0x260   : > { %v2923_v57 = vsel %vm2070_vm3, %v2922_v58, %v2921_v17  ;;  %v2339_v4 = vrot.slane %v5284_v42, 1  ;;  %v3042_v37 = vrot.slane %v5318_v15, 6  ;;  %v3043_v23 = vrot.slane %v5312_v18, 5 }
 0x261   : > { %v2925_v41 = vsel %vm2073_vm4, %v2924_v7, %v2923_v57  ;;  %v2336_v46 = vsel %vm2070_vm3, %v2335_v2, %v5115_v56  ;;  %v3045_v50 = vrot.slane %v5371_v62, 4  ;;  %2308 = vrot.lane.b32.xlu0 %v2307_v20, %s3924_s25  ;;  %v3049_v42 = vrot.slane %v5425_v47, 2 }
 0x262   : > { %v2927_v21 = vsel %vm2076_vm5, %v2926_v48, %v2925_v41  ;;  %v2338_v5 = vsel %vm2073_vm4, %v2337_v27, %v2336_v46  ;;  %v3044_v56 = vsel %vm2061_vm0, %v3043_v23, %v3042_v37  ;;  %v3047_v6 = vrot.slane %v5354_v32, 3 }
 0x263   : > { %v2928_v14 = vsel %vm2079_vm6, %v5432_v55, %v2927_v21  ;;  %v2340_v10 = vsel %vm2076_vm5, %v2339_v4, %v2338_v5  ;;  %v3046_v28 = vsel %vm2064_vm1, %v3045_v50, %v3044_v56  ;;  %v3051_v11 = vrot.slane %v5395_v43, 1 }
 0x264   : > { %2929 = vrot.lane.b32.xlu1 %v2928_v14, %s3917_s27  ;;  %v2341_v26 = vsel %vm2079_vm6, %v5277_v38, %v2340_v10  ;;  %v2940_v24 = vrot.slane %v5312_v18, 7  ;;  %v3048_v12 = vsel %vm2067_vm2, %v3047_v6, %v3046_v28  ;;  %v3054_v31 = vrot.slane %v5449_v22, 7 }
 0x265   : > { %v2942_v9 = vrot.slane %v5371_v62, 6  ;;  %v2946_v33 = vrot.slane %v5425_v47, 4  ;;  %2342 = vrot.lane.b32.xlu0 %v2341_v26, %s3925_s5  ;;  %v3050_v1 = vsel %vm2070_vm3, %v3049_v42, %v3048_v12  ;;  %v2944_v52 = vrot.slane %v5354_v32, 5 }
 0x266   : > { %v2941_v38 = vsel %vm2061_vm0, %v2940_v24, %v5318_v15  ;;  %v2948_v8 = vrot.slane %v5395_v43, 3  ;;  %v3052_v51 = vsel %vm2073_vm4, %v3051_v11, %v3050_v1  ;;  %v2950_v35 = vrot.slane %v5471_v16, 2 }
 0x267   : > { %v2943_v34 = vsel %vm2064_vm1, %v2942_v9, %v2941_v38  ;;  %v2957_v54 = vrot.slane %v5318_v15, 1  ;;  %v3053_v59 = vsel %vm2076_vm5, %v5471_v16, %v3052_v51  ;;  %v2959_v3 = vrot.slane %v5371_v62, 7 }
 0x268   : > { %v2945_v40 = vsel %vm2067_vm2, %v2944_v52, %v2943_v34  ;;  %v2961_v58 = vrot.slane %v5354_v32, 6  ;;  %v3055_v60 = vsel %vm2079_vm6, %v3054_v31, %v3053_v59  ;;  %v2963_v7 = vrot.slane %v5425_v47, 5 }
 0x269   : > { %v2947_v29 = vsel %vm2070_vm3, %v2946_v33, %v2945_v40  ;;  %v2958_v13 = vsel %vm2061_vm0, %v5312_v18, %v2957_v54  ;;  %3056 = vrot.lane.b32.xlu1 %v3055_v60, %s3918_s12  ;;  %v2952_v17 = vrot.slane %v5449_v22, 1  ;;  %v2967_v2 = vrot.slane %v5471_v16, 3  ;;  %s3103_s12 = scalar_lea.vmem (%p3997_p5), %s5833_s4, %s3461_s9 }
 0x26a   : > { %v2949_v20 = vsel %vm2073_vm4, %v2948_v8, %v2947_v29  ;;  %v2960_v48 = vsel %vm2064_vm1, %v2959_v3, %v2958_v13  ;;  %v2965_v4 = vrot.slane %v5395_v43, 4  ;;  %v2974_v37 = vrot.slane %v5318_v15, 2 }
 0x26b   : > { %v2951_v57 = vsel %vm2076_vm5, %v2950_v35, %v2949_v20  ;;  %v2962_v27 = vsel %vm2067_vm2, %v2961_v58, %v2960_v48  ;;  %v2975_v23 = vrot.slane %v5312_v18, 1  ;;  %v2978_v50 = vrot.slane %v5354_v32, 7 }
 0x26c   : > { %v2953_v41 = vsel %vm2079_vm6, %v2952_v17, %v2951_v57  ;;  %v2964_v46 = vsel %vm2070_vm3, %v2963_v7, %v2962_v27  ;;  %v2969_v5 = vrot.slane %v5449_v22, 2  ;;  %v2980_v42 = vrot.slane %v5425_v47, 6 }
 0x26d   : > { %v2966_v21 = vsel %vm2073_vm4, %v2965_v4, %v2964_v46  ;;  %v2982_v14 = vrot.slane %v5395_v43, 5  ;;  %2954 = vrot.lane.b32.xlu1 %v2953_v41, %s3919_s24  ;;  %v2976_v56 = vsel %vm2061_vm0, %v2975_v23, %v2974_v37  ;;  %v2984_v6 = vrot.slane %v5471_v16, 4 }
 0x26e   : > { %v2968_v10 = vsel %vm2076_vm5, %v2967_v2, %v2966_v21  ;;  %v2991_v26 = vrot.slane %v5318_v15, 3  ;;  %v2977_v11 = vsel %vm2064_vm1, %v5371_v62, %v2976_v56  ;;  %v2992_v24 = vrot.slane %v5312_v18, 2 }
 0x26f   : > { %v2970_v28 = vsel %vm2079_vm6, %v2969_v5, %v2968_v10  ;;  %v2994_v12 = vrot.slane %v5371_v62, 1  ;;  %v2979_v31 = vsel %vm2067_vm2, %v2978_v50, %v2977_v11  ;;  %v2986_v9 = vrot.slane %v5449_v22, 3 }
 0x270   : > { %v2997_v33 = vrot.slane %v5425_v47, 7  ;;  %v2999_v1 = vrot.slane %v5395_v43, 6  ;;  %v2981_v38 = vsel %vm2070_vm3, %v2980_v42, %v2979_v31  ;;  %v2993_v52 = vsel %vm2061_vm0, %v2992_v24, %v2991_v26 }
 0x271   : > { %v3001_v8 = vrot.slane %v5471_v16, 5  ;;  %v3008_v51 = vrot.slane %v5318_v15, 4  ;;  %2971 = vrot.lane.b32.xlu1 %v2970_v28, %s3920_s29  ;;  %v2983_v34 = vsel %vm2073_vm4, %v2982_v14, %v2981_v38  ;;  %v2995_v35 = vsel %vm2064_vm1, %v2994_v12, %v2993_v52 }
 0x272   : > { %v3009_v54 = vrot.slane %v5312_v18, 3  ;;  %v3011_v59 = vrot.slane %v5371_v62, 2  ;;  %v2985_v40 = vsel %vm2076_vm5, %v2984_v6, %v2983_v34  ;;  %v2996_v3 = vsel %vm2067_vm2, %v5354_v32, %v2995_v35 }
 0x273   : > { %v3003_v58 = vrot.slane %v5449_v22, 4  ;;  %v3013_v60 = vrot.slane %v5354_v32, 1  ;;  %v2987_v29 = vsel %vm2079_vm6, %v2986_v9, %v2985_v40  ;;  %v2998_v13 = vsel %vm2070_vm3, %v2997_v33, %v2996_v3 }
 0x274   : > { %v3010_v7 = vsel %vm2061_vm0, %v3009_v54, %v3008_v51  ;;  %v3016_v20 = vrot.slane %v5395_v43, 7  ;;  %v3000_v17 = vsel %vm2073_vm4, %v2999_v1, %v2998_v13  ;;  %v3018_v2 = vrot.slane %v5471_v16, 6 }
 0x275   : > { %v3012_v48 = vsel %vm2064_vm1, %v3011_v59, %v3010_v7  ;;  %v3025_v57 = vrot.slane %v5318_v15, 5  ;;  %2988 = vrot.lane.b32.xlu1 %v2987_v29, %s3921_s14  ;;  %v3002_v27 = vsel %vm2076_vm5, %v3001_v8, %v3000_v17  ;;  %v3026_v37 = vrot.slane %v5312_v18, 4 }
 0x276   : > { %v3014_v4 = vsel %vm2067_vm2, %v3013_v60, %v3012_v48  ;;  %v3028_v41 = vrot.slane %v5371_v62, 3  ;;  %v3004_v46 = vsel %vm2079_vm6, %v3003_v58, %v3002_v27  ;;  %v3020_v50 = vrot.slane %v5449_v22, 5 }
 0x277   : > { %v3015_v23 = vsel %vm2070_vm3, %v5425_v47, %v3014_v4  ;;  %v3032_v21 = vrot.slane %v5425_v47, 1  ;;  %v3027_v42 = vsel %vm2061_vm0, %v3026_v37, %v3025_v57  ;;  %v3030_v14 = vrot.slane %v5354_v32, 2 }
 0x278   : > { %v3017_v5 = vsel %vm2073_vm4, %v3016_v20, %v3015_v23  ;;  %v3035_v10 = vrot.slane %v5471_v16, 7  ;;  %v3029_v6 = vsel %vm2064_vm1, %v3028_v41, %v3027_v42  ;;  %v3059_v26 = vrot.slane %v5318_v15, 7 }
 0x279   : > { %v3019_v56 = vsel %vm2076_vm5, %v3018_v2, %v3017_v5  ;;  %v3060_v28 = vrot.slane %v5312_v18, 6  ;;  %3005 = vrot.lane.b32.xlu1 %v3004_v46, %s3922_s13  ;;  %v3031_v24 = vsel %vm2067_vm2, %v3030_v14, %v3029_v6  ;;  %v3062_v12 = vrot.slane %v5371_v62, 5 }
 0x27a   : > { %v3021_v11 = vsel %vm2079_vm6, %v3020_v50, %v3019_v56  ;;  %v3033_v31 = vsel %vm2070_vm3, %v3032_v21, %v3031_v24  ;;  %v3064_v33 = vrot.slane %v5354_v32, 4  ;;  %v3066_v1 = vrot.slane %v5425_v47, 3 }
 0x27b   : > { %v3061_v9 = vsel %vm2061_vm0, %v3060_v28, %v3059_v26  ;;  %v3034_v15 = vsel %vm2073_vm4, %v5395_v43, %v3033_v31  ;;  %v3037_v18 = vrot.slane %v5449_v22, 6  ;;  %v3070_v52 = vrot.slane %v5471_v16, 1 }
 0x27c   : > { %v3063_v38 = vsel %vm2064_vm1, %v3062_v12, %v3061_v9  ;;  %v3036_v8 = vsel %vm2076_vm5, %v3035_v10, %v3034_v15  ;;  %v3068_v51 = vrot.slane %v5395_v43, 2  ;;  %v2798_v16 = vrot.slane %v5299_v63, 7 }
 0x27d   : > { %v3065_v62 = vsel %vm2067_vm2, %v3064_v33, %v3063_v38  ;;  %3022 = vrot.lane.b32.xlu1 %v3021_v11, %s3923_s28  ;;  %v3038_v32 = vsel %vm2079_vm6, %v3037_v18, %v3036_v8  ;;  %v2800_v59 = vrot.slane %v5347_v53, 6  ;;  %v2804_v43 = vrot.slane %v5388_v45, 4 }
 0x27e   : > { %v3067_v47 = vsel %vm2070_vm3, %v3066_v1, %v3065_v62  ;;  %v2799_v40 = vsel %vm2061_vm0, %v2798_v16, %v5306_v61  ;;  %v2802_v3 = vrot.slane %v5341_v19, 5  ;;  %v2808_v60 = vrot.slane %v5443_v39, 2 }
 0x27f   : > { %v3069_v34 = vsel %vm2073_vm4, %v3068_v51, %v3067_v47  ;;  %v2801_v58 = vsel %vm2064_vm1, %v2800_v59, %v2799_v40  ;;  %v2810_v45 = vrot.slane %v5432_v55, 1  ;;  %v2069_v57 = vrot.slane %v5135_v44, 4 }
 0x280   : > { %v3071_v35 = vsel %vm2076_vm5, %v3070_v52, %v3069_v34  ;;  %v2803_v29 = vsel %vm2067_vm2, %v2802_v3, %v2801_v58  ;;  %v2075_v37 = vrot.slane %v5271_v0, 2  ;;  %v2072_v41 = vrot.slane %v5132_v49, 3 }
 0x281   : > { %v3072_v54 = vsel %vm2079_vm6, %v5449_v22, %v3071_v35  ;;  %3039 = vrot.lane.b32.xlu1 %v3038_v32, %s3924_s25  ;;  %v2806_v22 = vrot.slane %v5383_v30, 3  ;;  %v2805_v63 = vsel %vm2070_vm3, %v2804_v43, %v2803_v29  ;;  %v2071_v55 = vsel %vm2070_vm3, %v2069_v57, %v5120_v25 }
 0x282   : > { %v2074_v50 = vsel %vm2073_vm4, %v2072_v41, %v2071_v55  ;;  %v2078_v5 = vrot.slane %v5264_v36, 1  ;;  %vm2359_vm0 = vcmask 654336   ;;  %vm2361_vm1 = vcmask 719872  }
 0x283   : > { %v2807_v53 = vsel %vm2073_vm4, %v2806_v22, %v2805_v63  ;;  %v2077_v21 = vsel %vm2076_vm5, %v2075_v37, %v2074_v50  ;;  %vm2363_vm2 = vcmask 785408   ;;  %vm2365_vm3 = vcmask 850944  }
 0x284   : > { %v2809_v61 = vsel %vm2076_vm5, %v2808_v60, %v2807_v53  ;;  %v2080_v44 = vsel %vm2079_vm6, %v2078_v5, %v2077_v21  ;;  %vm2367_vm4 = vcmask 916480   ;;  %vm2369_vm5 = vcmask 982016  }
 0x285   : > { %3073 = vrot.lane.b32.xlu1 %v3072_v54, %s3925_s5  ;;  %v5749_v19 = vsel %vm2079_vm6, %v2810_v45, %v2809_v61 }
 0x29f   : > { %v2182_v13 = vpop.permute.xlu0 %2181 }
 0x2a3   : > { %v2097_v7 = vpop.permute.xlu0 %2096 }
 0x2a4   : > { %v2345_v10 = vsel %vm1482_vm7, %v2080_v44, %v2097_v7 }
 0x2a7   : > { %v2114_v39 = vpop.permute.xlu0 %2113 }
 0x2a8   : > { %v2346_v25 = vsel %vm1516_vm9, %v2345_v10, %v2114_v39 }
 0x2ab   : > { %v2131_v20 = vpop.permute.xlu0 %2130 }
 0x2ac   : > { %v2347_v49 = vsel %vm1550_vm11, %v2346_v25, %v2131_v20 }
 0x2af   : > { %v2148_v17 = vpop.permute.xlu0 %2147 }
 0x2b0   : > { %v2348_v56 = vsel %vm1584_vm14, %v2347_v49, %v2148_v17 }
 0x2b3   : > { %v2165_v48 = vpop.permute.xlu0 %2164 }
 0x2b4   : > { %v2350_v6 = vsel %vm2349_vm8, %v2348_v56, %v2165_v48 }
 0x2b5   : > { %v2352_v28 = vsel %vm2351_vm10, %v2350_v6, %v2182_v13 }
 0x2b7   : > { %v2199_v30 = vpop.permute.xlu0 %2198 }
 0x2b8   : > { %v2354_v11 = vsel %vm2353_vm12, %v2352_v28, %v2199_v30 }
 0x2ba   : > { %v5751_v2 = vpop.permute.xlu1 %2912 }
 0x2bb   : > { %v2326_v27 = vpop.permute.xlu0 %2325 }
 0x2be   : > { %v2828_v4 = vpop.permute.xlu1 %2827 }
 0x2bf   : > { %v2224_v46 = vpop.permute.xlu0 %2223  ;;  %v3076_v35 = vsel %vm1482_vm7, %v5749_v19, %v2828_v4 }
 0x2c0   : > { %v2356_v24 = vsel %vm2355_vm13, %v2354_v11, %v2224_v46 }
 0x2c2   : > { %v2845_v23 = vpop.permute.xlu1 %2844 }
 0x2c3   : > { %v2241_v42 = vpop.permute.xlu0 %2240  ;;  %v3077_v54 = vsel %vm1516_vm9, %v3076_v35, %v2845_v23 }
 0x2c4   : > { %v2358_v31 = vsel %vm2357_vm15, %v2356_v24, %v2241_v42 }
 0x2c6   : > { %v2862_v14 = vpop.permute.xlu1 %2861 }
 0x2c7   : > { %v2258_v0 = vpop.permute.xlu0 %2257  ;;  %v3078_v59 = vsel %vm1550_vm11, %v3077_v54, %v2862_v14 }
 0x2c8   : > { %v2360_v33 = vsel %vm2359_vm0, %v2358_v31, %v2258_v0 }
 0x2cb   : > { %v2275_v36 = vpop.permute.xlu0 %2274 }
 0x2cc   : > { %v2879_v26 = vpop.permute.xlu1 %2878  ;;  %v2362_v1 = vsel %vm2361_vm1, %v2360_v33, %v2275_v36 }
 0x2cd   : > { %v3079_v43 = vsel %vm1584_vm14, %v3078_v59, %v2879_v26 }
 0x2cf   : > { %v2292_v12 = vpop.permute.xlu0 %2291 }
 0x2d0   : > { %v2364_v15 = vsel %vm2363_vm2, %v2362_v1, %v2292_v12 }
 0x2d1   : > { %v2896_v9 = vpop.permute.xlu1 %2895 }
 0x2d2   : > { %v3080_v40 = vsel %vm2349_vm8, %v3079_v43, %v2896_v9 }
 0x2d3   : > { %v2309_v18 = vpop.permute.xlu0 %2308  ;;  %v3081_v58 = vsel %vm2351_vm10, %v3080_v40, %v5751_v2 }
 0x2d4   : > { %v2366_v38 = vsel %vm2365_vm3, %v2364_v15, %v2309_v18 }
 0x2d5   : > { %v2368_v8 = vsel %vm2367_vm4, %v2366_v38, %v2326_v27 }
 0x2d6   : > { %v2930_v52 = vpop.permute.xlu1 %2929 }
 0x2d7   : > { %v2343_v62 = vpop.permute.xlu0 %2342  ;;  %v3082_v60 = vsel %vm2353_vm12, %v3081_v58, %v2930_v52 }
 0x2d8   : > { %v2370_v51 = vsel %vm2369_vm5, %v2368_v8, %v2343_v62 }
 0x2d9   : > { %2371 = vst [vmem:[%s5778_s15] sm:$0xff] %v2370_v51 }
 0x2db   : > { %v3057_v32 = vpop.permute.xlu1 %3056 }
 0x2df   : > { %v2955_v47 = vpop.permute.xlu1 %2954 }
 0x2e0   : > { %v3083_v29 = vsel %vm2355_vm13, %v3082_v60, %v2955_v47  ;;  %v3133_v17 = vld [vmem:[%s5778_s15] sm:$0xff] (%p3997_p5) }
 0x2e1   : > { %3134 = vst [vmem:[%s3103_s12] sm:$0xff] (%p3997_p5), %v3133_v17 }
 0x2e3   : > { %v2972_v34 = vpop.permute.xlu1 %2971 }
 0x2e4   : > { %v3084_v63 = vsel %vm2357_vm15, %v3083_v29, %v2972_v34 }
 0x2e7   : > { %v2989_v16 = vpop.permute.xlu1 %2988 }
 0x2e8   : > { %v3085_v53 = vsel %vm2359_vm0, %v3084_v63, %v2989_v16 }
 0x2eb   : > { %v3006_v3 = vpop.permute.xlu1 %3005 }
 0x2ec   : > { %v3086_v45 = vsel %vm2361_vm1, %v3085_v53, %v3006_v3 }
 0x2ef   : > { %v3023_v22 = vpop.permute.xlu1 %3022 }
 0x2f0   : > { %v3087_v61 = vsel %vm2363_vm2, %v3086_v45, %v3023_v22 }
 0x2f3   : > { %v3040_v19 = vpop.permute.xlu1 %3039  ;;  %3099 = sbr.rel (!%p3997_p5) target bundleno = 770 (0x302), region = 40 }
 0x2f4   : > { %v3088_v13 = vsel %vm2365_vm3, %v3087_v61, %v3040_v19 }
 0x2f5   : > { %v3089_v7 = vsel %vm2367_vm4, %v3088_v13, %v3057_v32 }
 0x2f7   : > { %v3074_v39 = vpop.permute.xlu1 %3073 }
 0x2f8   : > { %v3090_v20 = vsel %vm2369_vm5, %v3089_v7, %v3074_v39 }
 0x2f9   : > { %3458 = vst [vmem:[%s5778_s15 + $0x8] sm:$0xff] %v3090_v20 }
 0x300   : > { %v3135_v48 = vld [vmem:[%s5778_s15 + $0x8] sm:$0xff] }
 0x301   : > { %3136 = vst [vmem:[%s3103_s12 + $0x10] sm:$0xff] %v3135_v48 }
 0x302 PF: > { %s14_s21 = sadd.s32 1, %s3905_s21   ;;  %s5841_s15 = smov %s3885_s16 }
 0x303   : > { %p11_p10 = scmp.ge.s32.totalorder %s14_s21, 6   ;;  %s5842_s16 = smov %s4008_s30 }
 0x304   : > { %s5843_s17 = smov %s3897_s19  ;;  %s5844_s18 = smov %s3901_s20 }
 0x305   : > { %s5845_s19 = smov %s5848_s22  ;;  %s5846_s20 = smov %s5852_s23 }
 0x306   :  { %13 = sbr.rel (!%p11_p10) target bundleno = 4 (0x4), region = 110 }

</bundles_post_ra>
